<compile_context>
chip_gen: v7x
topology: tpu7x:2x2x1
jax: 0.10.0
libtpu: 0.0.40
codegen_flags: <defaults>
</compile_context>

<pallas_src>
import numpy as np
import jax
import jax.numpy as jnp
from jax import lax
from jax.experimental import pallas as pl
from jax.experimental.pallas import tpu as pltpu

_SQRT_2_OVER_PI = 0.7978845608028654
_INV_SQRT2 = 0.7071067811865476


def _gelu_tanh(x):
    # tanh-approximate GELU: the transcendental goes to the EUP slot instead
    # of an erf polynomial on the VALU.  ~1e-3 off PyTorch's exact erf GELU.
    return 0.5 * x * (1.0 + jnp.tanh(_SQRT_2_OVER_PI * (x + 0.044715 * x * x * x)))


def _gelu_exact(x):
    # Exact erf GELU (PyTorch nn.GELU default) -- used only by the reference.
    return 0.5 * x * (1.0 + lax.erf(x * _INV_SQRT2))


# ----------------------------------------------------------------------------
# Fused kernel: conv stack + running max over N tiles + head MLP epilogue.
# ----------------------------------------------------------------------------
def stn_fused_kernel(x_ref,
                     w1_ref, b1_ref,
                     w2_ref, b2_ref,
                     w3_ref,
                     s3_ref, b3_ref,
                     hw1_ref, b4_ref,
                     hw2_ref, b5_ref,
                     hw3_ref, hb3_ref,
                     o_ref,
                     acc_ref):
    ni = pl.program_id(1)                       # N-tile index (reduction axis)
    n_last = pl.num_programs(1) - 1
    Bt, Nt, Cin = x_ref.shape

    # ---- conv stack on this (Bt, Nt) tile of points ----
    x = x_ref[...].reshape(Bt * Nt, Cin)        # (M, Cin) f32, M = Bt*Nt
    w1 = w1_ref[...]                            # (Cin, 64) f32, BN scale folded

    # Layer 1: K = Cin (tiny) -> unrolled broadcast FMAs on the VPU instead of
    # a near-empty MXU matmul.
    h = x[:, 0:1] * w1[0:1, :]
    for c in range(1, Cin):
        h = h + x[:, c:c + 1] * w1[c:c + 1, :]
    h = _gelu_tanh(h + b1_ref[...])                               # (M, 64)

    # Layers 2/3: bf16 operands (BN scale folded into w2), f32 accumulation.
    h = jnp.dot(h.astype(jnp.bfloat16), w2_ref[...],
                preferred_element_type=jnp.float32)               # (M, 128)
    h = _gelu_tanh(h + b2_ref[...])
    h = jnp.dot(h.astype(jnp.bfloat16), w3_ref[...],
                preferred_element_type=jnp.float32)               # (M, 1024)

    # Per-sample max within this N-tile; running max in the VMEM scratch.
    part = jnp.max(h.reshape(Bt, Nt, 1024), axis=1)               # (Bt, 1024)

    @pl.when(ni == 0)
    def _():
        acc_ref[...] = part

    @pl.when(ni != 0)
    def _():
        acc_ref[...] = jnp.maximum(acc_ref[...], part)

    # ---- fused head MLP on the pooled features at the last N-tile ----
    @pl.when(ni == n_last)
    def _():
        # s3 is applied AFTER the max pool (cannot fold into w3: a negative
        # scale would break max(s*x) == s*max(x)).
        g = _gelu_tanh(acc_ref[...] * s3_ref[...] + b3_ref[...])  # (Bt, 1024)
        g = jnp.dot(g.astype(jnp.bfloat16), hw1_ref[...],
                    preferred_element_type=jnp.float32)           # (Bt, 512)
        g = _gelu_tanh(g + b4_ref[...])
        g = jnp.dot(g.astype(jnp.bfloat16), hw2_ref[...],
                    preferred_element_type=jnp.float32)           # (Bt, 256)
        g = _gelu_tanh(g + b5_ref[...])
        g = jnp.dot(g, hw3_ref[...],
                    preferred_element_type=jnp.float32)           # (Bt, nd2_pad)
        bo, _, ndp = o_ref.shape
        o_ref[...] = (g + hb3_ref[...]).reshape(bo, 1, ndp)


# ----------------------------------------------------------------------------
# Wrapper
# ----------------------------------------------------------------------------
def _tpu_generation():
    try:
        kind = jax.devices()[0].device_kind.lower()
    except Exception:
        return "unknown"
    if "v7" in kind:
        return "v7x"
    if "v6" in kind:
        return "v6e"
    if "v5" in kind:
        return "v5e"
    return "unknown"


# rows_max / nt_max sized so the hot (rows, 1024) f32 intermediate plus bf16
# copies, GELU temporaries, resident weights and double-buffered x blocks fit
# the generation's VMEM with the raised scoped limit.
_GEN_CFG = {
    "v6e":     dict(rows_max=4096, nt_max=4096, vmem_limit=96 * 1024 * 1024, two_cores=False),
    "v7x":     dict(rows_max=2048, nt_max=2048, vmem_limit=40 * 1024 * 1024, two_cores=True),
    "v5e":     dict(rows_max=2048, nt_max=2048, vmem_limit=64 * 1024 * 1024, two_cores=False),
    "unknown": dict(rows_max=2048, nt_max=2048, vmem_limit=None,             two_cores=False),
}


def _choose_tiles(B, N, cfg):
    """Pick (Bt, Nt) so Bt*Nt (matmul M) amortizes grid-step overhead."""
    nt_max, rows_max = cfg["nt_max"], cfg["rows_max"]
    if N > nt_max:
        Nt = nt_max
    else:
        Nt = ((N + 7) // 8) * 8            # sublane-aligned single tile
    bt_cap = max(1, rows_max // Nt)
    if cfg["two_cores"] and B >= 2:
        # keep >= 2 batch tiles so the "parallel" axis feeds both TensorCores
        bt_cap = min(bt_cap, (B + 1) // 2)
    Bt = 1
    for cand in range(min(B, bt_cap), 0, -1):
        if B % cand == 0:
            Bt = cand
            break
    return Bt, Nt


def stn_forward(x_bnc, params, out_nd):
    (w1, s1, b1, w2, s2, b2, w3, s3, b3,
     hw1, s4, b4, hw2, s5, b5, hw3, hb3) = params

    B, N, Cin = x_bnc.shape
    nd2 = out_nd * out_nd
    nd2_pad = ((nd2 + 127) // 128) * 128   # lane-dense head output

    cfg = _GEN_CFG[_tpu_generation()]
    Bt, Nt = _choose_tiles(B, N, cfg)
    pad_n = (-N) % Nt
    if pad_n:
        # Edge-replicate points: duplicates never change the per-sample max.
        x_bnc = jnp.pad(x_bnc, ((0, 0), (0, pad_n), (0, 0)), mode="edge")
    Np = N + pad_n

    # Fold eval-mode BatchNorm scales into the preceding weights (exact in
    # f32; only the bf16 rounding of the folded matrices changes).  s3 stays
    # un-folded because the max pool sits between w3 and that norm.
    w1f = w1 * s1                                    # stays f32 (VPU layer)
    w2f = (w2 * s2).astype(jnp.bfloat16)
    w3b = w3.astype(jnp.bfloat16)
    hw1f = (hw1 * s4).astype(jnp.bfloat16)
    hw2f = (hw2 * s5).astype(jnp.bfloat16)
    # Pad the final layer to a lane-dense width (padded columns never read).
    hw3p = jnp.pad(hw3, ((0, 0), (0, nd2_pad - nd2)))
    hb3p = jnp.pad(hb3, ((0, 0), (0, nd2_pad - nd2)))

    consts = [w1f, b1, w2f, b2, w3b, s3, b3, hw1f, b4, hw2f, b5, hw3p, hb3p]

    def const_spec(shape):
        # Small grid-invariant parameter tensors, fully resident.
        # TODO(synk): pipeline_mode=pl.Buffered(1) would trim the redundant
        # second buffer for these invariant blocks once confirmed supported.
        return pl.BlockSpec(shape, lambda bi, ni: (0, 0))

    out_pad = pl.pallas_call(
        stn_fused_kernel,
        out_shape=jax.ShapeDtypeStruct((B, 1, nd2_pad), jnp.float32),
        grid_spec=pltpu.PrefetchScalarGridSpec(
            num_scalar_prefetch=0,
            grid=(B // Bt, Np // Nt),
            in_specs=[pl.BlockSpec((Bt, Nt, Cin), lambda bi, ni: (bi, ni, 0))]
                     + [const_spec(c.shape) for c in consts],
            out_specs=pl.BlockSpec((Bt, 1, nd2_pad), lambda bi, ni: (bi, 0, 0)),
            scratch_shapes=[pltpu.VMEM((Bt, 1024), jnp.float32)],
        ),
        compiler_params=pltpu.CompilerParams(
            dimension_semantics=("parallel", "arbitrary"),
            vmem_limit_bytes=cfg["vmem_limit"]),
    )(x_bnc, *consts)

    return out_pad[:, 0, :nd2].reshape(B, out_nd, out_nd)


# ----------------------------------------------------------------------------
# Pure-JAX reference (f32, exact erf GELU) matching the torch module (eval).
# ----------------------------------------------------------------------------
def stn_ref(x_bnc, params, out_nd):
    (w1, s1, b1, w2, s2, b2, w3, s3, b3,
     hw1, s4, b4, hw2, s5, b5, hw3, hb3) = params
    h = _gelu_exact((x_bnc @ w1) * s1 + b1)
    h = _gelu_exact((h @ w2) * s2 + b2)
    h = h @ w3                                   # (B, N, 1024)
    g = jnp.max(h, axis=1)                       # (B, 1024)
    g = _gelu_exact(g * s3 + b3)
    g = _gelu_exact((g @ hw1) * s4 + b4)
    g = _gelu_exact((g @ hw2) * s5 + b5)
    g = g @ hw3 + hb3
    return g.reshape(g.shape[0], out_nd, out_nd)


def init_params(key, in_dim=3, out_nd=3):
    """Deterministic synthetic parameters matching the torch module shapes."""
    eps = 1e-5
    ks = jax.random.split(key, 16)

    def lin_w(k, cin, cout):
        # conv/linear weight (bias=False); stored as (in, out) for x @ W.
        return (jax.random.normal(k, (cin, cout), jnp.float32)
                / np.float32(np.sqrt(cin)))

    def bn_fold(k, c):
        k1, k2, k3, k4 = jax.random.split(k, 4)
        gamma = 1.0 + 0.1 * jax.random.normal(k1, (1, c), jnp.float32)
        beta = 0.1 * jax.random.normal(k2, (1, c), jnp.float32)
        mean = 0.1 * jax.random.normal(k3, (1, c), jnp.float32)
        var = jax.random.uniform(k4, (1, c), jnp.float32, minval=0.5, maxval=1.5)
        scale = gamma / jnp.sqrt(var + eps)
        shift = beta - mean * scale
        return scale, shift

    nd2 = out_nd * out_nd
    w1 = lin_w(ks[0], in_dim, 64)
    s1, b1 = bn_fold(ks[1], 64)
    w2 = lin_w(ks[2], 64, 128)
    s2, b2 = bn_fold(ks[3], 128)
    w3 = lin_w(ks[4], 128, 1024)
    s3, b3 = bn_fold(ks[5], 1024)          # self.norm (head_norm=True)
    hw1 = lin_w(ks[6], 1024, 512)
    s4, b4 = bn_fold(ks[7], 512)
    hw2 = lin_w(ks[8], 512, 256)
    s5, b5 = bn_fold(ks[9], 256)
    # final head layer: weight ~ N(0, 0.001), bias = flattened identity
    hw3 = 0.001 * jax.random.normal(ks[10], (256, nd2), jnp.float32)
    hb3 = jnp.eye(out_nd, dtype=jnp.float32).reshape(1, nd2)

    return [w1, s1, b1, w2, s2, b2, w3, s3, b3,
            hw1, s4, b4, hw2, s5, b5, hw3, hb3]


if __name__ == "__main__":
    key = jax.random.PRNGKey(0)
    kx, kp = jax.random.split(key)

    B, in_dim, N, out_nd = 2, 3, 64, 3
    # Input in the PyTorch layout (B, C, N), e.g. a small point cloud.
    x_bcn = jax.random.normal(kx, (B, in_dim, N), jnp.float32)
    x_bnc = jnp.transpose(x_bcn, (0, 2, 1))           # kernel layout (B, N, C)

    params = init_params(kp, in_dim=in_dim, out_nd=out_nd)

    out = stn_forward(x_bnc, params, out_nd)
    out = jax.block_until_ready(out)

    ref = stn_ref(x_bnc, params, out_nd)
    # bf16 matmul operands + tanh-approx GELU -> slightly looser tolerance.
    np.testing.assert_allclose(np.asarray(out), np.asarray(ref),
                               rtol=2e-2, atol=2e-2)
    assert out.shape == (B, out_nd, out_nd)
    print("KERNEL_OK")
</pallas_src>

<mosaic_0001>
module attributes {stable_mosaic.version = 11 : i64} {
  func.func @stn_fused_kernel(%arg0: i32, %arg1: i32, %arg2: memref<2x64x3xf32, #tpu.memory_space<vmem>>, %arg3: memref<3x64xf32, #tpu.memory_space<vmem>>, %arg4: memref<1x64xf32, #tpu.memory_space<vmem>>, %arg5: memref<64x128xbf16, #tpu.memory_space<vmem>>, %arg6: memref<1x128xf32, #tpu.memory_space<vmem>>, %arg7: memref<128x1024xbf16, #tpu.memory_space<vmem>>, %arg8: memref<1x1024xf32, #tpu.memory_space<vmem>>, %arg9: memref<1x1024xf32, #tpu.memory_space<vmem>>, %arg10: memref<1024x512xbf16, #tpu.memory_space<vmem>>, %arg11: memref<1x512xf32, #tpu.memory_space<vmem>>, %arg12: memref<512x256xbf16, #tpu.memory_space<vmem>>, %arg13: memref<1x256xf32, #tpu.memory_space<vmem>>, %arg14: memref<256x128xf32, #tpu.memory_space<vmem>>, %arg15: memref<1x128xf32, #tpu.memory_space<vmem>>, %arg16: memref<2x1x128xf32, #tpu.memory_space<vmem>>, %arg17: memref<2x1024xf32, #tpu.memory_space<vmem>>) attributes {dimension_semantics = [#tpu.dimension_semantics<parallel>, #tpu.dimension_semantics<arbitrary>], iteration_bounds = array<i64: 1, 1>, scalar_prefetch = 0 : i64, scratch_operands = 1 : i64, tpu.core_type = #tpu.core_type<tc>, window_params = [{transform_indices = @transform_0, window_bounds = array<i64: 2, 64, 3>}, {pipeline_mode = #tpu.pipeline_mode<synchronous>, transform_indices = @transform_1, window_bounds = array<i64: 3, 64>}, {pipeline_mode = #tpu.pipeline_mode<synchronous>, transform_indices = @transform_2, window_bounds = array<i64: 1, 64>}, {pipeline_mode = #tpu.pipeline_mode<synchronous>, transform_indices = @transform_3, window_bounds = array<i64: 64, 128>}, {pipeline_mode = #tpu.pipeline_mode<synchronous>, transform_indices = @transform_4, window_bounds = array<i64: 1, 128>}, {pipeline_mode = #tpu.pipeline_mode<synchronous>, transform_indices = @transform_5, window_bounds = array<i64: 128, 1024>}, {pipeline_mode = #tpu.pipeline_mode<synchronous>, transform_indices = @transform_6, window_bounds = array<i64: 1, 1024>}, {pipeline_mode = #tpu.pipeline_mode<synchronous>, transform_indices = @transform_7, window_bounds = array<i64: 1, 1024>}, {pipeline_mode = #tpu.pipeline_mode<synchronous>, transform_indices = @transform_8, window_bounds = array<i64: 1024, 512>}, {pipeline_mode = #tpu.pipeline_mode<synchronous>, transform_indices = @transform_9, window_bounds = array<i64: 1, 512>}, {pipeline_mode = #tpu.pipeline_mode<synchronous>, transform_indices = @transform_10, window_bounds = array<i64: 512, 256>}, {pipeline_mode = #tpu.pipeline_mode<synchronous>, transform_indices = @transform_11, window_bounds = array<i64: 1, 256>}, {pipeline_mode = #tpu.pipeline_mode<synchronous>, transform_indices = @transform_12, window_bounds = array<i64: 256, 128>}, {pipeline_mode = #tpu.pipeline_mode<synchronous>, transform_indices = @transform_13, window_bounds = array<i64: 1, 128>}, {transform_indices = @transform_14, window_bounds = array<i64: 2, 1, 128>}]} {
    %c0 = arith.constant 0 : index
    %c0_0 = arith.constant 0 : index
    %c0_1 = arith.constant 0 : index
    %0 = vector.load %arg2[%c0, %c0_0, %c0_1] : memref<2x64x3xf32, #tpu.memory_space<vmem>>, vector<2x64x3xf32>
    %1 = vector.shape_cast %0 : vector<2x64x3xf32> to vector<128x3xf32>
    %c0_2 = arith.constant 0 : index
    %c0_3 = arith.constant 0 : index
    %2 = vector.load %arg3[%c0_2, %c0_3] : memref<3x64xf32, #tpu.memory_space<vmem>>, vector<3x64xf32>
    %3 = vector.extract_strided_slice %1 {offsets = [0, 0], sizes = [128, 1], strides = [1, 1]} : vector<128x3xf32> to vector<128x1xf32>
    %4 = vector.extract_strided_slice %2 {offsets = [0, 0], sizes = [1, 64], strides = [1, 1]} : vector<3x64xf32> to vector<1x64xf32>
    %5 = vector.broadcast %3 : vector<128x1xf32> to vector<128x64xf32>
    %6 = vector.broadcast %4 : vector<1x64xf32> to vector<128x64xf32>
    %7 = arith.mulf %5, %6 : vector<128x64xf32>
    %8 = vector.extract_strided_slice %1 {offsets = [0, 1], sizes = [128, 1], strides = [1, 1]} : vector<128x3xf32> to vector<128x1xf32>
    %9 = vector.extract_strided_slice %2 {offsets = [1, 0], sizes = [1, 64], strides = [1, 1]} : vector<3x64xf32> to vector<1x64xf32>
    %10 = vector.broadcast %8 : vector<128x1xf32> to vector<128x64xf32>
    %11 = vector.broadcast %9 : vector<1x64xf32> to vector<128x64xf32>
    %12 = arith.mulf %10, %11 : vector<128x64xf32>
    %13 = arith.addf %7, %12 : vector<128x64xf32>
    %14 = vector.extract_strided_slice %1 {offsets = [0, 2], sizes = [128, 1], strides = [1, 1]} : vector<128x3xf32> to vector<128x1xf32>
    %15 = vector.extract_strided_slice %2 {offsets = [2, 0], sizes = [1, 64], strides = [1, 1]} : vector<3x64xf32> to vector<1x64xf32>
    %16 = vector.broadcast %14 : vector<128x1xf32> to vector<128x64xf32>
    %17 = vector.broadcast %15 : vector<1x64xf32> to vector<128x64xf32>
    %18 = arith.mulf %16, %17 : vector<128x64xf32>
    %19 = arith.addf %13, %18 : vector<128x64xf32>
    %c0_4 = arith.constant 0 : index
    %c0_5 = arith.constant 0 : index
    %20 = vector.load %arg4[%c0_4, %c0_5] : memref<1x64xf32, #tpu.memory_space<vmem>>, vector<1x64xf32>
    %21 = vector.broadcast %20 : vector<1x64xf32> to vector<128x64xf32>
    %22 = arith.addf %19, %21 : vector<128x64xf32>
    %cst = arith.constant 5.000000e-01 : f32
    %23 = vector.broadcast %cst : f32 to vector<128x64xf32>
    %24 = arith.mulf %23, %22 : vector<128x64xf32>
    %cst_6 = arith.constant 4.471500e-02 : f32
    %25 = vector.broadcast %cst_6 : f32 to vector<128x64xf32>
    %26 = arith.mulf %25, %22 : vector<128x64xf32>
    %27 = arith.mulf %26, %22 : vector<128x64xf32>
    %28 = arith.mulf %27, %22 : vector<128x64xf32>
    %29 = arith.addf %22, %28 : vector<128x64xf32>
    %cst_7 = arith.constant 0.797884583 : f32
    %30 = vector.broadcast %cst_7 : f32 to vector<128x64xf32>
    %31 = arith.mulf %30, %29 : vector<128x64xf32>
    %32 = math.tanh %31 : vector<128x64xf32>
    %cst_8 = arith.constant 1.000000e+00 : f32
    %33 = vector.broadcast %cst_8 : f32 to vector<128x64xf32>
    %34 = arith.addf %33, %32 : vector<128x64xf32>
    %35 = arith.mulf %24, %34 : vector<128x64xf32>
    %36 = arith.truncf %35 : vector<128x64xf32> to vector<128x64xbf16>
    %c0_9 = arith.constant 0 : index
    %c0_10 = arith.constant 0 : index
    %37 = vector.load %arg5[%c0_9, %c0_10] : memref<64x128xbf16, #tpu.memory_space<vmem>>, vector<64x128xbf16>
    %cst_11 = arith.constant dense<0.000000e+00> : vector<128x128xf32>
    %38 = tpu.matmul %36, %37, %cst_11 {dimension_numbers = #tpu.dot_dimension_numbers<[1], [0], [0], [1], [0, 0, 1, 1], [], []>} : vector<128x64xbf16>, vector<64x128xbf16>, vector<128x128xf32> -> vector<128x128xf32>
    %c0_12 = arith.constant 0 : index
    %c0_13 = arith.constant 0 : index
    %39 = vector.load %arg6[%c0_12, %c0_13] : memref<1x128xf32, #tpu.memory_space<vmem>>, vector<1x128xf32>
    %40 = vector.broadcast %39 : vector<1x128xf32> to vector<128x128xf32>
    %41 = arith.addf %38, %40 : vector<128x128xf32>
    %cst_14 = arith.constant 5.000000e-01 : f32
    %42 = vector.broadcast %cst_14 : f32 to vector<128x128xf32>
    %43 = arith.mulf %42, %41 : vector<128x128xf32>
    %cst_15 = arith.constant 4.471500e-02 : f32
    %44 = vector.broadcast %cst_15 : f32 to vector<128x128xf32>
    %45 = arith.mulf %44, %41 : vector<128x128xf32>
    %46 = arith.mulf %45, %41 : vector<128x128xf32>
    %47 = arith.mulf %46, %41 : vector<128x128xf32>
    %48 = arith.addf %41, %47 : vector<128x128xf32>
    %cst_16 = arith.constant 0.797884583 : f32
    %49 = vector.broadcast %cst_16 : f32 to vector<128x128xf32>
    %50 = arith.mulf %49, %48 : vector<128x128xf32>
    %51 = math.tanh %50 : vector<128x128xf32>
    %cst_17 = arith.constant 1.000000e+00 : f32
    %52 = vector.broadcast %cst_17 : f32 to vector<128x128xf32>
    %53 = arith.addf %52, %51 : vector<128x128xf32>
    %54 = arith.mulf %43, %53 : vector<128x128xf32>
    %55 = arith.truncf %54 : vector<128x128xf32> to vector<128x128xbf16>
    %c0_18 = arith.constant 0 : index
    %c0_19 = arith.constant 0 : index
    %56 = vector.load %arg7[%c0_18, %c0_19] : memref<128x1024xbf16, #tpu.memory_space<vmem>>, vector<128x1024xbf16>
    %cst_20 = arith.constant dense<0.000000e+00> : vector<128x1024xf32>
    %57 = tpu.matmul %55, %56, %cst_20 {dimension_numbers = #tpu.dot_dimension_numbers<[1], [0], [0], [1], [0, 0, 1, 1], [], []>} : vector<128x128xbf16>, vector<128x1024xbf16>, vector<128x1024xf32> -> vector<128x1024xf32>
    %58 = vector.shape_cast %57 : vector<128x1024xf32> to vector<2x64x1024xf32>
    %cst_21 = arith.constant dense<0xFF800000> : vector<2x1024xf32>
    %59 = vector.multi_reduction <maximumf>, %58, %cst_21 [1] : vector<2x64x1024xf32> to vector<2x1024xf32>
    %c0_i32 = arith.constant 0 : i32
    %60 = arith.cmpi eq, %arg1, %c0_i32 : i32
    %61 = arith.extui %60 : i1 to i32
    %c0_i32_22 = arith.constant 0 : i32
    %62 = arith.cmpi ne, %61, %c0_i32_22 : i32
    scf.if %62 {
      %c0_27 = arith.constant 0 : index
      %c0_28 = arith.constant 0 : index
      %69 = vector.load %arg17[%c0_27, %c0_28] : memref<2x1024xf32, #tpu.memory_space<vmem>>, vector<2x1024xf32>
      tpu.vector_store %arg17[%c0_27, %c0_28], %59 {strides = array<i32>} : memref<2x1024xf32, #tpu.memory_space<vmem>>, vector<2x1024xf32>,
    } else {
    }
    %c0_i32_23 = arith.constant 0 : i32
    %63 = arith.cmpi ne, %arg1, %c0_i32_23 : i32
    %64 = arith.extui %63 : i1 to i32
    %c0_i32_24 = arith.constant 0 : i32
    %65 = arith.cmpi ne, %64, %c0_i32_24 : i32
    scf.if %65 {
      %c0_27 = arith.constant 0 : index
      %c0_28 = arith.constant 0 : index
      %69 = vector.load %arg17[%c0_27, %c0_28] : memref<2x1024xf32, #tpu.memory_space<vmem>>, vector<2x1024xf32>
      %70 = arith.maximumf %69, %59 : vector<2x1024xf32>
      %c0_29 = arith.constant 0 : index
      %c0_30 = arith.constant 0 : index
      %71 = vector.load %arg17[%c0_29, %c0_30] : memref<2x1024xf32, #tpu.memory_space<vmem>>, vector<2x1024xf32>
      tpu.vector_store %arg17[%c0_29, %c0_30], %70 {strides = array<i32>} : memref<2x1024xf32, #tpu.memory_space<vmem>>, vector<2x1024xf32>,
    } else {
    }
    %c0_i32_25 = arith.constant 0 : i32
    %66 = arith.cmpi eq, %arg1, %c0_i32_25 : i32
    %67 = arith.extui %66 : i1 to i32
    %c0_i32_26 = arith.constant 0 : i32
    %68 = arith.cmpi ne, %67, %c0_i32_26 : i32
    scf.if %68 {
      %c0_27 = arith.constant 0 : index
      %c0_28 = arith.constant 0 : index
      %69 = vector.load %arg17[%c0_27, %c0_28] : memref<2x1024xf32, #tpu.memory_space<vmem>>, vector<2x1024xf32>
      %c0_29 = arith.constant 0 : index
      %c0_30 = arith.constant 0 : index
      %70 = vector.load %arg8[%c0_29, %c0_30] : memref<1x1024xf32, #tpu.memory_space<vmem>>, vector<1x1024xf32>
      %71 = vector.broadcast %70 : vector<1x1024xf32> to vector<2x1024xf32>
      %72 = arith.mulf %69, %71 : vector<2x1024xf32>
      %c0_31 = arith.constant 0 : index
      %c0_32 = arith.constant 0 : index
      %73 = vector.load %arg9[%c0_31, %c0_32] : memref<1x1024xf32, #tpu.memory_space<vmem>>, vector<1x1024xf32>
      %74 = vector.broadcast %73 : vector<1x1024xf32> to vector<2x1024xf32>
      %75 = arith.addf %72, %74 : vector<2x1024xf32>
      %cst_33 = arith.constant 5.000000e-01 : f32
      %76 = vector.broadcast %cst_33 : f32 to vector<2x1024xf32>
      %77 = arith.mulf %76, %75 : vector<2x1024xf32>
      %cst_34 = arith.constant 4.471500e-02 : f32
      %78 = vector.broadcast %cst_34 : f32 to vector<2x1024xf32>
      %79 = arith.mulf %78, %75 : vector<2x1024xf32>
      %80 = arith.mulf %79, %75 : vector<2x1024xf32>
      %81 = arith.mulf %80, %75 : vector<2x1024xf32>
      %82 = arith.addf %75, %81 : vector<2x1024xf32>
      %cst_35 = arith.constant 0.797884583 : f32
      %83 = vector.broadcast %cst_35 : f32 to vector<2x1024xf32>
      %84 = arith.mulf %83, %82 : vector<2x1024xf32>
      %85 = math.tanh %84 : vector<2x1024xf32>
      %cst_36 = arith.constant 1.000000e+00 : f32
      %86 = vector.broadcast %cst_36 : f32 to vector<2x1024xf32>
      %87 = arith.addf %86, %85 : vector<2x1024xf32>
      %88 = arith.mulf %77, %87 : vector<2x1024xf32>
      %89 = arith.truncf %88 : vector<2x1024xf32> to vector<2x1024xbf16>
      %c0_37 = arith.constant 0 : index
      %c0_38 = arith.constant 0 : index
      %90 = vector.load %arg10[%c0_37, %c0_38] : memref<1024x512xbf16, #tpu.memory_space<vmem>>, vector<1024x512xbf16>
      %cst_39 = arith.constant dense<0.000000e+00> : vector<2x512xf32>
      %91 = tpu.matmul %89, %90, %cst_39 {dimension_numbers = #tpu.dot_dimension_numbers<[1], [0], [0], [1], [0, 0, 1, 1], [], []>} : vector<2x1024xbf16>, vector<1024x512xbf16>, vector<2x512xf32> -> vector<2x512xf32>
      %c0_40 = arith.constant 0 : index
      %c0_41 = arith.constant 0 : index
      %92 = vector.load %arg11[%c0_40, %c0_41] : memref<1x512xf32, #tpu.memory_space<vmem>>, vector<1x512xf32>
      %93 = vector.broadcast %92 : vector<1x512xf32> to vector<2x512xf32>
      %94 = arith.addf %91, %93 : vector<2x512xf32>
      %cst_42 = arith.constant 5.000000e-01 : f32
      %95 = vector.broadcast %cst_42 : f32 to vector<2x512xf32>
      %96 = arith.mulf %95, %94 : vector<2x512xf32>
      %cst_43 = arith.constant 4.471500e-02 : f32
      %97 = vector.broadcast %cst_43 : f32 to vector<2x512xf32>
      %98 = arith.mulf %97, %94 : vector<2x512xf32>
      %99 = arith.mulf %98, %94 : vector<2x512xf32>
      %100 = arith.mulf %99, %94 : vector<2x512xf32>
      %101 = arith.addf %94, %100 : vector<2x512xf32>
      %cst_44 = arith.constant 0.797884583 : f32
      %102 = vector.broadcast %cst_44 : f32 to vector<2x512xf32>
      %103 = arith.mulf %102, %101 : vector<2x512xf32>
      %104 = math.tanh %103 : vector<2x512xf32>
      %cst_45 = arith.constant 1.000000e+00 : f32
      %105 = vector.broadcast %cst_45 : f32 to vector<2x512xf32>
      %106 = arith.addf %105, %104 : vector<2x512xf32>
      %107 = arith.mulf %96, %106 : vector<2x512xf32>
      %108 = arith.truncf %107 : vector<2x512xf32> to vector<2x512xbf16>
      %c0_46 = arith.constant 0 : index
      %c0_47 = arith.constant 0 : index
      %109 = vector.load %arg12[%c0_46, %c0_47] : memref<512x256xbf16, #tpu.memory_space<vmem>>, vector<512x256xbf16>
      %cst_48 = arith.constant dense<0.000000e+00> : vector<2x256xf32>
      %110 = tpu.matmul %108, %109, %cst_48 {dimension_numbers = #tpu.dot_dimension_numbers<[1], [0], [0], [1], [0, 0, 1, 1], [], []>} : vector<2x512xbf16>, vector<512x256xbf16>, vector<2x256xf32> -> vector<2x256xf32>
      %c0_49 = arith.constant 0 : index
      %c0_50 = arith.constant 0 : index
      %111 = vector.load %arg13[%c0_49, %c0_50] : memref<1x256xf32, #tpu.memory_space<vmem>>, vector<1x256xf32>
      %112 = vector.broadcast %111 : vector<1x256xf32> to vector<2x256xf32>
      %113 = arith.addf %110, %112 : vector<2x256xf32>
      %cst_51 = arith.constant 5.000000e-01 : f32
      %114 = vector.broadcast %cst_51 : f32 to vector<2x256xf32>
      %115 = arith.mulf %114, %113 : vector<2x256xf32>
      %cst_52 = arith.constant 4.471500e-02 : f32
      %116 = vector.broadcast %cst_52 : f32 to vector<2x256xf32>
      %117 = arith.mulf %116, %113 : vector<2x256xf32>
      %118 = arith.mulf %117, %113 : vector<2x256xf32>
      %119 = arith.mulf %118, %113 : vector<2x256xf32>
      %120 = arith.addf %113, %119 : vector<2x256xf32>
      %cst_53 = arith.constant 0.797884583 : f32
      %121 = vector.broadcast %cst_53 : f32 to vector<2x256xf32>
      %122 = arith.mulf %121, %120 : vector<2x256xf32>
      %123 = math.tanh %122 : vector<2x256xf32>
      %cst_54 = arith.constant 1.000000e+00 : f32
      %124 = vector.broadcast %cst_54 : f32 to vector<2x256xf32>
      %125 = arith.addf %124, %123 : vector<2x256xf32>
      %126 = arith.mulf %115, %125 : vector<2x256xf32>
      %c0_55 = arith.constant 0 : index
      %c0_56 = arith.constant 0 : index
      %127 = vector.load %arg14[%c0_55, %c0_56] : memref<256x128xf32, #tpu.memory_space<vmem>>, vector<256x128xf32>
      %cst_57 = arith.constant dense<0.000000e+00> : vector<2x128xf32>
      %128 = tpu.matmul %126, %127, %cst_57 {dimension_numbers = #tpu.dot_dimension_numbers<[1], [0], [0], [1], [0, 0, 1, 1], [], []>} : vector<2x256xf32>, vector<256x128xf32>, vector<2x128xf32> -> vector<2x128xf32>
      %c0_58 = arith.constant 0 : index
      %c0_59 = arith.constant 0 : index
      %129 = vector.load %arg15[%c0_58, %c0_59] : memref<1x128xf32, #tpu.memory_space<vmem>>, vector<1x128xf32>
      %130 = vector.broadcast %129 : vector<1x128xf32> to vector<2x128xf32>
      %131 = arith.addf %128, %130 : vector<2x128xf32>
      %132 = vector.shape_cast %131 : vector<2x128xf32> to vector<2x1x128xf32>
      %c0_60 = arith.constant 0 : index
      %c0_61 = arith.constant 0 : index
      %c0_62 = arith.constant 0 : index
      %133 = vector.load %arg16[%c0_60, %c0_61, %c0_62] : memref<2x1x128xf32, #tpu.memory_space<vmem>>, vector<2x1x128xf32>
      tpu.vector_store %arg16[%c0_60, %c0_61, %c0_62], %132 {strides = array<i32>} : memref<2x1x128xf32, #tpu.memory_space<vmem>>, vector<2x1x128xf32>,
    } else {
    }
    return
  }
  func.func @transform_0(%arg0: i32, %arg1: i32) -> (i32, i32, i32) {
    %c0_i32 = arith.constant 0 : i32
    %c0_i32_0 = arith.constant 0 : i32
    return %arg0, %arg1, %c0_i32 : i32, i32, i32
  }
  func.func @transform_1(%arg0: i32, %arg1: i32) -> (i32, i32) {
    %c0_i32 = arith.constant 0 : i32
    %c0_i32_0 = arith.constant 0 : i32
    %c0_i32_1 = arith.constant 0 : i32
    return %c0_i32, %c0_i32_0 : i32, i32
  }
  func.func @transform_2(%arg0: i32, %arg1: i32) -> (i32, i32) {
    %c0_i32 = arith.constant 0 : i32
    %c0_i32_0 = arith.constant 0 : i32
    %c0_i32_1 = arith.constant 0 : i32
    return %c0_i32, %c0_i32_0 : i32, i32
  }
  func.func @transform_3(%arg0: i32, %arg1: i32) -> (i32, i32) {
    %c0_i32 = arith.constant 0 : i32
    %c0_i32_0 = arith.constant 0 : i32
    %c0_i32_1 = arith.constant 0 : i32
    return %c0_i32, %c0_i32_0 : i32, i32
  }
  func.func @transform_4(%arg0: i32, %arg1: i32) -> (i32, i32) {
    %c0_i32 = arith.constant 0 : i32
    %c0_i32_0 = arith.constant 0 : i32
    %c0_i32_1 = arith.constant 0 : i32
    return %c0_i32, %c0_i32_0 : i32, i32
  }
  func.func @transform_5(%arg0: i32, %arg1: i32) -> (i32, i32) {
    %c0_i32 = arith.constant 0 : i32
    %c0_i32_0 = arith.constant 0 : i32
    %c0_i32_1 = arith.constant 0 : i32
    return %c0_i32, %c0_i32_0 : i32, i32
  }
  func.func @transform_6(%arg0: i32, %arg1: i32) -> (i32, i32) {
    %c0_i32 = arith.constant 0 : i32
    %c0_i32_0 = arith.constant 0 : i32
    %c0_i32_1 = arith.constant 0 : i32
    return %c0_i32, %c0_i32_0 : i32, i32
  }
  func.func @transform_7(%arg0: i32, %arg1: i32) -> (i32, i32) {
    %c0_i32 = arith.constant 0 : i32
    %c0_i32_0 = arith.constant 0 : i32
    %c0_i32_1 = arith.constant 0 : i32
    return %c0_i32, %c0_i32_0 : i32, i32
  }
  func.func @transform_8(%arg0: i32, %arg1: i32) -> (i32, i32) {
    %c0_i32 = arith.constant 0 : i32
    %c0_i32_0 = arith.constant 0 : i32
    %c0_i32_1 = arith.constant 0 : i32
    return %c0_i32, %c0_i32_0 : i32, i32
  }
  func.func @transform_9(%arg0: i32, %arg1: i32) -> (i32, i32) {
    %c0_i32 = arith.constant 0 : i32
    %c0_i32_0 = arith.constant 0 : i32
    %c0_i32_1 = arith.constant 0 : i32
    return %c0_i32, %c0_i32_0 : i32, i32
  }
  func.func @transform_10(%arg0: i32, %arg1: i32) -> (i32, i32) {
    %c0_i32 = arith.constant 0 : i32
    %c0_i32_0 = arith.constant 0 : i32
    %c0_i32_1 = arith.constant 0 : i32
    return %c0_i32, %c0_i32_0 : i32, i32
  }
  func.func @transform_11(%arg0: i32, %arg1: i32) -> (i32, i32) {
    %c0_i32 = arith.constant 0 : i32
    %c0_i32_0 = arith.constant 0 : i32
    %c0_i32_1 = arith.constant 0 : i32
    return %c0_i32, %c0_i32_0 : i32, i32
  }
  func.func @transform_12(%arg0: i32, %arg1: i32) -> (i32, i32) {
    %c0_i32 = arith.constant 0 : i32
    %c0_i32_0 = arith.constant 0 : i32
    %c0_i32_1 = arith.constant 0 : i32
    return %c0_i32, %c0_i32_0 : i32, i32
  }
  func.func @transform_13(%arg0: i32, %arg1: i32) -> (i32, i32) {
    %c0_i32 = arith.constant 0 : i32
    %c0_i32_0 = arith.constant 0 : i32
    %c0_i32_1 = arith.constant 0 : i32
    return %c0_i32, %c0_i32_0 : i32, i32
  }
  func.func @transform_14(%arg0: i32, %arg1: i32) -> (i32, i32, i32) {
    %c0_i32 = arith.constant 0 : i32
    %c0_i32_0 = arith.constant 0 : i32
    %c0_i32_1 = arith.constant 0 : i32
    return %arg0, %c0_i32, %c0_i32_0 : i32, i32, i32
  }
}

</mosaic_0001>

<bundles_post_ra>
// kernel: tpu_custom_call.1
= control target key start
LH: loop header
LB: loop body
LE: loop exit
PB: predicated region body
PF: predicated region fallthrough
CT: control target
= control target key end

     0   :  { %19 = vsyncpa [#allocation4], 0  ;;  %s6994_s0 = inlined_call_operand.vmem [shape: f32[2,64,3], index: 0, kind: input, shape index: {}]   ;;  %s6995_s1 = inlined_call_operand.vmem [shape: f32[3,64], index: 1, kind: input, shape index: {}]   ;;  %s6996_s2 = inlined_call_operand.vmem [shape: f32[1,64], index: 2, kind: input, shape index: {}]   ;;  %s6997_s3 = inlined_call_operand.vmem [shape: bf16[64,128], index: 3, kind: input, shape index: {}]   ;;  %s6998_s4 = inlined_call_operand.vmem [shape: f32[1,128], index: 4, kind: input, shape index: {}]   ;;  %s6999_s5 = inlined_call_operand.hbm [shape: bf16[128,1024], index: 5, kind: input, shape index: {}]   ;;  %s7000_s6 = inlined_call_operand.vmem [shape: f32[1,1024], index: 6, kind: input, shape index: {}]   ;;  %s7001_s7 = inlined_call_operand.vmem [shape: f32[1,1024], index: 7, kind: input, shape index: {}]   ;;  %s7002_s8 = inlined_call_operand.hbm [shape: bf16[1024,512], index: 8, kind: input, shape index: {}]   ;;  %s7003_s9 = inlined_call_operand.vmem [shape: f32[1,512], index: 9, kind: input, shape index: {}]   ;;  %s7004_s10 = inlined_call_operand.hbm [shape: bf16[512,256], index: 10, kind: input, shape index: {}]   ;;  %s7005_s11 = inlined_call_operand.vmem [shape: f32[1,256], index: 11, kind: input, shape index: {}]   ;;  %s7006_s12 = inlined_call_operand.hbm [shape: f32[256,128], index: 12, kind: input, shape index: {}]   ;;  %s7007_s13 = inlined_call_operand.vmem [shape: f32[1,128], index: 13, kind: input, shape index: {}]   ;;  %s7008_s14 = inlined_call_operand.hbm [shape: f32[2,1,128], index: 14, kind: output, shape index: {}]  }
   0x1   :  { %20 = vsyncpa [#allocation7], 0 }
   0x2   :  { %21 = vsyncpa [#allocation10], 0 }
   0x3   :  { %22 = vsyncpa [#allocation5], 0  ;;  %s6257_s29 = smov [#allocation6]   ;;  %s6139_s17 = scalar_lea.hbm %s7002_s8, 32768 }
   0x4   :  { %s54_s30 = sshll.u32 %s6257_s29, 4  ;;  %p6140_p0 = scmp.ne.s32.totalorder %s7002_s8, %s6139_s17  ;;  %s55_s30 = int_to_ptr.vmem [resolvable:$true] %s54_s30 }
   0x5   :  { %p6143_p1 = scmp.lt.u32.totalorder %s6139_s17, %s7002_s8 }
   0x7   :  { %p6145_p2 = pnand %p6143_p1, %p6140_p0 }
   0x9   :  { %6148 = shalt.err (!%p6145_p2)
}
   0xa   :  { %s6149_s22 = scalar_lea.vmem %s55_s30, 32768  ;;  %p6154_p4 = scmp.lt.s32.totalorder %s55_s30, %s55_s30 }
   0xb   :  { %p6150_p3 = scmp.ne.s32.totalorder %s55_s30, %s6149_s22  ;;  %p6155_p5 = scmp.lt.s32.totalorder %s6149_s22, %s6149_s22 }
   0xd   :  { %p6156_p6 = por %p6155_p5, %p6154_p4 }
   0xf   :  { %p6157_p7 = pnand %p6156_p6, %p6150_p3 }
  0x11   :  { %6160 = shalt.err (!%p6157_p7)
}
  0x12   :  { %s6258_s23 = smov 256   ;;  %s6259_s24 = smov 16  }
  0x13   :  { %60 = dma.hbm_to_vmem [thread:$0]  %s7002_s8, 32768, %s55_s30, [#allocation7], %s6258_s23, %s6258_s23, %s6259_s24  }
  0x14   :  { %s6260_s27 = smov [#allocation3]   ;;  %s6161_s16 = scalar_lea.hbm %s6999_s5, 8192 }
  0x15   :  { %s38_s28 = sshll.u32 %s6260_s27, 4  ;;  %p6162_p8 = scmp.ne.s32.totalorder %s6999_s5, %s6161_s16  ;;  %s39_s28 = int_to_ptr.vmem [resolvable:$true] %s38_s28 }
  0x16   :  { %p6165_p9 = scmp.lt.u32.totalorder %s6161_s16, %s6999_s5 }
  0x18   :  { %p6167_p10 = pnand %p6165_p9, %p6162_p8 }
  0x1a   :  { %6170 = shalt.err (!%p6167_p10)
}
  0x1b   :  { %s6171_s21 = scalar_lea.vmem %s39_s28, 8192  ;;  %p6176_p12 = scmp.lt.s32.totalorder %s39_s28, %s39_s28 }
  0x1c   :  { %p6172_p11 = scmp.ne.s32.totalorder %s39_s28, %s6171_s21  ;;  %p6177_p13 = scmp.lt.s32.totalorder %s6171_s21, %s6171_s21 }
  0x1e   :  { %p6178_p0 = por %p6177_p13, %p6176_p12 }
  0x20   :  { %p6179_p1 = pnand %p6178_p0, %p6172_p11 }
  0x22   :  { %6182 = shalt.err (!%p6179_p1)
}
  0x23   :  { %s6261_s8 = smov 512   ;;  %s6262_s30 = smov 32  }
  0x24   :  { %44 = dma.hbm_to_vmem [thread:$0]  %s6999_s5, 8192, %s39_s28, [#allocation4], %s6261_s8, %s6261_s8, %s6262_s30  }
  0x25   :  { %s6263_s25 = smov [#allocation8]   ;;  %s6183_s15 = scalar_lea.hbm %s7004_s10, 8192 }
  0x26   :  { %s68_s26 = sshll.u32 %s6263_s25, 4  ;;  %p6184_p2 = scmp.ne.s32.totalorder %s7004_s10, %s6183_s15  ;;  %s69_s26 = int_to_ptr.vmem [resolvable:$true] %s68_s26 }
  0x27   :  { %p6187_p3 = scmp.lt.u32.totalorder %s6183_s15, %s7004_s10 }
  0x29   :  { %p6189_p4 = pnand %p6187_p3, %p6184_p2 }
  0x2b   :  { %6192 = shalt.err (!%p6189_p4)
}
  0x2c   :  { %s6193_s20 = scalar_lea.vmem %s69_s26, 8192  ;;  %p6198_p6 = scmp.lt.s32.totalorder %s69_s26, %s69_s26 }
  0x2d   :  { %p6194_p5 = scmp.ne.s32.totalorder %s69_s26, %s6193_s20  ;;  %p6199_p7 = scmp.lt.s32.totalorder %s6193_s20, %s6193_s20 }
  0x2f   :  { %p6200_p8 = por %p6199_p7, %p6198_p6 }
  0x31   :  { %p6201_p9 = pnand %p6200_p8, %p6194_p5 }
  0x33   :  { %6204 = shalt.err (!%p6201_p9)
}
  0x34   :  { %s6264_s5 = smov 128   ;;  %s6265_s28 = smov 8  }
  0x35   :  { %74 = dma.hbm_to_vmem [thread:$0]  %s7004_s10, 8192, %s69_s26, [#allocation7], %s6264_s5, %s6264_s5, %s6265_s28  }
  0x36   :  { %s6266_s30 = smov [#allocation9]   ;;  %s6205_s27 = scalar_lea.hbm %s7006_s12, 4096 }
  0x37   :  { %s82_s22 = sshll.u32 %s6266_s30, 4  ;;  %p6206_p10 = scmp.ne.s32.totalorder %s7006_s12, %s6205_s27  ;;  %s83_s22 = int_to_ptr.vmem [resolvable:$true] %s82_s22 }
  0x38   :  { %p6209_p11 = scmp.lt.u32.totalorder %s6205_s27, %s7006_s12 }
  0x3a   :  { %p6211_p12 = pnand %p6209_p11, %p6206_p10 }
  0x3c   :  { %6214 = shalt.err (!%p6211_p12)
}
  0x3d   :  { %s6215_s18 = scalar_lea.vmem %s83_s22, 4096  ;;  %p6220_p0 = scmp.lt.s32.totalorder %s83_s22, %s83_s22 }
  0x3e   :  { %p6216_p13 = scmp.ne.s32.totalorder %s83_s22, %s6215_s18  ;;  %p6221_p1 = scmp.lt.s32.totalorder %s6215_s18, %s6215_s18 }
  0x40   :  { %p6222_p2 = por %p6221_p1, %p6220_p0 }
  0x42   :  { %p6223_p3 = pnand %p6222_p2, %p6216_p13 }
  0x44   :  { %6226 = shalt.err (!%p6223_p3)
}
  0x45   :  { %88 = dma.hbm_to_vmem [thread:$0]  %s7006_s12, 4096, %s83_s22, [#allocation10], %s6264_s5, %s6264_s5, %s6265_s28  }
  0x46   :  { %6249 = dma.done.wait [#allocation4], 8192  }
  0x47   :  { %6250 = vsyncadd [#allocation4], 4294959104 }
  0x48   :  { %6251 = dma.done.wait [#allocation7], 40960  }
  0x49   :  { %6252 = vsyncadd [#allocation7], 4294926336 }
  0x4a   :  { %6253 = dma.done.wait [#allocation10], 4096  }
  0x4b   :  { %6254 = vsyncadd [#allocation10], 4294963200  ;;  %v6267_v0 = vmov 1   ;;  %v6268_v1 = vmov 0   ;;  %v104_v2 = vld [vmem:[%s6994_s0] sm:$0xff]  ;;  %v105_v3 = vld [vmem:[%s6994_s0 + $0x8] sm:$0xff]  ;;  %v201_v23 = vlaneseq }
  0x4c   :  { %5549 = vset.pattern.permute.xlu1 %v6267_v0  ;;  %5548 = vset.pattern.permute.xlu0 %v6268_v1  ;;  %v6269_v4 = vmov 2   ;;  %v107_v5 = vld [vmem:[%s6994_s0 + $0x18] sm:$0xff]  ;;  %v106_v6 = vld [vmem:[%s6994_s0 + $0x10] sm:$0xff]  ;;  %v108_v7 = vld [vmem:[%s6994_s0 + $0x20] sm:$0xff]  ;;  %vm635_vm0 = vcmask 523264   ;;  %vm2046_vm1 = vcmask 1041409  }
  0x4d   :  { %1365 = vmatprep.mubr.bf16.mxu1 %v6268_v1  ;;  %222 = vperm.xlu1 %5549, %v104_v2   ;;  %v109_v8 = vld [vmem:[%s6994_s0 + $0x28] sm:$0xff]  ;;  %v110_v9 = vld [vmem:[%s6994_s0 + $0x30] sm:$0xff]  ;;  %v111_v10 = vld [vmem:[%s6994_s0 + $0x38] sm:$0xff]  ;;  %v6486_v25 = vshrl.u32 %v201_v23, 7  ;;  %vm2048_vm2 = vcmask 1043459   ;;  %vm2050_vm3 = vcmask 1045509  }
  0x4e   :  { %123 = vperm.xlu0 %5548, %v104_v2   ;;  %v113_v11 = vld [vmem:[%s6994_s0 + $0x48] sm:$0xff]  ;;  %v5575_v12 = vld [vmem:[%s6997_s3] sm:$0xff]   ;;  %v114_v14 = vld [vmem:[%s6994_s0 + $0x50] sm:$0xff]  ;;  %vm2052_vm4 = vcmask 1047559   ;;  %s6272_s23 = smov [#allocation11]  }
  0x4f   :  { %5425 = vmatprep.subr.bf16.mxu0 %v5575_v12  ;;  %v5576_v13 = vld [vmem:[%s6997_s3 + $0x8] sm:$0xff]   ;;  %v5577_v15 = vld [vmem:[%s6997_s3 + $0x10] sm:$0xff]   ;;  %v116_v16 = vld [vmem:[%s6994_s0 + $0x60] sm:$0xff]  ;;  %v6489_v27 = vsub.s32 2, %v6486_v25  ;;  %v6492_v29 = vsub.s32 1, %v6486_v25  ;;  %v6495_v30 = vsub.s32 0, %v6486_v25 }
  0x50   :  { %5426 = vmatpush3.bf16.msra.mxu0 %v5575_v12  ;;  %v5578_v17 = vld [vmem:[%s6997_s3 + $0x18] sm:$0xff]   ;;  %v112_v18 = vld [vmem:[%s6994_s0 + $0x40] sm:$0xff]  ;;  %v117_v19 = vld [vmem:[%s6994_s0 + $0x68] sm:$0xff]  ;;  %s4963_s25 = sshll.u32 %s6272_s23, 4  ;;  %s4964_s25 = int_to_ptr.vmem [resolvable:$true] %s4963_s25 }
  0x51   :  { %226 = vperm.xlu1 %5549, %v105_v3   ;;  %5427 = vmatprep.subr.bf16.mxu0 %v5576_v13  ;;  %v118_v20 = vld [vmem:[%s6994_s0 + $0x70] sm:$0xff]  ;;  %v115_v21 = vld [vmem:[%s6994_s0 + $0x58] sm:$0xff]  ;;  %v120_v32 = vld [vmem:[%s6995_s1] sm:$0x7]  ;;  %s6227_s27 = scalar_lea.vmem %s4964_s25, 32  ;;  %p6232_p5 = scmp.lt.s32.totalorder %s4964_s25, %s4964_s25 }
  0x52   :  { %5553 = vset.pattern.permute.xlu0 %v6269_v4  ;;  %v119_v22 = vld [vmem:[%s6994_s0 + $0x78] sm:$0xff]  ;;  %v6501_v33 = vrot.slane %v120_v32, %v6489_v27  ;;  %v6504_v34 = vrot.slane %v120_v32, %v6492_v29  ;;  %v6507_v35 = vrot.slane %v120_v32, %v6495_v30  ;;  %v6515_v42 = vld [vmem:[%s6996_s2] ss:$0 sm:$0xff]  ;;  %p6228_p4 = scmp.ne.s32.totalorder %s4964_s25, %s6227_s27  ;;  %p6233_p6 = scmp.lt.s32.totalorder %s6227_s27, %s6227_s27 }
  0x53   :  { %326 = vperm.xlu0 %5553, %v105_v3  }
  0x54   :  { %5428 = vmatpush3.bf16.msra.mxu0 %v5576_v13  ;;  %p6234_p7 = por %p6233_p6, %p6232_p5 }
  0x55   :  { %5550 = vset.pattern.permute.xlu1 %v6268_v1  ;;  %5429 = vmatprep.subr.bf16.mxu0 %v5577_v15 }
  0x56   :  { %138 = vperm.xlu1 %5550, %v107_v5   ;;  %p6235_p8 = pnand %p6234_p7, %p6228_p4 }
  0x57   :  { %5554 = vset.pattern.permute.xlu0 %v6268_v1 }
  0x58   :  { %128 = vperm.xlu0 %5554, %v105_v3   ;;  %5430 = vmatpush3.bf16.msra.mxu0 %v5577_v15 }
  0x59   :  { %5431 = vmatprep.subr.bf16.mxu0 %v5578_v17 }
  0x5a   :  { %5551 = vset.pattern.permute.xlu1 %v6267_v0 }
  0x5b   :  { %234 = vperm.xlu1 %5551, %v107_v5  }
  0x5c   :  { %133 = vperm.xlu0 %5554, %v106_v6   ;;  %5432 = vmatpush3.bf16.msra.mxu0 %v5578_v17 }
  0x5f   :  { %5552 = vset.pattern.permute.xlu1 %v6269_v4 }
  0x60   :  { %143 = vperm.xlu0 %5554, %v108_v7   ;;  %322 = vperm.xlu1 %5552, %v104_v2  }
  0x64   :  { %5555 = vset.pattern.permute.xlu0 %v6267_v0  ;;  %330 = vperm.xlu1 %5552, %v106_v6  }
  0x65   :  { %230 = vperm.xlu0 %5555, %v106_v6  }
  0x68   :  { %334 = vperm.xlu1 %5552, %v107_v5  }
  0x69   :  { %242 = vperm.xlu0 %5555, %v109_v8  }
  0x6c   :  { %5556 = vset.pattern.permute.xlu1 %v6268_v1 }
  0x6d   :  { %246 = vperm.xlu0 %5555, %v110_v9   ;;  %148 = vperm.xlu1 %5556, %v109_v8  }
  0x71   :  { %5560 = vset.pattern.permute.xlu0 %v6269_v4  ;;  %5557 = vset.pattern.permute.xlu1 %v6267_v0 }
  0x72   :  { %338 = vperm.xlu0 %5560, %v108_v7   ;;  %238 = vperm.xlu1 %5557, %v108_v7  }
  0x76   :  { %350 = vperm.xlu0 %5560, %v111_v10   ;;  %5558 = vset.pattern.permute.xlu1 %v6268_v1 }
  0x77   :  { %153 = vperm.xlu1 %5558, %v110_v9  }
  0x7a   :  { %358 = vperm.xlu0 %5560, %v113_v11  }
  0x7b   :  { %158 = vperm.xlu1 %5558, %v111_v10  }
  0x7e   :  { %5567 = vset.pattern.permute.xlu0 %v6268_v1 }
  0x7f   :  { %168 = vperm.xlu0 %5567, %v113_v11   ;;  %5559 = vset.pattern.permute.xlu1 %v6267_v0 }
  0x80   :  { %250 = vperm.xlu1 %5559, %v111_v10  }
  0x83   :  { %173 = vperm.xlu0 %5567, %v114_v14  }
  0x84   :  { %5561 = vset.pattern.permute.xlu1 %v6269_v4 }
  0x85   :  { %342 = vperm.xlu1 %5561, %v109_v8  }
  0x87   :  { %183 = vperm.xlu0 %5567, %v116_v16  }
  0x89   :  { %346 = vperm.xlu1 %5561, %v110_v9  }
  0x8b   :  { %5568 = vset.pattern.permute.xlu0 %v6267_v0 }
  0x8c   :  { %262 = vperm.xlu0 %5568, %v114_v14  }
  0x8d   :  { %5562 = vset.pattern.permute.xlu1 %v6268_v1 }
  0x8e   :  { %163 = vperm.xlu1 %5562, %v112_v18  }
  0x90   :  { %274 = vperm.xlu0 %5568, %v117_v19  }
  0x92   :  { %5563 = vset.pattern.permute.xlu1 %v6267_v0 }
  0x93   :  { %254 = vperm.xlu1 %5563, %v112_v18  }
  0x94   :  { %278 = vperm.xlu0 %5568, %v118_v20  }
  0x97   :  { %258 = vperm.xlu1 %5563, %v113_v11  }
  0x98   :  { %5573 = vset.pattern.permute.xlu0 %v6269_v4 }
  0x99   :  { %370 = vperm.xlu0 %5573, %v116_v16  }
  0x9b   :  { %5564 = vset.pattern.permute.xlu1 %v6268_v1 }
  0x9c   :  { %178 = vperm.xlu1 %5564, %v115_v21  }
  0x9d   :  { %382 = vperm.xlu0 %5573, %v119_v22  }
  0xa0   :  { %5565 = vset.pattern.permute.xlu1 %v6267_v0 }
  0xa1   :  { %266 = vperm.xlu1 %5565, %v115_v21  }
  0xa5   :  { %5566 = vset.pattern.permute.xlu1 %v6269_v4 }
  0xa6   :  { %354 = vperm.xlu1 %5566, %v112_v18  }
  0xaa   :  { %362 = vperm.xlu1 %5566, %v114_v14  }
  0xae   :  { %366 = vperm.xlu1 %5566, %v115_v21  }
  0xb2   :  { %5569 = vset.pattern.permute.xlu1 %v6268_v1 }
  0xb3   :  { %188 = vperm.xlu1 %5569, %v117_v19  }
  0xb7   :  { %5570 = vset.pattern.permute.xlu1 %v6267_v0 }
  0xb8   :  { %270 = vperm.xlu1 %5570, %v116_v16  }
  0xbc   :  { %5571 = vset.pattern.permute.xlu1 %v6268_v1 }
  0xbd   :  { %193 = vperm.xlu1 %5571, %v118_v20  }
  0xc1   :  { %198 = vperm.xlu1 %5571, %v119_v22  }
  0xc5   :  { %5572 = vset.pattern.permute.xlu1 %v6267_v0 }
  0xc6   :  { %282 = vperm.xlu1 %5572, %v119_v22  }
  0xca   :  { %5574 = vset.pattern.permute.xlu1 %v6269_v4 }
  0xcb   :  { %374 = vperm.xlu1 %5574, %v117_v19  }
  0xcc   :  { %v223_v24 = vpop.permute.xlu1 %222 }
  0xcd   :  { %v124_v26 = vpop.permute.xlu0 %123  ;;  %v289_v46 = vmul.f32 %v6504_v34, %v223_v24 }
  0xce   :  { %v205_v47 = vmul.f32 %v6507_v35, %v124_v26 }
  0xcf   :  { %378 = vperm.xlu1 %5574, %v118_v20  }
  0xd0   :  { %v227_v28 = vpop.permute.xlu1 %226  ;;  %v305_v52 = vadd.f32 %v289_v46, %v205_v47 }
  0xd1   :  { %v290_v38 = vmul.f32 %v6504_v34, %v227_v28 }
  0xd2   :  { %v327_v31 = vpop.permute.xlu0 %326 }
  0xd3   :  { %v390_v39 = vmul.f32 %v6501_v33, %v327_v31 }
  0xd5   :  { %v139_v36 = vpop.permute.xlu1 %138 }
  0xd6   :  { %v208_v63 = vmul.f32 %v6507_v35, %v139_v36 }
  0xd7   :  { %v129_v37 = vpop.permute.xlu0 %128 }
  0xd8   :  { %v206_v40 = vmul.f32 %v6507_v35, %v129_v37 }
  0xda   :  { %v306_v41 = vadd.f32 %v290_v38, %v206_v40  ;;  %v235_v43 = vpop.permute.xlu1 %234 }
  0xdb   :  { %v134_v44 = vpop.permute.xlu0 %133  ;;  %v292_v57 = vmul.f32 %v6504_v34, %v235_v43 }
  0xdc   :  { %v406_v45 = vadd.f32 %v390_v39, %v306_v41  ;;  %v207_v55 = vmul.f32 %v6507_v35, %v134_v44 }
  0xdd   :  { %v308_v5 = vadd.f32 %v292_v57, %v208_v63 }
  0xde   :  { %v429_v48 = vadd.f32 %v6515_v42, %v406_v45 }
  0xdf   :  { %v144_v49 = vpop.permute.xlu0 %143  ;;  %v323_v50 = vpop.permute.xlu1 %322 }
  0xe0   :  { %v461_v51 = vmul.f32 0.044715, %v429_v48  ;;  %v389_v53 = vmul.f32 %v6501_v33, %v323_v50  ;;  %v209_v28 = vmul.f32 %v6507_v35, %v144_v49 }
  0xe2   :  { %v477_v54 = vmul.f32 %v461_v51, %v429_v48  ;;  %v405_v56 = vadd.f32 %v389_v53, %v305_v52  ;;  %v445_v53 = vmul.f32 0.5, %v429_v48 }
  0xe3   :  { %v331_v58 = vpop.permute.xlu1 %330 }
  0xe4   :  { %v231_v59 = vpop.permute.xlu0 %230  ;;  %v493_v60 = vmul.f32 %v477_v54, %v429_v48  ;;  %v428_v61 = vadd.f32 %v6515_v42, %v405_v56  ;;  %v391_v2 = vmul.f32 %v6501_v33, %v331_v58 }
  0xe5   :  { %v291_v62 = vmul.f32 %v6504_v34, %v231_v59 }
  0xe6   :  { %v509_v0 = vadd.f32 %v493_v60, %v429_v48  ;;  %v460_v4 = vmul.f32 0.044715, %v428_v61  ;;  %v444_v52 = vmul.f32 0.5, %v428_v61 }
  0xe7   :  { %v307_v3 = vadd.f32 %v291_v62, %v207_v55  ;;  %v335_v6 = vpop.permute.xlu1 %334 }
  0xe8   :  { %v243_v7 = vpop.permute.xlu0 %242  ;;  %v392_v9 = vmul.f32 %v6501_v33, %v335_v6  ;;  %v476_v10 = vmul.f32 %v460_v4, %v428_v61  ;;  %v525_v11 = vmul.f32 0.7978846, %v509_v0 }
  0xe9   :  { %v407_v8 = vadd.f32 %v391_v2, %v307_v3  ;;  %v294_v59 = vmul.f32 %v6504_v34, %v243_v7 }
  0xea   :  { %v408_v13 = vadd.f32 %v392_v9, %v308_v5  ;;  %v492_v14 = vmul.f32 %v476_v10, %v428_v61  ;;  %6059 = vtanh.f32 %v525_v11 }
  0xeb   :  { %v430_v12 = vadd.f32 %v6515_v42, %v407_v8 }
  0xec   :  { %v247_v15 = vpop.permute.xlu0 %246  ;;  %v431_v17 = vadd.f32 %v6515_v42, %v408_v13  ;;  %v149_v18 = vpop.permute.xlu1 %148  ;;  %v508_v19 = vadd.f32 %v492_v14, %v428_v61 }
  0xed   :  { %v462_v16 = vmul.f32 0.044715, %v430_v12  ;;  %v210_v0 = vmul.f32 %v6507_v35, %v149_v18  ;;  %v446_v8 = vmul.f32 0.5, %v430_v12  ;;  %v295_v11 = vmul.f32 %v6504_v34, %v247_v15 }
  0xee   :  { %v463_v21 = vmul.f32 0.044715, %v431_v17  ;;  %v524_v22 = vmul.f32 0.7978846, %v508_v19  ;;  %v447_v7 = vmul.f32 0.5, %v431_v17 }
  0xef   :  { %v478_v20 = vmul.f32 %v462_v16, %v430_v12  ;;  %v310_v10 = vadd.f32 %v294_v59, %v210_v0 }
  0xf0   :  { %v479_v23 = vmul.f32 %v463_v21, %v431_v17  ;;  %6061 = vtanh.f32 %v524_v22 }
  0xf1   :  { %v339_v24 = vpop.permute.xlu0 %338  ;;  %v494_v26 = vmul.f32 %v478_v20, %v430_v12  ;;  %v239_v31 = vpop.permute.xlu1 %238 }
  0xf2   :  { %v495_v32 = vmul.f32 %v479_v23, %v431_v17  ;;  %v293_v36 = vmul.f32 %v6504_v34, %v239_v31  ;;  %v393_v37 = vmul.f32 %v6501_v33, %v339_v24 }
  0xf3   :  { %v510_v38 = vadd.f32 %v494_v26, %v430_v12 }
  0xf4   :  { %v309_v39 = vadd.f32 %v293_v36, %v209_v28  ;;  %v511_v40 = vadd.f32 %v495_v32, %v431_v17  ;;  %v6060_v43 = vpop.eup %6059 }
  0xf5   :  { %v526_v41 = vmul.f32 0.7978846, %v510_v38  ;;  %v557_v49 = vadd.f32 1.0, %v6060_v43  ;;  %v351_v58 = vpop.permute.xlu0 %350 }
  0xf6   :  { %v409_v44 = vadd.f32 %v393_v37, %v309_v39  ;;  %v154_v45 = vpop.permute.xlu1 %153  ;;  %v527_v46 = vmul.f32 0.7978846, %v511_v40  ;;  %v396_v48 = vmul.f32 %v6501_v33, %v351_v58 }
  0xf7   :  { %6063 = vtanh.f32 %v526_v41  ;;  %v573_v57 = vmul.f32 %v557_v49, %v445_v53  ;;  %v211_v13 = vmul.f32 %v6507_v35, %v154_v45 }
  0xf8   :  { %6065 = vtanh.f32 %v527_v46  ;;  %v6534_v47 = vadd.f32 %v6515_v42, %v409_v44 }
  0xf9   :  { %v311_v26 = vadd.f32 %v295_v11, %v211_v13  ;;  %v359_v41 = vpop.permute.xlu0 %358 }
  0xfa   :  { %v6062_v50 = vpop.eup %6061  ;;  %v159_v51 = vpop.permute.xlu1 %158  ;;  %v464_v55 = vmul.f32 0.044715, %v6534_v47  ;;  %v398_v0 = vmul.f32 %v6501_v33, %v359_v41  ;;  %v448_v11 = vmul.f32 0.5, %v6534_v47 }
  0xfb   :  { %v556_v54 = vadd.f32 1.0, %v6062_v50  ;;  %v212_v2 = vmul.f32 %v6507_v35, %v159_v51 }
  0xfc   :  { %v480_v61 = vmul.f32 %v464_v55, %v6534_v47 }
  0xfd   :  { %v572_v56 = vmul.f32 %v556_v54, %v444_v52 }
  0xfe   :  { %v496_v18 = vmul.f32 %v480_v61, %v6534_v47  ;;  %v169_v52 = vpop.permute.xlu0 %168 }
  0xff   :  { %v251_v60 = vpop.permute.xlu1 %250  ;;  %v588_v62 = vpack.c.bf16 %v573_v57, %v572_v56  ;;  %v214_v57 = vmul.f32 %v6507_v35, %v169_v52 }
 0x100   :  { %v296_v3 = vmul.f32 %v6504_v34, %v251_v60  ;;  %v512_v31 = vadd.f32 %v496_v18, %v6534_v47 }
 0x101   :  { %v6064_v63 = vpop.eup %6063  ;;  %5433 = vmatprep.mubr.msk.bf16.mxu0 %vm635_vm0, %v588_v62 }
 0x102   :  { %v558_v4 = vadd.f32 1.0, %v6064_v63  ;;  %v6066_v5 = vpop.eup %6065  ;;  %v312_v6 = vadd.f32 %v296_v3, %v212_v2  ;;  %v528_v44 = vmul.f32 0.7978846, %v512_v31  ;;  %v174_v58 = vpop.permute.xlu0 %173 }
 0x103   :  { %v559_v9 = vadd.f32 1.0, %v6066_v5 }
 0x104   :  { %v412_v14 = vadd.f32 %v396_v48, %v312_v6  ;;  %v343_v16 = vpop.permute.xlu1 %342  ;;  %v574_v20 = vmul.f32 %v558_v4, %v446_v8  ;;  %6067 = vtanh.f32 %v528_v44 }
 0x105   :  { %v394_v19 = vmul.f32 %v6501_v33, %v343_v16  ;;  %v575_v21 = vmul.f32 %v559_v9, %v447_v7 }
 0x106   :  { %v6549_v22 = vadd.f32 %v6515_v42, %v412_v14  ;;  %v6563_v4 = vpop.permute.xlu0 %183 }
 0x107   :  { %v410_v23 = vadd.f32 %v394_v19, %v310_v10  ;;  %v589_v12 = vpack.c.bf16 %v575_v21, %v574_v20 }
 0x108   :  { %v467_v17 = vmul.f32 0.044715, %v6549_v22  ;;  %v347_v24 = vpop.permute.xlu1 %346 }
 0x109   :  { %v433_v15 = vadd.f32 %v6515_v42, %v410_v23  ;;  %v395_v28 = vmul.f32 %v6501_v33, %v347_v24  ;;  %5434 = vmatmul.mubr.msk.bf16.vlgmr.msra.gmra.mrb[0].mxu0 %vm635_vm0, %v589_v12  ;;  %v215_v24 = vmul.f32 %v6507_v35, %v174_v58 }
 0x10a   :  { %v483_v32 = vmul.f32 %v467_v17, %v6549_v22 }
 0x10b   :  { %v465_v36 = vmul.f32 0.044715, %v433_v15  ;;  %v411_v37 = vadd.f32 %v395_v28, %v311_v26  ;;  %v449_v13 = vmul.f32 0.5, %v433_v15  ;;  %v263_v18 = vpop.permute.xlu0 %262  ;;  %v451_v26 = vmul.f32 0.5, %v6549_v22 }
 0x10c   :  { %v499_v38 = vmul.f32 %v483_v32, %v6549_v22  ;;  %v299_v47 = vmul.f32 %v6504_v34, %v263_v18 }
 0x10d   :  { %v481_v39 = vmul.f32 %v465_v36, %v433_v15  ;;  %v434_v40 = vadd.f32 %v6515_v42, %v411_v37  ;;  %v164_v43 = vpop.permute.xlu1 %163 }
 0x10e   :  { %v515_v45 = vadd.f32 %v499_v38, %v6549_v22  ;;  %v6068_v3 = vpop.eup %6067  ;;  %v213_v17 = vmul.f32 %v6507_v35, %v164_v43  ;;  %v315_v44 = vadd.f32 %v299_v47, %v215_v24 }
 0x10f   :  { %v497_v46 = vmul.f32 %v481_v39, %v433_v15  ;;  %v466_v49 = vmul.f32 0.044715, %v434_v40  ;;  %v560_v8 = vadd.f32 1.0, %v6068_v3 }
 0x110   :  { %v531_v50 = vmul.f32 0.7978846, %v515_v45 }
 0x111   :  { %v482_v51 = vmul.f32 %v466_v49, %v434_v40  ;;  %v513_v53 = vadd.f32 %v497_v46, %v433_v15  ;;  %v576_v20 = vmul.f32 %v560_v8, %v448_v11  ;;  %v450_v15 = vmul.f32 0.5, %v434_v40  ;;  %v275_v49 = vpop.permute.xlu0 %274 }
 0x112   :  { %v255_v54 = vpop.permute.xlu1 %254  ;;  %6069 = vtanh.f32 %v531_v50 }
 0x113   :  { %v498_v55 = vmul.f32 %v482_v51, %v434_v40  ;;  %v529_v56 = vmul.f32 0.7978846, %v513_v53  ;;  %v297_v16 = vmul.f32 %v6504_v34, %v255_v54 }
 0x115   :  { %6071 = vtanh.f32 %v529_v56  ;;  %v514_v59 = vadd.f32 %v498_v55, %v434_v40  ;;  %v313_v32 = vadd.f32 %v297_v16, %v213_v17 }
 0x116   :  { %v259_v60 = vpop.permute.xlu1 %258 }
 0x117   :  { %v298_v62 = vmul.f32 %v6504_v34, %v259_v60  ;;  %v530_v63 = vmul.f32 0.7978846, %v514_v59 }
 0x119   :  { %v314_v2 = vadd.f32 %v298_v62, %v214_v57  ;;  %6073 = vtanh.f32 %v530_v63  ;;  %v279_v62 = vpop.permute.xlu0 %278 }
 0x11b   :  { %v414_v48 = vadd.f32 %v398_v0, %v314_v2  ;;  %v179_v61 = vpop.permute.xlu1 %178 }
 0x11c   :  { %v6070_v6 = vpop.eup %6069  ;;  %v216_v52 = vmul.f32 %v6507_v35, %v179_v61 }
 0x11d   :  { %v6566_v5 = vadd.f32 %v6515_v42, %v414_v48  ;;  %v563_v23 = vadd.f32 1.0, %v6070_v6 }
 0x11f   :  { %v6072_v7 = vpop.eup %6071  ;;  %v469_v9 = vmul.f32 0.044715, %v6566_v5  ;;  %v579_v39 = vmul.f32 %v563_v23, %v451_v26 }
 0x120   :  { %v267_v10 = vpop.permute.xlu1 %266  ;;  %v561_v14 = vadd.f32 1.0, %v6072_v7 }
 0x121   :  { %v485_v19 = vmul.f32 %v469_v9, %v6566_v5  ;;  %v300_v22 = vmul.f32 %v6504_v34, %v267_v10  ;;  %v371_v10 = vpop.permute.xlu0 %370 }
 0x122   :  { %v577_v21 = vmul.f32 %v561_v14, %v449_v13  ;;  %v217_v14 = vmul.f32 %v6507_v35, %v6563_v4 }
 0x123   :  { %v6074_v12 = vpop.eup %6073  ;;  %v501_v41 = vmul.f32 %v485_v19, %v6566_v5  ;;  %v316_v55 = vadd.f32 %v300_v22, %v216_v52 }
 0x124   :  { %v590_v28 = vpack.c.bf16 %v577_v21, %v576_v20  ;;  %v562_v31 = vadd.f32 1.0, %v6074_v12  ;;  %v401_v20 = vmul.f32 %v6501_v33, %v371_v10 }
 0x125   :  { %v355_v36 = vpop.permute.xlu1 %354  ;;  %v517_v51 = vadd.f32 %v501_v41, %v6566_v5 }
 0x126   :  { %v397_v37 = vmul.f32 %v6501_v33, %v355_v36  ;;  %5437 = vmatprep.mubr.msk.bf16.mxu0 %vm635_vm0, %v590_v28  ;;  %v578_v38 = vmul.f32 %v562_v31, %v450_v15  ;;  %v453_v36 = vmul.f32 0.5, %v6566_v5 }
 0x127   :  { %v533_v60 = vmul.f32 0.7978846, %v517_v51 }
 0x128   :  { %v413_v43 = vadd.f32 %v397_v37, %v313_v32  ;;  %v591_v45 = vpack.c.bf16 %v579_v39, %v578_v38 }
 0x129   :  { %v363_v46 = vpop.permute.xlu1 %362  ;;  %6075 = vtanh.f32 %v533_v60  ;;  %v303_v60 = vmul.f32 %v6504_v34, %v279_v62 }
 0x12a   :  { %v436_v40 = vadd.f32 %v6515_v42, %v413_v43  ;;  %v399_v50 = vmul.f32 %v6501_v33, %v363_v46  ;;  %5438 = vmatmul.mubr.msk.bf16.gmra.mrb[4].mxu0 %vm635_vm0, %v591_v45  ;;  %v383_v43 = vpop.permute.xlu0 %382  ;;  %v302_v45 = vmul.f32 %v6504_v34, %v275_v49 }
 0x12c   :  { %v468_v53 = vmul.f32 0.044715, %v436_v40  ;;  %v415_v54 = vadd.f32 %v399_v50, %v315_v44  ;;  %v452_v32 = vmul.f32 0.5, %v436_v40 }
 0x12d   :  { %v367_v56 = vpop.permute.xlu1 %366 }
 0x12e   :  { %v484_v57 = vmul.f32 %v468_v53, %v436_v40  ;;  %v438_v58 = vadd.f32 %v6515_v42, %v415_v54  ;;  %v400_v59 = vmul.f32 %v6501_v33, %v367_v56 }
 0x130   :  { %v500_v63 = vmul.f32 %v484_v57, %v436_v40  ;;  %v470_v0 = vmul.f32 0.044715, %v438_v58  ;;  %v416_v2 = vadd.f32 %v400_v59, %v316_v55  ;;  %v454_v56 = vmul.f32 0.5, %v438_v58 }
 0x132   :  { %v486_v3 = vmul.f32 %v470_v0, %v438_v58  ;;  %v439_v48 = vadd.f32 %v6515_v42, %v416_v2  ;;  %v189_v6 = vpop.permute.xlu1 %188  ;;  %v516_v8 = vadd.f32 %v500_v63, %v436_v40  ;;  %v404_v40 = vmul.f32 %v6501_v33, %v383_v43 }
 0x133   :  { %v6076_v17 = vpop.eup %6075  ;;  %v218_v50 = vmul.f32 %v6507_v35, %v189_v6 }
 0x134   :  { %v502_v61 = vmul.f32 %v486_v3, %v438_v58  ;;  %v471_v7 = vmul.f32 0.044715, %v439_v48  ;;  %v532_v9 = vmul.f32 0.7978846, %v516_v8  ;;  %v565_v15 = vadd.f32 1.0, %v6076_v17 }
 0x135   :  { %v455_v57 = vmul.f32 0.5, %v439_v48  ;;  %v318_v59 = vadd.f32 %v302_v45, %v218_v50  ;;  %v925_v45 = vld [vmem:[#allocation3 + $0x80] sm:$0xff] }
 0x136   :  { %v487_v11 = vmul.f32 %v471_v7, %v439_v48  ;;  %6077 = vtanh.f32 %v532_v9  ;;  %v518_v13 = vadd.f32 %v502_v61, %v438_v58  ;;  %v581_v41 = vmul.f32 %v565_v15, %v453_v36 }
 0x137   :  { %v271_v16 = vpop.permute.xlu1 %270 }
 0x138   :  { %v503_v18 = vmul.f32 %v487_v11, %v439_v48  ;;  %v301_v19 = vmul.f32 %v6504_v34, %v271_v16  ;;  %v534_v21 = vmul.f32 0.7978846, %v518_v13 }
 0x13a   :  { %v317_v23 = vadd.f32 %v301_v19, %v217_v14  ;;  %v519_v12 = vadd.f32 %v503_v18, %v439_v48  ;;  %6079 = vtanh.f32 %v534_v21 }
 0x13c   :  { %v417_v24 = vadd.f32 %v401_v20, %v317_v23  ;;  %v194_v26 = vpop.permute.xlu1 %193  ;;  %v535_v28 = vmul.f32 0.7978846, %v519_v12 }
 0x13d   :  { %v219_v63 = vmul.f32 %v6507_v35, %v194_v26 }
 0x13e   :  { %6081 = vtanh.f32 %v535_v28  ;;  %v6593_v47 = vadd.f32 %v6515_v42, %v417_v24 }
 0x13f   :  { %v319_v11 = vadd.f32 %v303_v60, %v219_v63 }
 0x140   :  { %v6078_v4 = vpop.eup %6077  ;;  %v199_v31 = vpop.permute.xlu1 %198  ;;  %v472_v38 = vmul.f32 0.044715, %v6593_v47 }
 0x141   :  { %v564_v37 = vadd.f32 1.0, %v6078_v4  ;;  %v220_v51 = vmul.f32 %v6507_v35, %v199_v31  ;;  %v909_v31 = vld [vmem:[#allocation3] sm:$0xff] }
 0x142   :  { %v488_v5 = vmul.f32 %v472_v38, %v6593_v47 }
 0x143   :  { %v580_v39 = vmul.f32 %v564_v37, %v452_v32  ;;  %v913_v32 = vld [vmem:[#allocation3 + $0x20] sm:$0xff] }
 0x144   :  { %v6080_v44 = vpop.eup %6079  ;;  %v504_v3 = vmul.f32 %v488_v5, %v6593_v47  ;;  %v4992_v36 = vcombine.high %v909_v31, %v913_v32  ;;  %v4991_v38 = vcombine.low %v909_v31, %v913_v32  ;;  %v456_v5 = vmul.f32 0.5, %v6593_v47  ;;  %v6644_v31 = vld [vmem:[%s6998_s4] ss:$0 sm:$0xff] }
 0x145   :  { %v283_v22 = vpop.permute.xlu1 %282  ;;  %v592_v46 = vpack.c.bf16 %v581_v41, %v580_v39  ;;  %v566_v53 = vadd.f32 1.0, %v6080_v44  ;;  %v921_v39 = vld [vmem:[#allocation3 + $0x60] sm:$0xff] }
 0x146   :  { %v304_v52 = vmul.f32 %v6504_v34, %v283_v22  ;;  %v520_v62 = vadd.f32 %v504_v3, %v6593_v47  ;;  %1293 = vmatprep.subr.bf16.mxu0 %v4992_v36  ;;  %5481 = vmatprep.subr.bf16.mxu1 %v4992_v36  ;;  %v929_v22 = vld [vmem:[#allocation3 + $0xa0] sm:$0xff] }
 0x147   :  { %5441 = vmatprep.mubr.msk.bf16.mxu0 %vm635_vm0, %v592_v46  ;;  %v582_v8 = vmul.f32 %v566_v53, %v454_v56  ;;  %1294 = vmatpush1.bf16.msra.mxu0 %v4991_v38  ;;  %v937_v56 = vld [vmem:[#allocation3 + $0xe0] sm:$0xff] }
 0x148   :  { %v6082_v54 = vpop.eup %6081  ;;  %v320_v55 = vadd.f32 %v304_v52, %v220_v51  ;;  %v536_v21 = vmul.f32 0.7978846, %v520_v62  ;;  %5489 = vmatpush1.bf16.msra.mxu1 %v4991_v38  ;;  %v5008_v51 = vcombine.high %v925_v45, %v929_v22  ;;  %v941_v47 = vld [vmem:[#allocation3 + $0x100] sm:$0xff] }
 0x149   :  { %v567_v49 = vadd.f32 1.0, %v6082_v54  ;;  %v957_v62 = vld [vmem:[#allocation3 + $0x180] sm:$0xff] }
 0x14a   :  { %v420_v0 = vadd.f32 %v404_v40, %v320_v55  ;;  %v375_v2 = vpop.permute.xlu1 %374  ;;  %6083 = vtanh.f32 %v536_v21  ;;  %v5007_v40 = vcombine.low %v925_v45, %v929_v22  ;;  %v933_v55 = vld [vmem:[#allocation3 + $0xc0] sm:$0xff] }
 0x14b   :  { %v402_v6 = vmul.f32 %v6501_v33, %v375_v2  ;;  %v583_v61 = vmul.f32 %v567_v49, %v455_v57  ;;  %v5016_v60 = vcombine.high %v933_v55, %v937_v56 }
 0x14c   :  { %v6609_v7 = vadd.f32 %v6515_v42, %v420_v0  ;;  %v5015_v0 = vcombine.low %v933_v55, %v937_v56 }
 0x14d   :  { %v418_v9 = vadd.f32 %v402_v6, %v318_v59  ;;  %v593_v58 = vpack.c.bf16 %v583_v61, %v582_v8  ;;  %v945_v61 = vld [vmem:[#allocation3 + $0x120] sm:$0xff] }
 0x14e   :  { %v475_v48 = vmul.f32 0.044715, %v6609_v7  ;;  %v379_v10 = vpop.permute.xlu1 %378  ;;  %v459_v6 = vmul.f32 0.5, %v6609_v7 }
 0x14f   :  { %v441_v34 = vadd.f32 %v6515_v42, %v418_v9  ;;  %v403_v35 = vmul.f32 %v6501_v33, %v379_v10  ;;  %5442 = vmatmul.mubr.msk.bf16.gmra.mrb[8].mxu0 %vm635_vm0, %v593_v58  ;;  %v5024_v10 = vcombine.high %v941_v47, %v945_v61 }
 0x150   :  { %v491_v13 = vmul.f32 %v475_v48, %v6609_v7  ;;  %v5023_v48 = vcombine.low %v941_v47, %v945_v61 }
 0x151   :  { %v473_v14 = vmul.f32 0.044715, %v441_v34  ;;  %v419_v16 = vadd.f32 %v403_v35, %v319_v11  ;;  %v457_v53 = vmul.f32 0.5, %v441_v34  ;;  %v949_v11 = vld [vmem:[#allocation3 + $0x140] sm:$0xff] }
 0x152   :  { %v507_v18 = vmul.f32 %v491_v13, %v6609_v7  ;;  %v961_v13 = vld [vmem:[#allocation3 + $0x1a0] sm:$0xff] }
 0x153   :  { %v489_v19 = vmul.f32 %v473_v14, %v441_v34  ;;  %v442_v20 = vadd.f32 %v6515_v42, %v419_v16  ;;  %v917_v42 = vld [vmem:[#allocation3 + $0x40] sm:$0xff]  ;;  %v5040_v16 = vcombine.high %v957_v62, %v961_v13 }
 0x154   :  { %v523_v23 = vadd.f32 %v507_v18, %v6609_v7  ;;  %v5000_v41 = vcombine.high %v917_v42, %v921_v39  ;;  %v6084_v43 = vpop.eup %6083  ;;  %v4999_v44 = vcombine.low %v917_v42, %v921_v39  ;;  %v965_v18 = vld [vmem:[#allocation3 + $0x1c0] sm:$0xff] }
 0x155   :  { %v505_v12 = vmul.f32 %v489_v19, %v441_v34  ;;  %v474_v17 = vmul.f32 0.044715, %v442_v20  ;;  %v568_v50 = vadd.f32 1.0, %v6084_v43  ;;  %v458_v3 = vmul.f32 0.5, %v442_v20  ;;  %v969_v19 = vld [vmem:[#allocation3 + $0x1e0] sm:$0xff] }
 0x156   :  { %v539_v24 = vmul.f32 0.7978846, %v523_v23  ;;  %1295 = vmatprep.subr.bf16.mxu0 %v5000_v41  ;;  %5482 = vmatprep.subr.bf16.mxu1 %v5000_v41  ;;  %v5048_v21 = vcombine.high %v965_v18, %v969_v19  ;;  %v5047_v23 = vcombine.low %v965_v18, %v969_v19 }
 0x157   :  { %v490_v33 = vmul.f32 %v474_v17, %v442_v20  ;;  %v521_v26 = vadd.f32 %v505_v12, %v441_v34  ;;  %1296 = vmatpush1.bf16.msra.mxu0 %v4999_v44  ;;  %5490 = vmatpush1.bf16.msra.mxu1 %v4999_v44  ;;  %v584_v57 = vmul.f32 %v568_v50, %v456_v5  ;;  %v953_v34 = vld [vmem:[#allocation3 + $0x160] sm:$0xff]  ;;  %v6625_v12 = vld [vmem:[#allocation3 + $0x8] sm:$0xff] }
 0x158   :  { %6085 = vtanh.f32 %v539_v24  ;;  %1297 = vmatprep.subr.bf16.mxu0 %v5008_v51  ;;  %5483 = vmatprep.subr.bf16.mxu1 %v5008_v51  ;;  %v5032_v35 = vcombine.high %v949_v11, %v953_v34  ;;  %v5031_v7 = vcombine.low %v949_v11, %v953_v34  ;;  %v6627_v17 = vld [vmem:[#allocation3 + $0x28] sm:$0xff] }
 0x159   :  { %v506_v28 = vmul.f32 %v490_v33, %v442_v20  ;;  %v537_v15 = vmul.f32 0.7978846, %v521_v26  ;;  %v4993_v24 = vcombine.low %v6625_v12, %v6627_v17  ;;  %v4994_v33 = vcombine.high %v6625_v12, %v6627_v17  ;;  %v6633_v26 = vld [vmem:[#allocation3 + $0x10] sm:$0xff] }
 0x15b   :  { %6087 = vtanh.f32 %v537_v15  ;;  %v522_v4 = vadd.f32 %v506_v28, %v442_v20  ;;  %1298 = vmatpush1.bf16.msra.mxu0 %v5007_v40  ;;  %5491 = vmatpush1.bf16.msra.mxu1 %v5007_v40  ;;  %v5039_v20 = vcombine.low %v957_v62, %v961_v13  ;;  %v6635_v28 = vld [vmem:[#allocation3 + $0x30] sm:$0xff] }
 0x15c   :  { %1299 = vmatprep.subr.bf16.mxu0 %v5016_v60  ;;  %5484 = vmatprep.subr.bf16.mxu1 %v5016_v60  ;;  %v4995_v15 = vcombine.low %v6633_v26, %v6635_v28 }
 0x15d   :  { %v538_v37 = vmul.f32 0.7978846, %v522_v4  ;;  %v4996_v4 = vcombine.high %v6633_v26, %v6635_v28  ;;  %v939_v26 = vld [vmem:[#allocation3 + $0xf0] sm:$0xff] }
 0x15f   :  { %6089 = vtanh.f32 %v538_v37  ;;  %1300 = vmatpush1.bf16.msra.mxu0 %v5015_v0  ;;  %5492 = vmatpush1.bf16.msra.mxu1 %v5015_v0 }
 0x160   :  { %1301 = vmatprep.subr.bf16.mxu0 %v5024_v10  ;;  %5485 = vmatprep.subr.bf16.mxu1 %v5024_v10 }
 0x162   :  { %v6086_v46 = vpop.eup %6085 }
 0x163   :  { %v571_v59 = vadd.f32 1.0, %v6086_v46  ;;  %1302 = vmatpush1.bf16.msra.mxu0 %v5023_v48  ;;  %5493 = vmatpush1.bf16.msra.mxu1 %v5023_v48 }
 0x164   :  { %1303 = vmatprep.subr.bf16.mxu0 %v5032_v35  ;;  %5486 = vmatprep.subr.bf16.mxu1 %v5032_v35 }
 0x165   :  { %v6088_v52 = vpop.eup %6087  ;;  %v587_v58 = vmul.f32 %v571_v59, %v459_v6 }
 0x166   :  { %v569_v54 = vadd.f32 1.0, %v6088_v52 }
 0x167   :  { %1304 = vmatpush1.bf16.msra.mxu0 %v5031_v7  ;;  %5494 = vmatpush1.bf16.msra.mxu1 %v5031_v7  ;;  %v922_v7 = vld [vmem:[#allocation3 + $0x68] sm:$0xff] }
 0x168   :  { %v585_v49 = vmul.f32 %v569_v54, %v457_v53  ;;  %1305 = vmatprep.subr.bf16.mxu0 %v5040_v16  ;;  %5487 = vmatprep.subr.bf16.mxu1 %v5040_v16 }
 0x169   :  { %v6090_v63 = vpop.eup %6089 }
 0x16a   :  { %v594_v2 = vpack.c.bf16 %v585_v49, %v584_v57  ;;  %v570_v8 = vadd.f32 1.0, %v6090_v63 }
 0x16b   :  { %1306 = vmatpush1.bf16.msra.mxu0 %v5039_v20  ;;  %5495 = vmatpush1.bf16.msra.mxu1 %v5039_v20 }
 0x16c   :  { %5445 = vmatprep.mubr.msk.bf16.mxu0 %vm635_vm0, %v594_v2  ;;  %v586_v9 = vmul.f32 %v570_v8, %v458_v3  ;;  %1307 = vmatprep.subr.bf16.mxu0 %v5048_v21 }
 0x16d   :  { %5488 = vmatprep.subr.bf16.mxu1 %v5048_v21 }
 0x16e   :  { %v595_v14 = vpack.c.bf16 %v587_v58, %v586_v9 }
 0x16f   :  { %1308 = vmatpush1.bf16.msra.mxu0 %v5047_v23  ;;  %5496 = vmatpush1.bf16.msra.mxu1 %v5047_v23  ;;  %v926_v23 = vld [vmem:[#allocation3 + $0x88] sm:$0xff] }
 0x170   :  { %5446 = vmatmul.mubr.msk.bf16.gmra.mrb[12].mxu0 %vm635_vm0, %v595_v14  ;;  %1406 = vmatprep.subr.bf16.mxu0 %v4994_v33  ;;  %v918_v14 = vld [vmem:[#allocation3 + $0x48] sm:$0xff] }
 0x171   :  { %1325 = vmatprep.mubr.bf16.mxu0 %v6268_v1  ;;  %1519 = vmatprep.subr.bf16.mxu1 %v4996_v4  ;;  %v5002_v21 = vcombine.high %v918_v14, %v922_v7  ;;  %v930_v33 = vld [vmem:[#allocation3 + $0xa8] sm:$0xff] }
 0x1dc   :  { %v5435_v32 = vpop.f32.mrb[0].mxu0 }
 0x1dd   :  { %v703_v36 = vadd.f32 %v5435_v32, %v6644_v31  ;;  %v694_v37 = vpop.f32.mrb[1].mxu0 }
 0x1de   :  { %v695_v38 = vadd.f32 %v6644_v31, %v694_v37  ;;  %v5436_v42 = vpop.f32.mrb[2].mxu0  ;;  %v5001_v37 = vcombine.low %v918_v14, %v922_v7  ;;  %v966_v14 = vld [vmem:[#allocation3 + $0x1c8] sm:$0xff] }
 0x1df   :  { %v775_v39 = vmul.f32 0.044715, %v703_v36  ;;  %v706_v41 = vadd.f32 %v5436_v42, %v6644_v31  ;;  %v697_v43 = vpop.f32.mrb[3].mxu0  ;;  %v759_v58 = vmul.f32 0.5, %v703_v36  ;;  %v970_v7 = vld [vmem:[#allocation3 + $0x1e8] sm:$0xff] }
 0x1e0   :  { %v773_v44 = vmul.f32 0.044715, %v695_v38  ;;  %v698_v45 = vadd.f32 %v6644_v31, %v697_v43  ;;  %v757_v11 = vmul.f32 0.5, %v695_v38 }
 0x1e1   :  { %v791_v22 = vmul.f32 %v775_v39, %v703_v36  ;;  %v776_v46 = vmul.f32 0.044715, %v706_v41  ;;  %v760_v48 = vmul.f32 0.5, %v706_v41  ;;  %v5010_v39 = vcombine.high %v926_v23, %v930_v33 }
 0x1e2   :  { %v789_v50 = vmul.f32 %v773_v44, %v695_v38  ;;  %v774_v51 = vmul.f32 0.044715, %v698_v45  ;;  %v758_v34 = vmul.f32 0.5, %v698_v45 }
 0x1e3   :  { %v807_v52 = vmul.f32 %v791_v22, %v703_v36  ;;  %v792_v40 = vmul.f32 %v776_v46, %v706_v41  ;;  %v938_v22 = vld [vmem:[#allocation3 + $0xe8] sm:$0xff] }
 0x1e4   :  { %v805_v5 = vmul.f32 %v789_v50, %v695_v38  ;;  %v790_v53 = vmul.f32 %v774_v51, %v698_v45  ;;  %v5009_v50 = vcombine.low %v926_v23, %v930_v33  ;;  %v6689_v23 = vld [vmem:[#allocation3 + $0x18] sm:$0xff] }
 0x1e5   :  { %v823_v54 = vadd.f32 %v807_v52, %v703_v36  ;;  %v808_v55 = vmul.f32 %v792_v40, %v706_v41  ;;  %v6691_v33 = vld [vmem:[#allocation3 + $0x38] sm:$0xff] }
 0x1e6   :  { %v821_v56 = vadd.f32 %v805_v5, %v695_v38  ;;  %v806_v57 = vmul.f32 %v790_v53, %v698_v45 }
 0x1e7   :  { %v839_v49 = vmul.f32 0.7978846, %v823_v54  ;;  %v824_v59 = vadd.f32 %v808_v55, %v706_v41  ;;  %v942_v54 = vld [vmem:[#allocation3 + $0x108] sm:$0xff] }
 0x1e8   :  { %v837_v60 = vmul.f32 0.7978846, %v821_v56  ;;  %v822_v63 = vadd.f32 %v806_v57, %v698_v45  ;;  %v934_v45 = vld [vmem:[#allocation3 + $0xc8] sm:$0xff] }
 0x1e9   :  { %6091 = vtanh.f32 %v839_v49  ;;  %v840_v0 = vmul.f32 0.7978846, %v824_v59  ;;  %v5018_v40 = vcombine.high %v934_v45, %v938_v22  ;;  %v946_v55 = vld [vmem:[#allocation3 + $0x128] sm:$0xff] }
 0x1ea   :  { %6093 = vtanh.f32 %v837_v60  ;;  %v838_v2 = vmul.f32 0.7978846, %v822_v63  ;;  %v5017_v60 = vcombine.low %v934_v45, %v938_v22 }
 0x1eb   :  { %6095 = vtanh.f32 %v840_v0 }
 0x1ec   :  { %6097 = vtanh.f32 %v838_v2  ;;  %v5026_v2 = vcombine.high %v942_v54, %v946_v55 }
 0x1f3   :  { %v6092_v3 = vpop.eup %6091 }
 0x1f4   :  { %v6094_v6 = vpop.eup %6093  ;;  %v871_v8 = vadd.f32 1.0, %v6092_v3 }
 0x1f5   :  { %v6096_v47 = vpop.eup %6095  ;;  %v869_v61 = vadd.f32 1.0, %v6094_v6 }
 0x1f6   :  { %v6098_v9 = vpop.eup %6097  ;;  %v872_v10 = vadd.f32 1.0, %v6096_v47  ;;  %v887_v62 = vmul.f32 %v871_v8, %v759_v58  ;;  %v950_v8 = vld [vmem:[#allocation3 + $0x148] sm:$0xff] }
 0x1f7   :  { %v870_v35 = vadd.f32 1.0, %v6098_v9  ;;  %v885_v16 = vmul.f32 %v869_v61, %v757_v11  ;;  %v954_v47 = vld [vmem:[#allocation3 + $0x168] sm:$0xff] }
 0x1f8   :  { %v888_v13 = vmul.f32 %v872_v10, %v760_v48  ;;  %v5025_v48 = vcombine.low %v942_v54, %v946_v55  ;;  %v5034_v11 = vcombine.high %v950_v8, %v954_v47 }
 0x1f9   :  { %v886_v18 = vmul.f32 %v870_v35, %v758_v34  ;;  %v958_v34 = vld [vmem:[#allocation3 + $0x188] sm:$0xff] }
 0x1fa   :  { %v6650_v19 = vpack.c.bf16 %v888_v13, %v887_v62  ;;  %v962_v35 = vld [vmem:[#allocation3 + $0x1a8] sm:$0xff]  ;;  %v5033_v62 = vcombine.low %v950_v8, %v954_v47  ;;  %v920_v47 = vld [vmem:[#allocation3 + $0x58] sm:$0xff] }
 0x1fb   :  { %v6652_v20 = vpack.c.bf16 %v886_v18, %v885_v16  ;;  %v5042_v13 = vcombine.high %v958_v34, %v962_v35  ;;  %v5041_v16 = vcombine.low %v958_v34, %v962_v35  ;;  %v5050_v18 = vcombine.high %v966_v14, %v970_v7 }
 0x1fd   :  { %v5439_v4 = vpop.f32.mrb[4].mxu0  ;;  %1326 = vmatmul.mubr.bf16.vlgmr.msra.gmra.mrb[16].mxu0 %v6652_v20 }
 0x1fe   :  { %v6656_v32 = vadd.f32 %v5439_v4, %v6644_v31  ;;  %v710_v36 = vpop.f32.mrb[5].mxu0  ;;  %1335 = vmatprep.mubr.bf16.mxu0 %v6268_v1  ;;  %1407 = vmatpush1.bf16.msra.mxu0 %v4993_v24 }
 0x1ff   :  { %v6663_v38 = vadd.f32 %v6644_v31, %v710_v36  ;;  %v5440_v42 = vpop.f32.mrb[6].mxu0  ;;  %1408 = vmatprep.subr.bf16.mxu0 %v5002_v21 }
 0x200   :  { %v779_v41 = vmul.f32 0.044715, %v6656_v32  ;;  %v6667_v43 = vadd.f32 %v5440_v42, %v6644_v31  ;;  %v713_v44 = vpop.f32.mrb[7].mxu0 }
 0x201   :  { %v777_v46 = vmul.f32 0.044715, %v6663_v38  ;;  %v6671_v12 = vadd.f32 %v6644_v31, %v713_v44  ;;  %v763_v44 = vmul.f32 0.5, %v6656_v32 }
 0x202   :  { %v795_v17 = vmul.f32 %v779_v41, %v6656_v32  ;;  %v780_v24 = vmul.f32 0.044715, %v6667_v43  ;;  %1409 = vmatpush1.bf16.msra.mxu0 %v5001_v37  ;;  %v764_v45 = vmul.f32 0.5, %v6667_v43 }
 0x203   :  { %v793_v51 = vmul.f32 %v777_v46, %v6663_v38  ;;  %v778_v52 = vmul.f32 0.044715, %v6671_v12  ;;  %1410 = vmatprep.subr.bf16.mxu0 %v5010_v39  ;;  %v5049_v39 = vcombine.low %v966_v14, %v970_v7  ;;  %v4998_v46 = vcombine.high %v6689_v23, %v6691_v33  ;;  %v928_v7 = vld [vmem:[#allocation3 + $0x98] sm:$0xff] }
 0x204   :  { %v811_v5 = vmul.f32 %v795_v17, %v6656_v32  ;;  %v796_v53 = vmul.f32 %v780_v24, %v6667_v43  ;;  %v761_v17 = vmul.f32 0.5, %v6663_v38  ;;  %v762_v24 = vmul.f32 0.5, %v6671_v12 }
 0x205   :  { %v809_v56 = vmul.f32 %v793_v51, %v6663_v38  ;;  %v794_v57 = vmul.f32 %v778_v52, %v6671_v12  ;;  %1336 = vmatmul.mubr.bf16.gmra.mrb[20].mxu0 %v6650_v19 }
 0x206   :  { %v827_v49 = vadd.f32 %v811_v5, %v6656_v32  ;;  %v812_v59 = vmul.f32 %v796_v53, %v6667_v43  ;;  %1411 = vmatpush1.bf16.msra.mxu0 %v5009_v50  ;;  %1345 = vmatprep.mubr.bf16.mxu0 %v6268_v1 }
 0x207   :  { %v825_v63 = vadd.f32 %v809_v56, %v6663_v38  ;;  %v810_v0 = vmul.f32 %v794_v57, %v6671_v12  ;;  %1412 = vmatprep.subr.bf16.mxu0 %v5018_v40 }
 0x208   :  { %v843_v3 = vmul.f32 0.7978846, %v827_v49  ;;  %v828_v6 = vadd.f32 %v812_v59, %v6667_v43 }
 0x209   :  { %v841_v61 = vmul.f32 0.7978846, %v825_v63  ;;  %v826_v9 = vadd.f32 %v810_v0, %v6671_v12 }
 0x20a   :  { %6099 = vtanh.f32 %v843_v3  ;;  %v844_v58 = vmul.f32 0.7978846, %v828_v6  ;;  %1413 = vmatpush1.bf16.msra.mxu0 %v5017_v60 }
 0x20b   :  { %6101 = vtanh.f32 %v841_v61  ;;  %v842_v10 = vmul.f32 0.7978846, %v826_v9  ;;  %1414 = vmatprep.subr.bf16.mxu0 %v5026_v2  ;;  %v924_v61 = vld [vmem:[#allocation3 + $0x78] sm:$0xff] }
 0x20c   :  { %6103 = vtanh.f32 %v844_v58 }
 0x20d   :  { %6105 = vtanh.f32 %v842_v10 }
 0x20e   :  { %1415 = vmatpush1.bf16.msra.mxu0 %v5025_v48 }
 0x20f   :  { %1416 = vmatprep.subr.bf16.mxu0 %v5034_v11  ;;  %v4997_v11 = vcombine.low %v6689_v23, %v6691_v33  ;;  %v5005_v23 = vcombine.low %v920_v47, %v924_v61 }
 0x212   :  { %1417 = vmatpush1.bf16.msra.mxu0 %v5033_v62  ;;  %v5006_v62 = vcombine.high %v920_v47, %v924_v61  ;;  %v923_v47 = vld [vmem:[#allocation3 + $0x70] sm:$0xff]  ;;  %v960_v61 = vld [vmem:[#allocation3 + $0x198] sm:$0xff] }
 0x213   :  { %1418 = vmatprep.subr.bf16.mxu0 %v5042_v13 }
 0x214   :  { %v6100_v21 = vpop.eup %6099 }
 0x215   :  { %v6102_v4 = vpop.eup %6101  ;;  %v875_v36 = vadd.f32 1.0, %v6100_v21 }
 0x216   :  { %v6104_v37 = vpop.eup %6103  ;;  %v873_v42 = vadd.f32 1.0, %v6102_v4  ;;  %1419 = vmatpush1.bf16.msra.mxu0 %v5041_v16  ;;  %v932_v16 = vld [vmem:[#allocation3 + $0xb8] sm:$0xff] }
 0x217   :  { %v6106_v41 = vpop.eup %6105  ;;  %v876_v22 = vadd.f32 1.0, %v6104_v37  ;;  %1420 = vmatprep.subr.bf16.mxu0 %v5050_v18  ;;  %v891_v51 = vmul.f32 %v875_v36, %v763_v44  ;;  %v5014_v36 = vcombine.high %v928_v7, %v932_v16  ;;  %v936_v37 = vld [vmem:[#allocation3 + $0xd8] sm:$0xff] }
 0x218   :  { %v874_v50 = vadd.f32 1.0, %v6106_v41  ;;  %v889_v40 = vmul.f32 %v873_v42, %v761_v17  ;;  %v940_v42 = vld [vmem:[#allocation3 + $0xf8] sm:$0xff] }
 0x219   :  { %v892_v52 = vmul.f32 %v876_v22, %v764_v45  ;;  %v5022_v41 = vcombine.high %v936_v37, %v940_v42  ;;  %v944_v44 = vld [vmem:[#allocation3 + $0x118] sm:$0xff]  ;;  %v5021_v22 = vcombine.low %v936_v37, %v940_v42 }
 0x21a   :  { %v890_v5 = vmul.f32 %v874_v50, %v762_v24  ;;  %1421 = vmatpush1.bf16.msra.mxu0 %v5049_v39  ;;  %v5013_v39 = vcombine.low %v928_v7, %v932_v16  ;;  %v948_v45 = vld [vmem:[#allocation3 + $0x138] sm:$0xff] }
 0x21b   :  { %v6699_v53 = vpack.c.bf16 %v892_v52, %v891_v51  ;;  %1632 = vmatprep.subr.bf16.mxu0 %v4998_v46  ;;  %v5030_v46 = vcombine.high %v944_v44, %v948_v45  ;;  %v952_v24 = vld [vmem:[#allocation3 + $0x158] sm:$0xff] }
 0x21c   :  { %v6701_v32 = vpack.c.bf16 %v890_v5, %v889_v40  ;;  %v956_v50 = vld [vmem:[#allocation3 + $0x178] sm:$0xff] }
 0x21e   :  { %1346 = vmatmul.mubr.bf16.gmra.mrb[24].mxu0 %v6701_v32 }
 0x21f   :  { %1355 = vmatprep.mubr.bf16.mxu0 %v6268_v1 }
 0x222   :  { %v5443_v43 = vpop.f32.mrb[8].mxu0 }
 0x223   :  { %v6706_v38 = vadd.f32 %v5443_v43, %v6644_v31  ;;  %v726_v12 = vpop.f32.mrb[9].mxu0  ;;  %v5029_v43 = vcombine.low %v944_v44, %v948_v45 }
 0x224   :  { %v6709_v54 = vadd.f32 %v6644_v31, %v726_v12  ;;  %v5444_v55 = vpop.f32.mrb[10].mxu0 }
 0x225   :  { %v783_v56 = vmul.f32 0.044715, %v6706_v38  ;;  %v6713_v57 = vadd.f32 %v5444_v55, %v6644_v31  ;;  %v729_v49 = vpop.f32.mrb[11].mxu0  ;;  %v767_v55 = vmul.f32 0.5, %v6706_v38 }
 0x226   :  { %v781_v59 = vmul.f32 0.044715, %v6709_v54  ;;  %v6717_v60 = vadd.f32 %v6644_v31, %v729_v49  ;;  %1356 = vmatmul.mubr.bf16.gmra.mrb[28].mxu0 %v6699_v53 }
 0x227   :  { %v799_v63 = vmul.f32 %v783_v56, %v6706_v38  ;;  %v784_v0 = vmul.f32 0.044715, %v6713_v57  ;;  %1438 = vmatprep.mubr.bf16.mxu0 %v6268_v1  ;;  %v768_v56 = vmul.f32 0.5, %v6713_v57 }
 0x228   :  { %v797_v2 = vmul.f32 %v781_v59, %v6709_v54  ;;  %v782_v3 = vmul.f32 0.044715, %v6717_v60  ;;  %v5038_v59 = vcombine.high %v952_v24, %v956_v50 }
 0x229   :  { %v815_v6 = vmul.f32 %v799_v63, %v6706_v38  ;;  %v800_v8 = vmul.f32 %v784_v0, %v6713_v57  ;;  %v765_v63 = vmul.f32 0.5, %v6709_v54  ;;  %v766_v0 = vmul.f32 0.5, %v6717_v60 }
 0x22a   :  { %v813_v9 = vmul.f32 %v797_v2, %v6709_v54  ;;  %v798_v58 = vmul.f32 %v782_v3, %v6717_v60  ;;  %v919_v3 = vld [vmem:[#allocation3 + $0x50] sm:$0xff] }
 0x22b   :  { %v831_v48 = vadd.f32 %v815_v6, %v6706_v38  ;;  %v816_v10 = vmul.f32 %v800_v8, %v6713_v57 }
 0x22c   :  { %v829_v34 = vadd.f32 %v813_v9, %v6709_v54  ;;  %v814_v35 = vmul.f32 %v798_v58, %v6717_v60  ;;  %v964_v9 = vld [vmem:[#allocation3 + $0x1b8] sm:$0xff] }
 0x22d   :  { %v847_v13 = vmul.f32 0.7978846, %v831_v48  ;;  %v832_v14 = vadd.f32 %v816_v10, %v6713_v57  ;;  %v5037_v57 = vcombine.low %v952_v24, %v956_v50  ;;  %v5046_v10 = vcombine.high %v960_v61, %v964_v9 }
 0x22e   :  { %v845_v18 = vmul.f32 0.7978846, %v829_v34  ;;  %v830_v21 = vadd.f32 %v814_v35, %v6717_v60  ;;  %1439 = vmatmul.mubr.bf16.vlgmr.msra.gmra.mrb[32].mxu0 %v6652_v20  ;;  %v5004_v60 = vcombine.high %v919_v3, %v923_v47  ;;  %v972_v34 = vld [vmem:[#allocation3 + $0x1f8] sm:$0xff]  ;;  %v927_v35 = vld [vmem:[#allocation3 + $0x90] sm:$0xff] }
 0x22f   :  { %6107 = vtanh.f32 %v847_v13  ;;  %v848_v4 = vmul.f32 0.7978846, %v832_v14  ;;  %1448 = vmatprep.mubr.bf16.mxu0 %v6268_v1  ;;  %1633 = vmatpush1.bf16.msra.mxu0 %v4997_v11  ;;  %v968_v11 = vld [vmem:[#allocation3 + $0x1d8] sm:$0xff]  ;;  %v5045_v14 = vcombine.low %v960_v61, %v964_v9 }
 0x230   :  { %6109 = vtanh.f32 %v845_v18  ;;  %v846_v33 = vmul.f32 0.7978846, %v830_v21  ;;  %1634 = vmatprep.subr.bf16.mxu0 %v5006_v62  ;;  %v931_v62 = vld [vmem:[#allocation3 + $0xb0] sm:$0xff]  ;;  %v5003_v18 = vcombine.low %v919_v3, %v923_v47  ;;  %v5054_v21 = vcombine.high %v968_v11, %v972_v34 }
 0x231   :  { %6111 = vtanh.f32 %v848_v4  ;;  %v955_v3 = vld [vmem:[#allocation3 + $0x170] sm:$0xff] }
 0x232   :  { %6113 = vtanh.f32 %v846_v33  ;;  %v5012_v33 = vcombine.high %v927_v35, %v931_v62 }
 0x233   :  { %1635 = vmatpush1.bf16.msra.mxu0 %v5005_v23 }
 0x234   :  { %1636 = vmatprep.subr.bf16.mxu0 %v5014_v36 }
 0x236   :  { %1449 = vmatmul.mubr.bf16.gmra.mrb[36].mxu0 %v6650_v19 }
 0x237   :  { %1458 = vmatprep.mubr.bf16.mxu0 %v6268_v1  ;;  %1637 = vmatpush1.bf16.msra.mxu0 %v5013_v39  ;;  %v935_v39 = vld [vmem:[#allocation3 + $0xd0] sm:$0xff] }
 0x238   :  { %1638 = vmatprep.subr.bf16.mxu0 %v5022_v41  ;;  %v5053_v41 = vcombine.low %v968_v11, %v972_v34  ;;  %v5020_v24 = vcombine.high %v935_v39, %v939_v26  ;;  %v967_v11 = vld [vmem:[#allocation3 + $0x1d0] sm:$0xff] }
 0x239   :  { %v6108_v17 = vpop.eup %6107  ;;  %v971_v34 = vld [vmem:[#allocation3 + $0x1f0] sm:$0xff] }
 0x23a   :  { %v6110_v51 = vpop.eup %6109  ;;  %v879_v52 = vadd.f32 1.0, %v6108_v17 }
 0x23b   :  { %v6112_v40 = vpop.eup %6111  ;;  %v877_v5 = vadd.f32 1.0, %v6110_v51  ;;  %1639 = vmatpush1.bf16.msra.mxu0 %v5021_v22  ;;  %v5011_v22 = vcombine.low %v927_v35, %v931_v62  ;;  %v943_v51 = vld [vmem:[#allocation3 + $0x110] sm:$0xff]  ;;  %v5052_v62 = vcombine.high %v967_v11, %v971_v34 }
 0x23c   :  { %v6114_v12 = vpop.eup %6113  ;;  %v880_v49 = vadd.f32 1.0, %v6112_v40  ;;  %1640 = vmatprep.subr.bf16.mxu0 %v5030_v46  ;;  %v895_v6 = vmul.f32 %v879_v52, %v767_v55  ;;  %v947_v52 = vld [vmem:[#allocation3 + $0x130] sm:$0xff]  ;;  %v5019_v55 = vcombine.low %v935_v39, %v939_v26 }
 0x23d   :  { %v878_v2 = vadd.f32 1.0, %v6114_v12  ;;  %v893_v58 = vmul.f32 %v877_v5, %v765_v63  ;;  %v5027_v61 = vcombine.low %v943_v51, %v947_v52 }
 0x23e   :  { %1459 = vmatmul.mubr.bf16.gmra.mrb[40].mxu0 %v6701_v32  ;;  %v896_v8 = vmul.f32 %v880_v49, %v768_v56 }
 0x23f   :  { %v894_v38 = vmul.f32 %v878_v2, %v766_v0  ;;  %1468 = vmatprep.mubr.bf16.mxu0 %v6268_v1  ;;  %1641 = vmatpush1.bf16.msra.mxu0 %v5029_v43  ;;  %v951_v2 = vld [vmem:[#allocation3 + $0x150] sm:$0xff] }
 0x240   :  { %v6747_v48 = vpack.c.bf16 %v896_v8, %v895_v6  ;;  %1642 = vmatprep.subr.bf16.mxu0 %v5038_v59  ;;  %v5028_v59 = vcombine.high %v943_v51, %v947_v52  ;;  %v5602_v51 = vld [vmem:[#allocation6 + $0x6c] ss:$16 sps:$4 sm:$0xff]   ;;  %v5597_v52 = vld [vmem:[#allocation6 + $0x60] ss:$16 sps:$4 sm:$0xff]  }
 0x241   :  { %v6749_v54 = vpack.c.bf16 %v894_v38, %v893_v58  ;;  %v5036_v58 = vcombine.high %v951_v2, %v955_v3  ;;  %v959_v38 = vld [vmem:[#allocation3 + $0x190] sm:$0xff] }
 0x243   :  { %v5447_v13 = vpop.f32.mrb[12].mxu0  ;;  %1366 = vmatmul.mubr.bf16.vlgmr.msra.gmra.mrb[0].mxu1 %v6749_v54  ;;  %1643 = vmatpush1.bf16.msra.mxu0 %v5037_v57  ;;  %v963_v57 = vld [vmem:[#allocation3 + $0x1b0] sm:$0xff] }
 0x244   :  { %v6753_v7 = vadd.f32 %v5447_v13, %v6644_v31  ;;  %v742_v16 = vpop.f32.mrb[13].mxu0  ;;  %1375 = vmatprep.mubr.bf16.mxu1 %v6268_v1  ;;  %1520 = vmatpush1.bf16.msra.mxu1 %v4995_v15  ;;  %v5043_v35 = vcombine.low %v959_v38, %v963_v57 }
 0x245   :  { %v6760_v4 = vadd.f32 %v6644_v31, %v742_v16  ;;  %v5448_v23 = vpop.f32.mrb[14].mxu0  ;;  %1521 = vmatprep.subr.bf16.mxu1 %v5004_v60  ;;  %1644 = vmatprep.subr.bf16.mxu0 %v5046_v10  ;;  %v5035_v60 = vcombine.low %v951_v2, %v955_v3  ;;  %v5044_v10 = vcombine.high %v959_v38, %v963_v57  ;;  %v5611_v2 = vld [vmem:[#allocation6 + $0xa4] ss:$16 sps:$4 sm:$0xff]   ;;  %v5614_v3 = vld [vmem:[#allocation6 + $0xac] ss:$16 sps:$4 sm:$0xff]  }
 0x246   :  { %v787_v36 = vmul.f32 0.044715, %v6753_v7  ;;  %v6764_v37 = vadd.f32 %v5448_v23, %v6644_v31  ;;  %v745_v42 = vpop.f32.mrb[15].mxu0  ;;  %1469 = vmatmul.mubr.bf16.gmra.mrb[44].mxu0 %v6699_v53  ;;  %v5051_v23 = vcombine.low %v967_v11, %v971_v34  ;;  %v5615_v38 = vld [vmem:[#allocation6 + $0xc0] ss:$16 sps:$4 sm:$0xff]  }
 0x247   :  { %v785_v28 = vmul.f32 0.044715, %v6760_v4  ;;  %v6769_v15 = vadd.f32 %v6644_v31, %v745_v42  ;;  %1478 = vmatprep.mubr.bf16.mxu0 %v6268_v1  ;;  %1645 = vmatpush1.bf16.msra.mxu0 %v5045_v14  ;;  %v769_v26 = vmul.f32 0.5, %v6760_v4  ;;  %v5618_v57 = vld [vmem:[#allocation6 + $0xc8] ss:$16 sps:$4 sm:$0xff]  }
 0x248   :  { %v803_v44 = vmul.f32 %v787_v36, %v6753_v7  ;;  %v788_v45 = vmul.f32 0.044715, %v6764_v37  ;;  %1522 = vmatpush1.bf16.msra.mxu1 %v5003_v18  ;;  %1646 = vmatprep.subr.bf16.mxu0 %v5054_v21  ;;  %v771_v36 = vmul.f32 0.5, %v6753_v7  ;;  %v772_v42 = vmul.f32 0.5, %v6764_v37 }
 0x249   :  { %v801_v46 = vmul.f32 %v785_v28, %v6760_v4  ;;  %v786_v17 = vmul.f32 0.044715, %v6769_v15  ;;  %1523 = vmatprep.subr.bf16.mxu1 %v5012_v33  ;;  %v770_v28 = vmul.f32 0.5, %v6769_v15 }
 0x24a   :  { %v819_v31 = vmul.f32 %v803_v44, %v6753_v7  ;;  %v804_v50 = vmul.f32 %v788_v45, %v6764_v37 }
 0x24b   :  { %v817_v40 = vmul.f32 %v801_v46, %v6760_v4  ;;  %v802_v5 = vmul.f32 %v786_v17, %v6769_v15  ;;  %1376 = vmatmul.mubr.bf16.gmra.mrb[4].mxu1 %v6747_v48  ;;  %1647 = vmatpush1.bf16.msra.mxu0 %v5053_v41 }
 0x24c   :  { %v835_v43 = vadd.f32 %v819_v31, %v6753_v7  ;;  %v820_v12 = vmul.f32 %v804_v50, %v6764_v37  ;;  %1524 = vmatpush1.bf16.msra.mxu1 %v5011_v22  ;;  %1385 = vmatprep.mubr.bf16.mxu1 %v6268_v1  ;;  %v5585_v7 = vld [vmem:[#allocation6 + $0x20] ss:$16 sps:$4 sm:$0xff]   ;;  %v5594_v31 = vld [vmem:[#allocation6 + $0x48] ss:$16 sps:$4 sm:$0xff]   ;;  %v5599_v50 = vld [vmem:[#allocation6 + $0x64] ss:$16 sps:$4 sm:$0xff]  }
 0x24d   :  { %v833_v56 = vadd.f32 %v817_v40, %v6760_v4  ;;  %v818_v49 = vmul.f32 %v802_v5, %v6769_v15  ;;  %1525 = vmatprep.subr.bf16.mxu1 %v5020_v24  ;;  %v5588_v4 = vld [vmem:[#allocation6 + $0x28] ss:$16 sps:$4 sm:$0xff]   ;;  %v5605_v5 = vld [vmem:[#allocation6 + $0x84] ss:$16 sps:$4 sm:$0xff]  }
 0x24e   :  { %v851_v63 = vmul.f32 0.7978846, %v835_v43  ;;  %v836_v0 = vadd.f32 %v820_v12, %v6764_v37  ;;  %1479 = vmatmul.mubr.bf16.gmra.mrb[48].mxu0 %v6749_v54  ;;  %v5593_v37 = vld [vmem:[#allocation6 + $0x44] ss:$16 sps:$4 sm:$0xff]   ;;  %v5600_v40 = vld [vmem:[#allocation6 + $0x68] ss:$16 sps:$4 sm:$0xff]  }
 0x24f   :  { %v849_v6 = vmul.f32 0.7978846, %v833_v56  ;;  %v834_v8 = vadd.f32 %v818_v49, %v6769_v15  ;;  %1488 = vmatprep.mubr.bf16.mxu0 %v6268_v1  ;;  %v5591_v15 = vld [vmem:[#allocation6 + $0x40] ss:$16 sps:$4 sm:$0xff]   ;;  %v5608_v43 = vld [vmem:[#allocation6 + $0x8c] ss:$16 sps:$4 sm:$0xff]  }
 0x250   :  { %6115 = vtanh.f32 %v851_v63  ;;  %v852_v47 = vmul.f32 0.7978846, %v836_v0  ;;  %1526 = vmatpush1.bf16.msra.mxu1 %v5019_v55  ;;  %v5603_v55 = vld [vmem:[#allocation6 + $0x80] ss:$16 sps:$4 sm:$0xff]   ;;  %v5606_v56 = vld [vmem:[#allocation6 + $0x88] ss:$16 sps:$4 sm:$0xff]  }
 0x251   :  { %6117 = vtanh.f32 %v849_v6  ;;  %v850_v9 = vmul.f32 0.7978846, %v834_v8  ;;  %1527 = vmatprep.subr.bf16.mxu1 %v5028_v59  ;;  %v5609_v8 = vld [vmem:[#allocation6 + $0xa0] ss:$16 sps:$4 sm:$0xff]  }
 0x252   :  { %6119 = vtanh.f32 %v852_v47  ;;  %v5612_v47 = vld [vmem:[#allocation6 + $0xa8] ss:$16 sps:$4 sm:$0xff]  }
 0x253   :  { %6121 = vtanh.f32 %v850_v9  ;;  %v5620_v9 = vld [vmem:[#allocation6 + $0xcc] ss:$16 sps:$4 sm:$0xff]  }
 0x254   :  { %1528 = vmatpush1.bf16.msra.mxu1 %v5027_v61  ;;  %v5617_v61 = vld [vmem:[#allocation6 + $0xc4] ss:$16 sps:$4 sm:$0xff]  }
 0x255   :  { %1529 = vmatprep.subr.bf16.mxu1 %v5036_v58 }
 0x256   :  { %1489 = vmatmul.mubr.bf16.gmra.mrb[52].mxu0 %v6747_v48 }
 0x257   :  { %1498 = vmatprep.mubr.bf16.mxu0 %v6268_v1 }
 0x258   :  { %1530 = vmatpush1.bf16.msra.mxu1 %v5035_v60 }
 0x259   :  { %1531 = vmatprep.subr.bf16.mxu1 %v5044_v10 }
 0x25a   :  { %v6116_v13 = vpop.eup %6115 }
 0x25b   :  { %v6118_v14 = vpop.eup %6117  ;;  %v883_v16 = vadd.f32 1.0, %v6116_v13  ;;  %v5623_v13 = vld [vmem:[#allocation6 + $0xe4] ss:$16 sps:$4 sm:$0xff]  }
 0x25c   :  { %v6120_v18 = vpop.eup %6119  ;;  %v881_v21 = vadd.f32 1.0, %v6118_v14  ;;  %1532 = vmatpush1.bf16.msra.mxu1 %v5043_v35  ;;  %v5626_v14 = vld [vmem:[#allocation6 + $0xec] ss:$16 sps:$4 sm:$0xff]  }
 0x25d   :  { %v6122_v33 = vpop.eup %6121  ;;  %v884_v39 = vadd.f32 1.0, %v6120_v18  ;;  %1533 = vmatprep.subr.bf16.mxu1 %v5052_v62  ;;  %v899_v44 = vmul.f32 %v883_v16, %v771_v36  ;;  %v5621_v18 = vld [vmem:[#allocation6 + $0xe0] ss:$16 sps:$4 sm:$0xff]  }
 0x25e   :  { %v882_v41 = vadd.f32 1.0, %v6122_v33  ;;  %v897_v22 = vmul.f32 %v881_v21, %v769_v26  ;;  %v5624_v21 = vld [vmem:[#allocation6 + $0xe8] ss:$16 sps:$4 sm:$0xff]   ;;  %v5632_v33 = vld [vmem:[#allocation6 + $0x10c] ss:$16 sps:$4 sm:$0xff]  }
 0x25f   :  { %v900_v45 = vmul.f32 %v884_v39, %v772_v42  ;;  %v5627_v36 = vld [vmem:[#allocation6 + $0x100] ss:$16 sps:$4 sm:$0xff]   ;;  %v5630_v42 = vld [vmem:[#allocation6 + $0x108] ss:$16 sps:$4 sm:$0xff]   ;;  %v5635_v39 = vld [vmem:[#allocation6 + $0x124] ss:$16 sps:$4 sm:$0xff]  }
 0x260   :  { %v898_v46 = vmul.f32 %v882_v41, %v770_v28  ;;  %1534 = vmatpush1.bf16.msra.mxu1 %v5051_v23  ;;  %v5629_v23 = vld [vmem:[#allocation6 + $0x104] ss:$16 sps:$4 sm:$0xff]   ;;  %v5638_v26 = vld [vmem:[#allocation6 + $0x12c] ss:$16 sps:$4 sm:$0xff]   ;;  %v5633_v28 = vld [vmem:[#allocation6 + $0x120] ss:$16 sps:$4 sm:$0xff]  }
 0x261   :  { %v908_v17 = vpack.c.bf16 %v900_v45, %v899_v44  ;;  %v5636_v41 = vld [vmem:[#allocation6 + $0x128] ss:$16 sps:$4 sm:$0xff]   ;;  %v5641_v44 = vld [vmem:[#allocation6 + $0x144] ss:$16 sps:$4 sm:$0xff]   ;;  %v5644_v45 = vld [vmem:[#allocation6 + $0x14c] ss:$16 sps:$4 sm:$0xff]  }
 0x262   :  { %v907_v24 = vpack.c.bf16 %v898_v46, %v897_v22  ;;  %v5639_v22 = vld [vmem:[#allocation6 + $0x140] ss:$16 sps:$4 sm:$0xff]   ;;  %v5642_v46 = vld [vmem:[#allocation6 + $0x148] ss:$16 sps:$4 sm:$0xff]  }
 0x264   :  { %1386 = vmatmul.mubr.bf16.gmra.mrb[8].mxu1 %v907_v24  ;;  %1499 = vmatmul.mubr.bf16.gmra.mrb[56].mxu0 %v907_v24 }
 0x265   :  { %1395 = vmatprep.mubr.bf16.mxu1 %v6268_v1  ;;  %1508 = vmatprep.mubr.bf16.mxu0 %v6268_v1 }
 0x26c   :  { %1396 = vmatmul.mubr.bf16.gmra.mrb[12].mxu1 %v908_v17  ;;  %1509 = vmatmul.mubr.bf16.gmra.mrb[60].mxu0 %v908_v17 }
 0x26d   :  { %1551 = vmatprep.mubr.bf16.mxu1 %v6268_v1  ;;  %1664 = vmatprep.mubr.bf16.mxu0 %v6268_v1 }
 0x274   :  { %1552 = vmatmul.mubr.bf16.vlgmr.msra.gmra.mrb[16].mxu1 %v6652_v20  ;;  %1665 = vmatmul.mubr.bf16.vlgmr.msra.gmra.mrb[64].mxu0 %v6652_v20  ;;  %v5584_v20 = vld [vmem:[#allocation6 + $0xc] ss:$16 sps:$4 sm:$0xff]  }
 0x275   :  { %1561 = vmatprep.mubr.bf16.mxu1 %v6268_v1  ;;  %1674 = vmatprep.mubr.bf16.mxu0 %v6268_v1 }
 0x276   :  { %4122 = vmatprep.subr.bf16.mxu0 %v5584_v20  ;;  %v5648_v20 = vld [vmem:[#allocation6 + $0x168] ss:$16 sps:$4 sm:$0xff]  }
 0x27c   :  { %1562 = vmatmul.mubr.bf16.gmra.mrb[20].mxu1 %v6650_v19  ;;  %1675 = vmatmul.mubr.bf16.gmra.mrb[68].mxu0 %v6650_v19  ;;  %v5581_v19 = vld [vmem:[#allocation6 + $0x4] ss:$16 sps:$4 sm:$0xff]  }
 0x27d   :  { %1571 = vmatprep.mubr.bf16.mxu1 %v6268_v1  ;;  %1684 = vmatprep.mubr.bf16.mxu0 %v6268_v1 }
 0x27e   :  { %3958 = vmatprep.subr.bf16.mxu1 %v5581_v19  ;;  %v5645_v19 = vld [vmem:[#allocation6 + $0x160] ss:$16 sps:$4 sm:$0xff]  }
 0x284   :  { %1572 = vmatmul.mubr.bf16.gmra.mrb[24].mxu1 %v6701_v32  ;;  %1685 = vmatmul.mubr.bf16.gmra.mrb[72].mxu0 %v6701_v32  ;;  %v5582_v32 = vld [vmem:[#allocation6 + $0x8] ss:$16 sps:$4 sm:$0xff]  }
 0x285   :  { %1581 = vmatprep.mubr.bf16.mxu1 %v6268_v1  ;;  %1694 = vmatprep.mubr.bf16.mxu0 %v6268_v1 }
 0x286   :  { %4123 = vmatpush1.bf16.msra.mxu0 %v5582_v32  ;;  %v5656_v32 = vld [vmem:[#allocation6 + $0x18c] ss:$16 sps:$4 sm:$0xff]  }
 0x28c   :  { %1582 = vmatmul.mubr.bf16.gmra.mrb[28].mxu1 %v6699_v53  ;;  %1695 = vmatmul.mubr.bf16.gmra.mrb[76].mxu0 %v6699_v53  ;;  %v5579_v53 = vld [vmem:[#allocation6] ss:$16 sps:$4 sm:$0xff]  }
 0x28d   :  { %1591 = vmatprep.mubr.bf16.mxu1 %v6268_v1  ;;  %1704 = vmatprep.mubr.bf16.mxu0 %v6268_v1 }
 0x28e   :  { %3959 = vmatpush1.bf16.msra.mxu1 %v5579_v53  ;;  %v5653_v53 = vld [vmem:[#allocation6 + $0x184] ss:$16 sps:$4 sm:$0xff]  }
 0x294   :  { %1592 = vmatmul.mubr.bf16.gmra.mrb[32].mxu1 %v6749_v54  ;;  %1705 = vmatmul.mubr.bf16.gmra.mrb[80].mxu0 %v6749_v54  ;;  %v5590_v54 = vld [vmem:[#allocation6 + $0x2c] ss:$16 sps:$4 sm:$0xff]  }
 0x295   :  { %1601 = vmatprep.mubr.bf16.mxu1 %v6268_v1  ;;  %1714 = vmatprep.mubr.bf16.mxu0 %v6268_v1 }
 0x296   :  { %4124 = vmatprep.subr.bf16.mxu0 %v5590_v54  ;;  %v5654_v54 = vld [vmem:[#allocation6 + $0x188] ss:$16 sps:$4 sm:$0xff]  }
 0x297   :  { %4125 = vmatpush1.bf16.msra.mxu0 %v5588_v4 }
 0x29c   :  { %1602 = vmatmul.mubr.bf16.gmra.mrb[36].mxu1 %v6747_v48  ;;  %1715 = vmatmul.mubr.bf16.gmra.mrb[84].mxu0 %v6747_v48  ;;  %v5587_v48 = vld [vmem:[#allocation6 + $0x24] ss:$16 sps:$4 sm:$0xff]  }
 0x29d   :  { %1611 = vmatprep.mubr.bf16.mxu1 %v6268_v1  ;;  %1724 = vmatprep.mubr.bf16.mxu0 %v6268_v1 }
 0x29e   :  { %3960 = vmatprep.subr.bf16.mxu1 %v5587_v48  ;;  %v5651_v48 = vld [vmem:[#allocation6 + $0x180] ss:$16 sps:$4 sm:$0xff]  }
 0x29f   :  { %3961 = vmatpush1.bf16.msra.mxu1 %v5585_v7 }
 0x2a0   :  { %3962 = vmatprep.subr.bf16.mxu1 %v5593_v37 }
 0x2a3   :  { %3963 = vmatpush1.bf16.msra.mxu1 %v5591_v15 }
 0x2a4   :  { %1612 = vmatmul.mubr.bf16.gmra.mrb[40].mxu1 %v907_v24  ;;  %1725 = vmatmul.mubr.bf16.gmra.mrb[88].mxu0 %v907_v24  ;;  %v5650_v24 = vld [vmem:[#allocation6 + $0x16c] ss:$16 sps:$4 sm:$0xff]  }
 0x2a5   :  { %1621 = vmatprep.mubr.bf16.mxu1 %v6268_v1  ;;  %1734 = vmatprep.mubr.bf16.mxu0 %v6268_v1  ;;  %v5596_v1 = vld [vmem:[#allocation6 + $0x4c] ss:$16 sps:$4 sm:$0xff]  }
 0x2a6   :  { %4126 = vmatprep.subr.bf16.mxu0 %v5596_v1  ;;  %3964 = vmatprep.subr.bf16.mxu1 %v5599_v50  ;;  %v5662_v50 = vld [vmem:[#allocation6 + $0x1ac] ss:$16 sps:$4 sm:$0xff]  }
 0x2a7   :  { %4127 = vmatpush1.bf16.msra.mxu0 %v5594_v31  ;;  %3965 = vmatpush1.bf16.msra.mxu1 %v5597_v52  ;;  %v5659_v31 = vld [vmem:[#allocation6 + $0x1a4] ss:$16 sps:$4 sm:$0xff]  }
 0x2a8   :  { %4128 = vmatprep.subr.bf16.mxu0 %v5602_v51  ;;  %3966 = vmatprep.subr.bf16.mxu1 %v5605_v5  ;;  %v5660_v5 = vld [vmem:[#allocation6 + $0x1a8] ss:$16 sps:$4 sm:$0xff]  }
 0x2ab   :  { %4129 = vmatpush1.bf16.msra.mxu0 %v5600_v40  ;;  %3967 = vmatpush1.bf16.msra.mxu1 %v5603_v55  ;;  %v5657_v40 = vld [vmem:[#allocation6 + $0x1a0] ss:$16 sps:$4 sm:$0xff]   ;;  %v5668_v55 = vld [vmem:[#allocation6 + $0x1cc] ss:$16 sps:$4 sm:$0xff]  }
 0x2ac   :  { %1622 = vmatmul.mubr.bf16.gmra.mrb[44].mxu1 %v908_v17  ;;  %1735 = vmatmul.mubr.bf16.gmra.mrb[92].mxu0 %v908_v17  ;;  %v5647_v17 = vld [vmem:[#allocation6 + $0x164] ss:$16 sps:$4 sm:$0xff]  }
 0x2ad   :  { %4130 = vmatprep.subr.bf16.mxu0 %v5608_v43  ;;  %3968 = vmatprep.subr.bf16.mxu1 %v5611_v2 }
 0x2af   :  { %4131 = vmatpush1.bf16.msra.mxu0 %v5606_v56  ;;  %3969 = vmatpush1.bf16.msra.mxu1 %v5609_v8  ;;  %v5663_v56 = vld [vmem:[#allocation6 + $0x1c0] ss:$16 sps:$4 sm:$0xff]   ;;  %v5671_v8 = vld [vmem:[#allocation6 + $0x1e4] ss:$16 sps:$4 sm:$0xff]  }
 0x2b0   :  { %4132 = vmatprep.subr.bf16.mxu0 %v5614_v3  ;;  %3970 = vmatprep.subr.bf16.mxu1 %v5617_v61 }
 0x2b3   :  { %4133 = vmatpush1.bf16.msra.mxu0 %v5612_v47  ;;  %3971 = vmatpush1.bf16.msra.mxu1 %v5615_v38 }
 0x2b4   :  { %4134 = vmatprep.subr.bf16.mxu0 %v5620_v9  ;;  %3972 = vmatprep.subr.bf16.mxu1 %v5623_v13  ;;  %v5672_v9 = vld [vmem:[#allocation6 + $0x1e8] ss:$16 sps:$4 sm:$0xff]  }
 0x2b7   :  { %4135 = vmatpush1.bf16.msra.mxu0 %v5618_v57  ;;  %3973 = vmatpush1.bf16.msra.mxu1 %v5621_v18 }
 0x2b8   :  { %4136 = vmatprep.subr.bf16.mxu0 %v5626_v14  ;;  %3974 = vmatprep.subr.bf16.mxu1 %v5629_v23 }
 0x2bb   :  { %4137 = vmatpush1.bf16.msra.mxu0 %v5624_v21  ;;  %3975 = vmatpush1.bf16.msra.mxu1 %v5627_v36 }
 0x2bc   :  { %4138 = vmatprep.subr.bf16.mxu0 %v5632_v33  ;;  %3976 = vmatprep.subr.bf16.mxu1 %v5635_v39 }
 0x2bf   :  { %4139 = vmatpush1.bf16.msra.mxu0 %v5630_v42  ;;  %3977 = vmatpush1.bf16.msra.mxu1 %v5633_v28 }
 0x2c0   :  { %4140 = vmatprep.subr.bf16.mxu0 %v5638_v26  ;;  %3978 = vmatprep.subr.bf16.mxu1 %v5641_v44 }
 0x2c3   :  { %4141 = vmatpush1.bf16.msra.mxu0 %v5636_v41  ;;  %3979 = vmatpush1.bf16.msra.mxu1 %v5639_v22 }
 0x2c4   :  { %4142 = vmatprep.subr.bf16.mxu0 %v5644_v45  ;;  %3980 = vmatprep.subr.bf16.mxu1 %v5647_v17 }
 0x2c7   :  { %4143 = vmatpush1.bf16.msra.mxu0 %v5642_v46  ;;  %3981 = vmatpush1.bf16.msra.mxu1 %v5645_v19 }
 0x2c8   :  { %4144 = vmatprep.subr.bf16.mxu0 %v5650_v24  ;;  %3982 = vmatprep.subr.bf16.mxu1 %v5653_v53 }
 0x2cb   :  { %4145 = vmatpush1.bf16.msra.mxu0 %v5648_v20  ;;  %3983 = vmatpush1.bf16.msra.mxu1 %v5651_v48 }
 0x2cc   :  { %4146 = vmatprep.subr.bf16.mxu0 %v5656_v32  ;;  %3984 = vmatprep.subr.bf16.mxu1 %v5659_v31 }
 0x2cf   :  { %4147 = vmatpush1.bf16.msra.mxu0 %v5654_v54  ;;  %3985 = vmatpush1.bf16.msra.mxu1 %v5657_v40 }
 0x2d0   :  { %v1327_v12 = vpop.f32.mrb[16].mxu0  ;;  %4148 = vmatprep.subr.bf16.mxu0 %v5662_v50 }
 0x2d1   :  { %v1329_v49 = vpop.f32.mrb[17].mxu0 }
 0x2d2   :  { %v1331_v59 = vpop.f32.mrb[18].mxu0 }
 0x2d3   :  { %v1745_v63 = vmax.f32 %v1327_v12, %v1331_v59  ;;  %v1333_v0 = vpop.f32.mrb[19].mxu0  ;;  %4149 = vmatpush1.bf16.msra.mxu0 %v5660_v5  ;;  %v5665_v12 = vld [vmem:[#allocation6 + $0x1c4] ss:$16 sps:$4 sm:$0xff]  }
 0x2d4   :  { %v1758_v6 = vmax.f32 %v1329_v49, %v1333_v0  ;;  %v5666_v49 = vld [vmem:[#allocation6 + $0x1c8] ss:$16 sps:$4 sm:$0xff]   ;;  %3986 = vmatprep.subr.bf16.mxu1 %v5665_v12  ;;  %4150 = vmatprep.subr.bf16.mxu0 %v5668_v55 }
 0x2d5   :  { %3987 = vmatpush1.bf16.msra.mxu1 %v5663_v56 }
 0x2d6   :  { %3988 = vmatprep.subr.bf16.mxu1 %v5671_v8 }
 0x2d7   :  { %4151 = vmatpush1.bf16.msra.mxu0 %v5666_v49 }
 0x2d8   :  { %v1337_v58 = vpop.f32.mrb[20].mxu0 }
 0x2d9   :  { %v1746_v60 = vmax.f32 %v1745_v63, %v1337_v58  ;;  %v1339_v10 = vpop.f32.mrb[21].mxu0  ;;  %v5674_v58 = vld [vmem:[#allocation6 + $0x1ec] ss:$16 sps:$4 sm:$0xff]  }
 0x2da   :  { %v1759_v11 = vmax.f32 %v1758_v6, %v1339_v10  ;;  %v1341_v34 = vpop.f32.mrb[22].mxu0  ;;  %v5669_v6 = vld [vmem:[#allocation6 + $0x1e0] ss:$16 sps:$4 sm:$0xff]   ;;  %4152 = vmatprep.subr.bf16.mxu0 %v5674_v58  ;;  %v5677_v10 = vld [vmem:[#allocation6 + $0x204] ss:$16 sps:$4 sm:$0xff]  }
 0x2db   :  { %v1747_v35 = vmax.f32 %v1746_v60, %v1341_v34  ;;  %v1343_v62 = vpop.f32.mrb[23].mxu0  ;;  %3989 = vmatpush1.bf16.msra.mxu1 %v5669_v6  ;;  %4153 = vmatpush1.bf16.msra.mxu0 %v5672_v9 }
 0x2dc   :  { %v1760_v16 = vmax.f32 %v1759_v11, %v1343_v62  ;;  %v5680_v11 = vld [vmem:[#allocation6 + $0x20c] ss:$16 sps:$4 sm:$0xff]   ;;  %3999 = vmatprep.subr.bf16.mxu1 %v5677_v10 }
 0x2dd   :  { %4163 = vmatprep.subr.bf16.mxu0 %v5680_v11 }
 0x2f1   :  { %v1347_v7 = vpop.f32.mrb[24].mxu0 }
 0x2f2   :  { %v1748_v4 = vmax.f32 %v1747_v35, %v1347_v7  ;;  %v1349_v37 = vpop.f32.mrb[25].mxu0 }
 0x2f3   :  { %v1761_v1 = vmax.f32 %v1760_v16, %v1349_v37  ;;  %v1351_v15 = vpop.f32.mrb[26].mxu0 }
 0x2f4   :  { %v1749_v51 = vmax.f32 %v1748_v4, %v1351_v15  ;;  %v1353_v52 = vpop.f32.mrb[27].mxu0 }
 0x2f5   :  { %v1762_v43 = vmax.f32 %v1761_v1, %v1353_v52 }
 0x2f9   :  { %v1357_v59 = vpop.f32.mrb[28].mxu0 }
 0x2fa   :  { %v1750_v63 = vmax.f32 %v1749_v51, %v1357_v59  ;;  %v1359_v0 = vpop.f32.mrb[29].mxu0 }
 0x2fb   :  { %v1763_v2 = vmax.f32 %v1762_v43, %v1359_v0  ;;  %v1361_v3 = vpop.f32.mrb[30].mxu0 }
 0x2fc   :  { %v1751_v47 = vmax.f32 %v1750_v63, %v1361_v3  ;;  %v1363_v61 = vpop.f32.mrb[31].mxu0 }
 0x2fd   :  { %v1764_v38 = vmax.f32 %v1763_v2, %v1363_v61 }
 0x2fe   :  { %v1752_v57 = vrot.slane %v1751_v47, 4 }
 0x2ff   :  { %v1765_v60 = vrot.slane %v1764_v38, 4 }
 0x300   :  { %v1753_v34 = vmax.f32 %v1751_v47, %v1752_v57 }
 0x301   :  { %v1766_v35 = vmax.f32 %v1764_v38, %v1765_v60  ;;  %v1440_v62 = vpop.f32.mrb[32].mxu0  ;;  %v6270_v38 = vmov 1983009808  }
 0x302   :  { %v1754_v13 = vrot.slane %v1753_v34, 2  ;;  %v1442_v14 = vpop.f32.mrb[33].mxu0  ;;  %v1976_v57 = vunpack.c.l.s4 %v6270_v38 }
 0x303   :  { %v1767_v16 = vrot.slane %v1766_v35, 2  ;;  %v1444_v18 = vpop.f32.mrb[34].mxu0 }
 0x304   :  { %v1755_v21 = vmax.f32 %v1753_v34, %v1754_v13  ;;  %v1771_v23 = vmax.f32 %v1440_v62, %v1444_v18  ;;  %v1446_v33 = vpop.f32.mrb[35].mxu0 }
 0x305   :  { %v1768_v36 = vmax.f32 %v1766_v35, %v1767_v16  ;;  %v1784_v42 = vmax.f32 %v1442_v14, %v1446_v33  ;;  %v1977_v33 = vunpack.c.0.s8 %v1976_v57 }
 0x306   :  { %v1756_v39 = vrot.slane %v1755_v21, 1 }
 0x307   :  { %v1769_v26 = vrot.slane %v1768_v36, 1 }
 0x308   :  { %v6826_v28 = vmax.f32 %v1755_v21, %v1756_v39 }
 0x309   :  { %v6828_v41 = vmax.f32 %v1768_v36, %v1769_v26  ;;  %v1450_v44 = vpop.f32.mrb[36].mxu0 }
 0x30a   :  { %v1772_v45 = vmax.f32 %v1771_v23, %v1450_v44  ;;  %v1452_v22 = vpop.f32.mrb[37].mxu0 }
 0x30b   :  { %v1973_v46 = vcombine.low %v6826_v28, %v6828_v41  ;;  %v1785_v17 = vmax.f32 %v1784_v42, %v1452_v22  ;;  %v1454_v24 = vpop.f32.mrb[38].mxu0 }
 0x30c   :  { %v1773_v19 = vmax.f32 %v1772_v45, %v1454_v24  ;;  %v1456_v20 = vpop.f32.mrb[39].mxu0  ;;  %v6833_v45 = vsub.s32 %v1977_v33, %v6486_v25 }
 0x30d   :  { %v1786_v53 = vmax.f32 %v1785_v17, %v1456_v20 }
 0x311   :  { %v1460_v32 = vpop.f32.mrb[40].mxu0 }
 0x312   :  { %v1774_v48 = vmax.f32 %v1773_v19, %v1460_v32  ;;  %v1462_v54 = vpop.f32.mrb[41].mxu0 }
 0x313   :  { %v1787_v7 = vmax.f32 %v1786_v53, %v1462_v54  ;;  %v1464_v4 = vpop.f32.mrb[42].mxu0 }
 0x314   :  { %v1775_v37 = vmax.f32 %v1774_v48, %v1464_v4  ;;  %v1466_v1 = vpop.f32.mrb[43].mxu0 }
 0x315   :  { %v1788_v15 = vmax.f32 %v1787_v7, %v1466_v1  ;;  %v6839_v7 = vrot.slane %v1973_v46, %v6833_v45 }
 0x316   :  { %v1367_v31 = vpop.f32.mrb[0].mxu1 }
 0x317   :  { %v1369_v50 = vpop.f32.mrb[1].mxu1 }
 0x318   :  { %v1371_v51 = vpop.f32.mrb[2].mxu1 }
 0x319   :  { %v1849_v52 = vmax.f32 %v1367_v31, %v1371_v51  ;;  %v1373_v40 = vpop.f32.mrb[3].mxu1  ;;  %v1470_v5 = vpop.f32.mrb[44].mxu0 }
 0x31a   :  { %v1862_v43 = vmax.f32 %v1369_v50, %v1373_v40  ;;  %v1776_v12 = vmax.f32 %v1775_v37, %v1470_v5  ;;  %v1472_v55 = vpop.f32.mrb[45].mxu0 }
 0x31b   :  { %v1789_v56 = vmax.f32 %v1788_v15, %v1472_v55  ;;  %v1474_v49 = vpop.f32.mrb[46].mxu0 }
 0x31c   :  { %v1777_v59 = vmax.f32 %v1776_v12, %v1474_v49  ;;  %v1476_v63 = vpop.f32.mrb[47].mxu0 }
 0x31d   :  { %v1790_v0 = vmax.f32 %v1789_v56, %v1476_v63 }
 0x31e   :  { %v1778_v2 = vrot.slane %v1777_v59, 4  ;;  %v1377_v3 = vpop.f32.mrb[4].mxu1 }
 0x31f   :  { %v1791_v6 = vrot.slane %v1790_v0, 4  ;;  %v1850_v8 = vmax.f32 %v1849_v52, %v1377_v3  ;;  %v1379_v47 = vpop.f32.mrb[5].mxu1 }
 0x320   :  { %v1779_v61 = vmax.f32 %v1777_v59, %v1778_v2  ;;  %v1863_v9 = vmax.f32 %v1862_v43, %v1379_v47  ;;  %v1381_v58 = vpop.f32.mrb[6].mxu1 }
 0x321   :  { %v1792_v60 = vmax.f32 %v1790_v0, %v1791_v6  ;;  %v1851_v10 = vmax.f32 %v1850_v8, %v1381_v58  ;;  %v1383_v11 = vpop.f32.mrb[7].mxu1  ;;  %v1480_v34 = vpop.f32.mrb[48].mxu0 }
 0x322   :  { %v1780_v35 = vrot.slane %v1779_v61, 2  ;;  %v1864_v62 = vmax.f32 %v1863_v9, %v1383_v11  ;;  %v1482_v13 = vpop.f32.mrb[49].mxu0 }
 0x323   :  { %v1793_v14 = vrot.slane %v1792_v60, 2  ;;  %v1484_v16 = vpop.f32.mrb[50].mxu0 }
 0x324   :  { %v1781_v18 = vmax.f32 %v1779_v61, %v1780_v35  ;;  %v1875_v21 = vmax.f32 %v1480_v34, %v1484_v16  ;;  %v1486_v23 = vpop.f32.mrb[51].mxu0 }
 0x325   :  { %v1794_v36 = vmax.f32 %v1792_v60, %v1793_v14  ;;  %v1888_v42 = vmax.f32 %v1482_v13, %v1486_v23 }
 0x326   :  { %v1782_v39 = vrot.slane %v1781_v18, 1 }
 0x327   :  { %v1795_v26 = vrot.slane %v1794_v36, 1 }
 0x328   :  { %v1783_v44 = vmax.f32 %v1781_v18, %v1782_v39 }
 0x329   :  { %v1796_v22 = vmax.f32 %v1794_v36, %v1795_v26  ;;  %v1490_v17 = vpop.f32.mrb[52].mxu0 }
 0x32a   :  { %v1876_v24 = vmax.f32 %v1875_v21, %v1490_v17  ;;  %v1492_v19 = vpop.f32.mrb[53].mxu0  ;;  %v6849_v21 = vld [vmem:[%s7000_s6] sm:$0xff] }
 0x32b   :  { %v1974_v20 = vcombine.low %v1783_v44, %v1796_v22  ;;  %v1889_v53 = vmax.f32 %v1888_v42, %v1492_v19  ;;  %v1494_v32 = vpop.f32.mrb[54].mxu0  ;;  %v6852_v44 = vsub.s32 3, %v6486_v25 }
 0x32c   :  { %v1877_v48 = vmax.f32 %v1876_v24, %v1494_v32  ;;  %v1496_v54 = vpop.f32.mrb[55].mxu0 }
 0x32d   :  { %v6842_v4 = vrot.slane %v1974_v20, %v6833_v45  ;;  %v1890_v37 = vmax.f32 %v1889_v53, %v1496_v54  ;;  %v2191_v20 = vrot.slane %v6849_v21, %v6495_v30  ;;  %v2195_v53 = vrot.slane %v6849_v21, %v6492_v29 }
 0x32f   :  { %v1989_v1 = vcombine.low %v6839_v7, %v6842_v4 }
 0x337   :  { %v1387_v15 = vpop.f32.mrb[8].mxu1  ;;  %v1500_v31 = vpop.f32.mrb[56].mxu0 }
 0x338   :  { %v1852_v50 = vmax.f32 %v1851_v10, %v1387_v15  ;;  %v1878_v51 = vmax.f32 %v1877_v48, %v1500_v31  ;;  %v1389_v52 = vpop.f32.mrb[9].mxu1  ;;  %v1502_v40 = vpop.f32.mrb[57].mxu0 }
 0x339   :  { %v1865_v5 = vmax.f32 %v1864_v62, %v1389_v52  ;;  %v1891_v43 = vmax.f32 %v1890_v37, %v1502_v40  ;;  %v1391_v12 = vpop.f32.mrb[10].mxu1  ;;  %v1504_v55 = vpop.f32.mrb[58].mxu0  ;;  %v6861_v52 = vld [vmem:[%s7001_s7] sm:$0xff] }
 0x33a   :  { %v1853_v28 = vmax.f32 %v1852_v50, %v1391_v12  ;;  %v1879_v41 = vmax.f32 %v1878_v51, %v1504_v55  ;;  %v1393_v46 = vpop.f32.mrb[11].mxu1  ;;  %v1506_v56 = vpop.f32.mrb[59].mxu0 }
 0x33b   :  { %v1866_v49 = vmax.f32 %v1865_v5, %v1393_v46  ;;  %v1892_v59 = vmax.f32 %v1891_v43, %v1506_v56  ;;  %v2203_v46 = vrot.slane %v6849_v21, %v6852_v44 }
 0x33f   :  { %v1397_v63 = vpop.f32.mrb[12].mxu1  ;;  %v1510_v0 = vpop.f32.mrb[60].mxu0 }
 0x340   :  { %v1854_v2 = vmax.f32 %v1853_v28, %v1397_v63  ;;  %v1880_v3 = vmax.f32 %v1879_v41, %v1510_v0  ;;  %v1399_v6 = vpop.f32.mrb[13].mxu1  ;;  %v1512_v8 = vpop.f32.mrb[61].mxu0  ;;  %v2199_v41 = vrot.slane %v6849_v21, %v6489_v27  ;;  %v2267_v63 = vrot.slane %v6861_v52, %v6492_v29 }
 0x341   :  { %v1867_v47 = vmax.f32 %v1866_v49, %v1399_v6  ;;  %v1893_v61 = vmax.f32 %v1892_v59, %v1512_v8  ;;  %v1401_v9 = vpop.f32.mrb[14].mxu1  ;;  %v1514_v58 = vpop.f32.mrb[62].mxu0  ;;  %v2263_v59 = vrot.slane %v6861_v52, %v6495_v30  ;;  %v2275_v6 = vrot.slane %v6861_v52, %v6852_v44 }
 0x342   :  { %v1855_v38 = vmax.f32 %v1854_v2, %v1401_v9  ;;  %v1881_v57 = vmax.f32 %v1880_v3, %v1514_v58  ;;  %v1403_v60 = vpop.f32.mrb[15].mxu1  ;;  %v1516_v10 = vpop.f32.mrb[63].mxu0  ;;  %v2271_v3 = vrot.slane %v6861_v52, %v6489_v27  ;;  %v2220_v58 = vcombine.low %v2191_v20, %v2195_v53 }
 0x343   :  { %v1868_v11 = vmax.f32 %v1867_v47, %v1403_v60  ;;  %v1894_v34 = vmax.f32 %v1893_v61, %v1516_v10 }
 0x344   :  { %v1856_v35 = vrot.slane %v1855_v38, 4  ;;  %v1882_v62 = vrot.slane %v1881_v57, 4  ;;  %v2228_v20 = vrot.slane %v2220_v58, %v6833_v45 }
 0x345   :  { %v1869_v13 = vrot.slane %v1868_v11, 4  ;;  %v1895_v14 = vrot.slane %v1894_v34, 4 }
 0x346   :  { %v1857_v16 = vmax.f32 %v1855_v38, %v1856_v35  ;;  %v1883_v18 = vmax.f32 %v1881_v57, %v1882_v62  ;;  %v2221_v38 = vcombine.low %v2199_v41, %v2203_v46 }
 0x347   :  { %v1870_v23 = vmax.f32 %v1868_v11, %v1869_v13  ;;  %v1896_v33 = vmax.f32 %v1894_v34, %v1895_v14  ;;  %v1553_v36 = vpop.f32.mrb[16].mxu1  ;;  %v1666_v42 = vpop.f32.mrb[64].mxu0 }
 0x348   :  { %v1858_v39 = vrot.slane %v1857_v16, 2  ;;  %v1884_v26 = vrot.slane %v1883_v18, 2  ;;  %v1555_v22 = vpop.f32.mrb[17].mxu1  ;;  %v1668_v17 = vpop.f32.mrb[65].mxu0  ;;  %v2235_v53 = vrot.slane %v2221_v38, %v6833_v45 }
 0x349   :  { %v1871_v24 = vrot.slane %v1870_v23, 2  ;;  %v1897_v19 = vrot.slane %v1896_v33, 2  ;;  %v1557_v32 = vpop.f32.mrb[18].mxu1  ;;  %v1670_v48 = vpop.f32.mrb[66].mxu0 }
 0x34a   :  { %v1859_v54 = vmax.f32 %v1857_v16, %v1858_v39  ;;  %v1885_v37 = vmax.f32 %v1883_v18, %v1884_v26  ;;  %v1797_v15 = vmax.f32 %v1553_v36, %v1557_v32  ;;  %v1823_v31 = vmax.f32 %v1666_v42, %v1670_v48  ;;  %v1559_v50 = vpop.f32.mrb[19].mxu1  ;;  %v1672_v51 = vpop.f32.mrb[67].mxu0 }
 0x34b   :  { %v1872_v40 = vmax.f32 %v1870_v23, %v1871_v24  ;;  %v1898_v5 = vmax.f32 %v1896_v33, %v1897_v19  ;;  %v1810_v43 = vmax.f32 %v1555_v22, %v1559_v50  ;;  %v1836_v12 = vmax.f32 %v1668_v17, %v1672_v51 }
 0x34c   :  { %v1860_v55 = vrot.slane %v1859_v54, 1  ;;  %v1886_v28 = vrot.slane %v1885_v37, 1  ;;  %v2292_v42 = vcombine.low %v2263_v59, %v2267_v63  ;;  %v2293_v39 = vcombine.low %v2271_v3, %v2275_v6 }
 0x34d   :  { %v1873_v56 = vrot.slane %v1872_v40, 1  ;;  %v1899_v49 = vrot.slane %v1898_v5, 1 }
 0x34e   :  { %v1861_v0 = vmax.f32 %v1859_v54, %v1860_v55  ;;  %v1887_v2 = vmax.f32 %v1885_v37, %v1886_v28  ;;  %v2300_v37 = vrot.slane %v2292_v42, %v6833_v45 }
 0x34f   :  { %v1874_v8 = vmax.f32 %v1872_v40, %v1873_v56  ;;  %v1900_v47 = vmax.f32 %v1898_v5, %v1899_v49  ;;  %v1563_v61 = vpop.f32.mrb[20].mxu1  ;;  %v1676_v9 = vpop.f32.mrb[68].mxu0 }
 0x350   :  { %v1798_v57 = vmax.f32 %v1797_v15, %v1563_v61  ;;  %v1824_v60 = vmax.f32 %v1823_v31, %v1676_v9  ;;  %v1565_v10 = vpop.f32.mrb[21].mxu1  ;;  %v1678_v11 = vpop.f32.mrb[69].mxu0  ;;  %v2307_v15 = vrot.slane %v2293_v39, %v6833_v45 }
 0x351   :  { %v2007_v34 = vcombine.low %v1861_v0, %v1874_v8  ;;  %v2008_v35 = vcombine.low %v1887_v2, %v1900_v47  ;;  %v1811_v62 = vmax.f32 %v1810_v43, %v1565_v10  ;;  %v1837_v13 = vmax.f32 %v1836_v12, %v1678_v11  ;;  %v1567_v14 = vpop.f32.mrb[22].mxu1  ;;  %v1680_v16 = vpop.f32.mrb[70].mxu0 }
 0x352   :  { %v1799_v18 = vmax.f32 %v1798_v57, %v1567_v14  ;;  %v1825_v23 = vmax.f32 %v1824_v60, %v1680_v16  ;;  %v1569_v33 = vpop.f32.mrb[23].mxu1  ;;  %v1682_v36 = vpop.f32.mrb[71].mxu0  ;;  %v2236_v43 = vcombine.low %v2228_v20, %v2235_v53  ;;  %v2308_v6 = vcombine.low %v2300_v37, %v2307_v15 }
 0x353   :  { %v2015_v26 = vrot.slane %v2007_v34, %v6833_v45  ;;  %v2022_v22 = vrot.slane %v2008_v35, %v6833_v45  ;;  %v1812_v17 = vmax.f32 %v1811_v62, %v1569_v33  ;;  %v1838_v24 = vmax.f32 %v1837_v13, %v1682_v36 }
 0x355   :  { %v2023_v19 = vcombine.low %v2015_v26, %v2022_v22 }
 0x357   :  { %v2045_v32 = vrot.slane %v2023_v19, 7  ;;  %v1573_v48 = vpop.f32.mrb[24].mxu1  ;;  %v1686_v54 = vpop.f32.mrb[72].mxu0 }
 0x358   :  { %v1800_v31 = vmax.f32 %v1799_v18, %v1573_v48  ;;  %v1826_v50 = vmax.f32 %v1825_v23, %v1686_v54  ;;  %v1575_v51 = vpop.f32.mrb[25].mxu1  ;;  %v1688_v40 = vpop.f32.mrb[73].mxu0 }
 0x359   :  { %v2047_v5 = vsel %vm2046_vm1, %v2045_v32, %v1989_v1  ;;  %v1813_v12 = vmax.f32 %v1812_v17, %v1575_v51  ;;  %v1839_v55 = vmax.f32 %v1838_v24, %v1688_v40  ;;  %v1577_v28 = vpop.f32.mrb[26].mxu1  ;;  %v1690_v41 = vpop.f32.mrb[74].mxu0 }
 0x35a   :  { %v2049_v46 = vsel %vm2048_vm2, %v2045_v32, %v2047_v5  ;;  %v1801_v56 = vmax.f32 %v1800_v31, %v1577_v28  ;;  %v1827_v49 = vmax.f32 %v1826_v50, %v1690_v41  ;;  %v1579_v59 = vpop.f32.mrb[27].mxu1  ;;  %v1692_v63 = vpop.f32.mrb[75].mxu0 }
 0x35b   :  { %v2051_v0 = vsel %vm2050_vm3, %v2045_v32, %v2049_v46  ;;  %v1814_v2 = vmax.f32 %v1813_v12, %v1579_v59  ;;  %v1840_v3 = vmax.f32 %v1839_v55, %v1692_v63 }
 0x35c   :  { %v2053_v7 = vsel %vm2052_vm4, %v2045_v32, %v2051_v0 }
 0x35d   :  { %v2256_v4 = vmul.f32 %v2236_v43, %v2053_v7 }
 0x35f   :  { %v1583_v1 = vpop.f32.mrb[28].mxu1  ;;  %v1696_v8 = vpop.f32.mrb[76].mxu0  ;;  %v6888_v47 = vadd.f32 %v2308_v6, %v2256_v4 }
 0x360   :  { %v1802_v61 = vmax.f32 %v1801_v56, %v1583_v1  ;;  %v1828_v9 = vmax.f32 %v1827_v49, %v1696_v8  ;;  %v1585_v58 = vpop.f32.mrb[29].mxu1  ;;  %v1698_v38 = vpop.f32.mrb[77].mxu0 }
 0x361   :  { %v1815_v57 = vmax.f32 %v1814_v2, %v1585_v58  ;;  %v1841_v60 = vmax.f32 %v1840_v3, %v1698_v38  ;;  %v1587_v10 = vpop.f32.mrb[30].mxu1  ;;  %v1700_v11 = vpop.f32.mrb[78].mxu0  ;;  %v2332_v34 = vmul.f32 0.044715, %v6888_v47 }
 0x362   :  { %v1803_v35 = vmax.f32 %v1802_v61, %v1587_v10  ;;  %v1829_v62 = vmax.f32 %v1828_v9, %v1700_v11  ;;  %v1589_v13 = vpop.f32.mrb[31].mxu1  ;;  %v1702_v14 = vpop.f32.mrb[79].mxu0 }
 0x363   :  { %v1816_v16 = vmax.f32 %v1815_v57, %v1589_v13  ;;  %v1842_v18 = vmax.f32 %v1841_v60, %v1702_v14  ;;  %v2334_v23 = vmul.f32 %v2332_v34, %v6888_v47 }
 0x364   :  { %v1804_v33 = vrot.slane %v1803_v35, 4  ;;  %v1830_v36 = vrot.slane %v1829_v62, 4 }
 0x365   :  { %v1817_v42 = vrot.slane %v1816_v16, 4  ;;  %v1843_v39 = vrot.slane %v1842_v18, 4  ;;  %v2336_v26 = vmul.f32 %v2334_v23, %v6888_v47 }
 0x366   :  { %v1805_v22 = vmax.f32 %v1803_v35, %v1804_v33  ;;  %v1831_v17 = vmax.f32 %v1829_v62, %v1830_v36 }
 0x367   :  { %v1818_v24 = vmax.f32 %v1816_v16, %v1817_v42  ;;  %v1844_v19 = vmax.f32 %v1842_v18, %v1843_v39  ;;  %v1593_v20 = vpop.f32.mrb[32].mxu1  ;;  %v1706_v53 = vpop.f32.mrb[80].mxu0  ;;  %v2338_v32 = vadd.f32 %v2336_v26, %v6888_v47 }
 0x368   :  { %v1806_v48 = vrot.slane %v1805_v22, 2  ;;  %v1832_v54 = vrot.slane %v1831_v17, 2  ;;  %v1595_v37 = vpop.f32.mrb[33].mxu1  ;;  %v1708_v15 = vpop.f32.mrb[81].mxu0 }
 0x369   :  { %v1819_v31 = vrot.slane %v1818_v24, 2  ;;  %v1845_v50 = vrot.slane %v1844_v19, 2  ;;  %v1597_v51 = vpop.f32.mrb[34].mxu1  ;;  %v1710_v40 = vpop.f32.mrb[82].mxu0  ;;  %v2340_v5 = vmul.f32 0.7978846, %v2338_v32 }
 0x36a   :  { %v1807_v43 = vmax.f32 %v1805_v22, %v1806_v48  ;;  %v1833_v12 = vmax.f32 %v1831_v17, %v1832_v54  ;;  %v1901_v55 = vmax.f32 %v1593_v20, %v1597_v51  ;;  %v1927_v28 = vmax.f32 %v1706_v53, %v1710_v40  ;;  %v1599_v41 = vpop.f32.mrb[35].mxu1  ;;  %v1712_v46 = vpop.f32.mrb[83].mxu0 }
 0x36b   :  { %v1820_v56 = vmax.f32 %v1818_v24, %v1819_v31  ;;  %v1846_v49 = vmax.f32 %v1844_v19, %v1845_v50  ;;  %v1914_v59 = vmax.f32 %v1595_v37, %v1599_v41  ;;  %v1940_v63 = vmax.f32 %v1708_v15, %v1712_v46 }
 0x36c   :  { %v1808_v0 = vrot.slane %v1807_v43, 1  ;;  %v1834_v2 = vrot.slane %v1833_v12, 1  ;;  %6123 = vtanh.f32 %v2340_v5  ;;  %v2330_v19 = vmul.f32 0.5, %v6888_v47 }
 0x36d   :  { %v1821_v3 = vrot.slane %v1820_v56, 1  ;;  %v1847_v6 = vrot.slane %v1846_v49, 1 }
 0x36e   :  { %v1809_v7 = vmax.f32 %v1807_v43, %v1808_v0  ;;  %v1835_v4 = vmax.f32 %v1833_v12, %v1834_v2  ;;  %v5675_v0 = vld [vmem:[#allocation6 + $0x200] ss:$16 sps:$4 sm:$0xff]   ;;  %v5678_v2 = vld [vmem:[#allocation6 + $0x208] ss:$16 sps:$4 sm:$0xff]  }
 0x36f   :  { %v1822_v1 = vmax.f32 %v1820_v56, %v1821_v3  ;;  %v1848_v8 = vmax.f32 %v1846_v49, %v1847_v6  ;;  %v1603_v61 = vpop.f32.mrb[36].mxu1  ;;  %v1716_v9 = vpop.f32.mrb[84].mxu0 }
 0x370   :  { %v1902_v58 = vmax.f32 %v1901_v55, %v1603_v61  ;;  %v1928_v38 = vmax.f32 %v1927_v28, %v1716_v9  ;;  %v1605_v57 = vpop.f32.mrb[37].mxu1  ;;  %v1718_v60 = vpop.f32.mrb[85].mxu0 }
 0x371   :  { %v1990_v10 = vcombine.low %v1809_v7, %v1822_v1  ;;  %v1991_v11 = vcombine.low %v1835_v4, %v1848_v8  ;;  %v1915_v34 = vmax.f32 %v1914_v59, %v1605_v57  ;;  %v1941_v35 = vmax.f32 %v1940_v63, %v1718_v60  ;;  %v1607_v62 = vpop.f32.mrb[38].mxu1  ;;  %v1720_v13 = vpop.f32.mrb[86].mxu0  ;;  %v5683_v60 = vld [vmem:[#allocation6 + $0x224] ss:$16 sps:$4 sm:$0xff]  }
 0x372   :  { %v1903_v14 = vmax.f32 %v1902_v58, %v1607_v62  ;;  %v1929_v16 = vmax.f32 %v1928_v38, %v1720_v13  ;;  %v1609_v18 = vpop.f32.mrb[39].mxu1  ;;  %v1722_v23 = vpop.f32.mrb[87].mxu0 }
 0x373   :  { %v6895_v33 = vrot.slane %v1990_v10, %v6833_v45  ;;  %v6898_v36 = vrot.slane %v1991_v11, %v6833_v45  ;;  %v1916_v42 = vmax.f32 %v1915_v34, %v1609_v18  ;;  %v1942_v39 = vmax.f32 %v1941_v35, %v1722_v23  ;;  %v5686_v10 = vld [vmem:[#allocation6 + $0x22c] ss:$16 sps:$4 sm:$0xff]   ;;  %v5684_v18 = vld [vmem:[#allocation6 + $0x228] ss:$16 sps:$4 sm:$0xff]  }
 0x375   :  { %v2006_v26 = vcombine.low %v6895_v33, %v6898_v36  ;;  %v5723_v33 = vld [vmem:[#allocation6 + $0x300] ss:$16 sps:$4 sm:$0xff]   ;;  %v5726_v36 = vld [vmem:[#allocation6 + $0x308] ss:$16 sps:$4 sm:$0xff]  }
 0x376   :  { %v6124_v22 = vpop.eup %6123 }
 0x377   :  { %v1613_v17 = vpop.f32.mrb[40].mxu1  ;;  %v1726_v24 = vpop.f32.mrb[88].mxu0  ;;  %v2344_v20 = vadd.f32 1.0, %v6124_v22  ;;  %v5692_v22 = vld [vmem:[#allocation6 + $0x24c] ss:$16 sps:$4 sm:$0xff]  }
 0x378   :  { %v1904_v53 = vmax.f32 %v1903_v14, %v1613_v17  ;;  %v1930_v32 = vmax.f32 %v1929_v16, %v1726_v24  ;;  %v1615_v48 = vpop.f32.mrb[41].mxu1  ;;  %v1728_v54 = vpop.f32.mrb[89].mxu0  ;;  %v5681_v16 = vld [vmem:[#allocation6 + $0x220] ss:$16 sps:$4 sm:$0xff]  }
 0x379   :  { %v1917_v37 = vmax.f32 %v1916_v42, %v1615_v48  ;;  %v1943_v15 = vmax.f32 %v1942_v39, %v1728_v54  ;;  %v1617_v31 = vpop.f32.mrb[42].mxu1  ;;  %v1730_v50 = vpop.f32.mrb[90].mxu0  ;;  %v2346_v51 = vmul.f32 %v2344_v20, %v2330_v19  ;;  %v5689_v39 = vld [vmem:[#allocation6 + $0x244] ss:$16 sps:$4 sm:$0xff]   ;;  %v2206_v54 = vsub.s32 4, %v6486_v25 }
 0x37a   :  { %v1905_v40 = vmax.f32 %v1904_v53, %v1617_v31  ;;  %v1931_v5 = vmax.f32 %v1930_v32, %v1730_v50  ;;  %v1619_v43 = vpop.f32.mrb[43].mxu1  ;;  %v1732_v12 = vpop.f32.mrb[91].mxu0  ;;  %v5687_v53 = vld [vmem:[#allocation6 + $0x240] ss:$16 sps:$4 sm:$0xff]  }
 0x37b   :  { %v1918_v55 = vmax.f32 %v1917_v37, %v1619_v43  ;;  %v1944_v28 = vmax.f32 %v1943_v15, %v1732_v12  ;;  %v2357_v41 = vrot.slane %v2346_v51, %v6833_v45  ;;  %v2350_v46 = vcombine.high %v2346_v51, %v2346_v51  ;;  %v5690_v37 = vld [vmem:[#allocation6 + $0x248] ss:$16 sps:$4 sm:$0xff]   ;;  %v5695_v15 = vld [vmem:[#allocation6 + $0x264] ss:$16 sps:$4 sm:$0xff]  }
 0x37c   :  { %v2210_v51 = vsub.s32 5, %v6486_v25 }
 0x37d   :  { %v2365_v47 = vcombine.high %v2357_v41, %v2357_v41  ;;  %v6905_v56 = vrot.slane %v2350_v46, %v6833_v45  ;;  %v2392_v8 = vpack.c.bf16 %v2357_v41, %v2357_v41 }
 0x37f   :  { %v1623_v49 = vpop.f32.mrb[44].mxu1  ;;  %v1736_v59 = vpop.f32.mrb[92].mxu0  ;;  %v2393_v63 = vpack.c.bf16 %v2365_v47, %v2365_v47  ;;  %v2366_v3 = vcombine.high %v6905_v56, %v6905_v56 }
 0x380   :  { %v1906_v6 = vmax.f32 %v1905_v40, %v1623_v49  ;;  %v1932_v7 = vmax.f32 %v1931_v5, %v1736_v59  ;;  %v1625_v4 = vpop.f32.mrb[45].mxu1  ;;  %v1738_v1 = vpop.f32.mrb[93].mxu0  ;;  %v2214_v40 = vsub.s32 6, %v6486_v25  ;;  %v5698_v5 = vld [vmem:[#allocation6 + $0x26c] ss:$16 sps:$4 sm:$0xff]   ;;  %v2207_v49 = vrot.slane %v6849_v21, %v2206_v54 }
 0x381   :  { %v1919_v61 = vmax.f32 %v1918_v55, %v1625_v4  ;;  %v1945_v9 = vmax.f32 %v1944_v28, %v1738_v1  ;;  %3990 = vmatprep.mubr.bf16.mxu1 %v2393_v63  ;;  %4154 = vmatprep.mubr.bf16.mxu0 %v2393_v63  ;;  %v1627_v58 = vpop.f32.mrb[46].mxu1  ;;  %v1740_v38 = vpop.f32.mrb[94].mxu0  ;;  %v2395_v57 = vpack.c.bf16 %v2366_v3, %v2366_v3  ;;  %v2218_v55 = vsub.s32 7, %v6486_v25  ;;  %v5693_v59 = vld [vmem:[#allocation6 + $0x260] ss:$16 sps:$4 sm:$0xff]  }
 0x382   :  { %v1907_v11 = vmax.f32 %v1906_v6, %v1627_v58  ;;  %v1933_v34 = vmax.f32 %v1932_v7, %v1740_v38  ;;  %3991 = vmatmul.mubr.bf16.vlgmr.msra.gmra.mrb[48].mxu1 %v2392_v8  ;;  %4155 = vmatmul.mubr.bf16.vlgmr.msra.gmra.mrb[96].mxu0 %v2392_v8  ;;  %v1629_v35 = vpop.f32.mrb[47].mxu1  ;;  %v1742_v62 = vpop.f32.mrb[95].mxu0  ;;  %v5696_v63 = vld [vmem:[#allocation6 + $0x268] ss:$16 sps:$4 sm:$0xff]   ;;  %v2211_v3 = vrot.slane %v6849_v21, %v2210_v51  ;;  %v5701_v7 = vld [vmem:[#allocation6 + $0x284] ss:$16 sps:$4 sm:$0xff]  }
 0x383   :  { %4000 = vmatpush1.bf16.msra.mxu1 %v5675_v0  ;;  %4164 = vmatpush1.bf16.msra.mxu0 %v5678_v2  ;;  %v1920_v13 = vmax.f32 %v1919_v61, %v1629_v35  ;;  %v1946_v14 = vmax.f32 %v1945_v9, %v1742_v62  ;;  %v2215_v6 = vrot.slane %v6849_v21, %v2214_v40  ;;  %v5704_v4 = vld [vmem:[#allocation6 + $0x28c] ss:$16 sps:$4 sm:$0xff]   ;;  %v5702_v35 = vld [vmem:[#allocation6 + $0x288] ss:$16 sps:$4 sm:$0xff]  }
 0x384   :  { %v1908_v23 = vrot.slane %v1907_v11, 4  ;;  %v1934_v42 = vrot.slane %v1933_v34, 4  ;;  %4031 = vmatprep.mubr.bf16.mxu1 %v2395_v57  ;;  %4195 = vmatprep.mubr.bf16.mxu0 %v2395_v57  ;;  %v2219_v61 = vrot.slane %v6849_v21, %v2218_v55  ;;  %v2279_v9 = vrot.slane %v6861_v52, %v2206_v54  ;;  %v5710_v21 = vld [vmem:[#allocation6 + $0x2ac] ss:$16 sps:$4 sm:$0xff]  }
 0x385   :  { %v1921_v17 = vrot.slane %v1920_v13, 4  ;;  %v1947_v24 = vrot.slane %v1946_v14, 4  ;;  %4001 = vmatprep.subr.bf16.mxu1 %v5683_v60  ;;  %4165 = vmatprep.subr.bf16.mxu0 %v5686_v10  ;;  %v2283_v57 = vrot.slane %v6861_v52, %v2210_v51  ;;  %v2287_v60 = vrot.slane %v6861_v52, %v2214_v40  ;;  %v5719_v51 = vld [vmem:[#allocation6 + $0x2e4] ss:$16 sps:$4 sm:$0xff]   ;;  %v5722_v40 = vld [vmem:[#allocation6 + $0x2ec] ss:$16 sps:$4 sm:$0xff]  }
 0x386   :  { %v1909_v19 = vmax.f32 %v1907_v11, %v1908_v23  ;;  %v1935_v20 = vmax.f32 %v1933_v34, %v1934_v42  ;;  %v5699_v34 = vld [vmem:[#allocation6 + $0x280] ss:$16 sps:$4 sm:$0xff]   ;;  %v2291_v62 = vrot.slane %v6861_v52, %v2218_v55  ;;  %v2238_v23 = vcombine.low %v2215_v6, %v2219_v61  ;;  %v5713_v52 = vld [vmem:[#allocation6 + $0x2c4] ss:$16 sps:$4 sm:$0xff]  }
 0x387   :  { %v1922_v32 = vmax.f32 %v1920_v13, %v1921_v17  ;;  %v1948_v48 = vmax.f32 %v1946_v14, %v1947_v24  ;;  %4002 = vmatpush1.bf16.msra.mxu1 %v5681_v16  ;;  %4166 = vmatpush1.bf16.msra.mxu0 %v5684_v18  ;;  %v5707_v13 = vld [vmem:[#allocation6 + $0x2a4] ss:$16 sps:$4 sm:$0xff]   ;;  %v2237_v18 = vcombine.low %v2207_v49, %v2211_v3  ;;  %v5705_v17 = vld [vmem:[#allocation6 + $0x2a0] ss:$16 sps:$4 sm:$0xff]   ;;  %v5708_v24 = vld [vmem:[#allocation6 + $0x2a8] ss:$16 sps:$4 sm:$0xff]  }
 0x388   :  { %v1910_v31 = vrot.slane %v1909_v19, 2  ;;  %v1936_v50 = vrot.slane %v1935_v20, 2  ;;  %4003 = vmatprep.subr.bf16.mxu1 %v5689_v39  ;;  %4167 = vmatprep.subr.bf16.mxu0 %v5692_v22  ;;  %v2309_v42 = vcombine.low %v2279_v9, %v2283_v57  ;;  %v5725_v49 = vld [vmem:[#allocation6 + $0x304] ss:$16 sps:$4 sm:$0xff]   ;;  %v5729_v6 = vld [vmem:[#allocation6 + $0x320] ss:$16 sps:$4 sm:$0xff]  }
 0x389   :  { %v1923_v43 = vrot.slane %v1922_v32, 2  ;;  %v1949_v12 = vrot.slane %v1948_v48, 2  ;;  %v5735_v9 = vld [vmem:[#allocation6 + $0x340] ss:$16 sps:$4 sm:$0xff]   ;;  %v5743_v57 = vld [vmem:[#allocation6 + $0x364] ss:$16 sps:$4 sm:$0xff]  }
 0x38a   :  { %v1911_v28 = vmax.f32 %v1909_v19, %v1910_v31  ;;  %v1937_v41 = vmax.f32 %v1935_v20, %v1936_v50  ;;  %v2310_v19 = vcombine.low %v2287_v60, %v2291_v62  ;;  %v5716_v20 = vld [vmem:[#allocation6 + $0x2cc] ss:$16 sps:$4 sm:$0xff]   ;;  %v2317_v31 = vrot.slane %v2309_v42, %v6833_v45  ;;  %v5761_v42 = vld [vmem:[#allocation6 + $0x3c4] ss:$16 sps:$4 sm:$0xff]  }
 0x38b   :  { %v1924_v46 = vmax.f32 %v1922_v32, %v1923_v43  ;;  %v1950_v47 = vmax.f32 %v1948_v48, %v1949_v12  ;;  %4004 = vmatpush1.bf16.msra.mxu1 %v5687_v53  ;;  %4168 = vmatpush1.bf16.msra.mxu0 %v5690_v37  ;;  %v2245_v32 = vrot.slane %v2237_v18, %v6833_v45  ;;  %v5711_v37 = vld [vmem:[#allocation6 + $0x2c0] ss:$16 sps:$4 sm:$0xff]   ;;  %v5746_v60 = vld [vmem:[#allocation6 + $0x36c] ss:$16 sps:$4 sm:$0xff]  }
 0x38c   :  { %v1912_v0 = vrot.slane %v1911_v28, 1  ;;  %v1938_v2 = vrot.slane %v1937_v41, 1  ;;  %4005 = vmatprep.subr.bf16.mxu1 %v5695_v15  ;;  %4169 = vmatprep.subr.bf16.mxu0 %v5698_v5  ;;  %v2252_v48 = vrot.slane %v2238_v23, %v6833_v45  ;;  %v5714_v15 = vld [vmem:[#allocation6 + $0x2c8] ss:$16 sps:$4 sm:$0xff]   ;;  %v2324_v50 = vrot.slane %v2310_v19, %v6833_v45  ;;  %v5752_v62 = vld [vmem:[#allocation6 + $0x38c] ss:$16 sps:$4 sm:$0xff]  }
 0x38d   :  { %v1925_v1 = vrot.slane %v1924_v46, 1  ;;  %v1951_v8 = vrot.slane %v1950_v47, 1  ;;  %v5753_v18 = vld [vmem:[#allocation6 + $0x3a0] ss:$16 sps:$4 sm:$0xff]   ;;  %v5756_v23 = vld [vmem:[#allocation6 + $0x3a8] ss:$16 sps:$4 sm:$0xff]  }
 0x38e   :  { %v1913_v58 = vmax.f32 %v1911_v28, %v1912_v0  ;;  %v1939_v38 = vmax.f32 %v1937_v41, %v1938_v2  ;;  %v2253_v43 = vcombine.low %v2245_v32, %v2252_v48  ;;  %v5717_v28 = vld [vmem:[#allocation6 + $0x2e0] ss:$16 sps:$4 sm:$0xff]   ;;  %v5720_v41 = vld [vmem:[#allocation6 + $0x2e8] ss:$16 sps:$4 sm:$0xff]   ;;  %v5731_v0 = vld [vmem:[#allocation6 + $0x324] ss:$16 sps:$4 sm:$0xff]  }
 0x38f   :  { %v1926_v10 = vmax.f32 %v1924_v46, %v1925_v1  ;;  %v1952_v11 = vmax.f32 %v1950_v47, %v1951_v8  ;;  %4006 = vmatpush1.bf16.msra.mxu1 %v5693_v59  ;;  %4170 = vmatpush1.bf16.msra.mxu0 %v5696_v63  ;;  %v2325_v46 = vcombine.low %v2317_v31, %v2324_v50  ;;  %v5728_v59 = vld [vmem:[#allocation6 + $0x30c] ss:$16 sps:$4 sm:$0xff]   ;;  %v5737_v1 = vld [vmem:[#allocation6 + $0x344] ss:$16 sps:$4 sm:$0xff]   ;;  %v5759_v19 = vld [vmem:[#allocation6 + $0x3c0] ss:$16 sps:$4 sm:$0xff]  }
 0x390   :  { %4007 = vmatprep.subr.bf16.mxu1 %v5701_v7  ;;  %4171 = vmatprep.subr.bf16.mxu0 %v5704_v4  ;;  %v5734_v2 = vld [vmem:[#allocation6 + $0x32c] ss:$16 sps:$4 sm:$0xff]   ;;  %v5732_v7 = vld [vmem:[#allocation6 + $0x328] ss:$16 sps:$4 sm:$0xff]  }
 0x391   :  { %v2024_v14 = vcombine.low %v1913_v58, %v1926_v10  ;;  %v2025_v16 = vcombine.low %v1939_v38, %v1952_v11  ;;  %v5740_v8 = vld [vmem:[#allocation6 + $0x34c] ss:$16 sps:$4 sm:$0xff]   ;;  %v5738_v58 = vld [vmem:[#allocation6 + $0x348] ss:$16 sps:$4 sm:$0xff]   ;;  %v5741_v11 = vld [vmem:[#allocation6 + $0x360] ss:$16 sps:$4 sm:$0xff]  }
 0x392   :  { %v5776_v31 = vld [vmem:[#allocation6 + $0x40c] ss:$16 sps:$4 sm:$0xff]  }
 0x393   :  { %v2032_v39 = vrot.slane %v2024_v14, %v6833_v45  ;;  %v2039_v22 = vrot.slane %v2025_v16, %v6833_v45  ;;  %4008 = vmatpush1.bf16.msra.mxu1 %v5699_v34  ;;  %4172 = vmatpush1.bf16.msra.mxu0 %v5702_v35  ;;  %v5744_v34 = vld [vmem:[#allocation6 + $0x368] ss:$16 sps:$4 sm:$0xff]   ;;  %v5749_v35 = vld [vmem:[#allocation6 + $0x384] ss:$16 sps:$4 sm:$0xff]   ;;  %v5758_v16 = vld [vmem:[#allocation6 + $0x3ac] ss:$16 sps:$4 sm:$0xff]  }
 0x394   :  { %4009 = vmatprep.subr.bf16.mxu1 %v5707_v13  ;;  %4173 = vmatprep.subr.bf16.mxu0 %v5710_v21  ;;  %v5747_v13 = vld [vmem:[#allocation6 + $0x380] ss:$16 sps:$4 sm:$0xff]   ;;  %v5750_v21 = vld [vmem:[#allocation6 + $0x388] ss:$16 sps:$4 sm:$0xff]   ;;  %v5755_v14 = vld [vmem:[#allocation6 + $0x3a4] ss:$16 sps:$4 sm:$0xff]  }
 0x395   :  { %v2040_v53 = vcombine.low %v2032_v39, %v2039_v22  ;;  %v5764_v39 = vld [vmem:[#allocation6 + $0x3cc] ss:$16 sps:$4 sm:$0xff]  }
 0x397   :  { %v2056_v54 = vrot.slane %v2040_v53, 7  ;;  %4010 = vmatpush1.bf16.msra.mxu1 %v5705_v17  ;;  %4174 = vmatpush1.bf16.msra.mxu0 %v5708_v24  ;;  %v5770_v53 = vld [vmem:[#allocation6 + $0x3ec] ss:$16 sps:$4 sm:$0xff]  }
 0x398   :  { %4011 = vmatprep.subr.bf16.mxu1 %v5713_v52  ;;  %4175 = vmatprep.subr.bf16.mxu0 %v5716_v20  ;;  %v5762_v52 = vld [vmem:[#allocation6 + $0x3c8] ss:$16 sps:$4 sm:$0xff]   ;;  %v5767_v20 = vld [vmem:[#allocation6 + $0x3e4] ss:$16 sps:$4 sm:$0xff]  }
 0x399   :  { %v2057_v5 = vsel %vm2046_vm1, %v2056_v54, %v2006_v26 }
 0x39a   :  { %v2058_v12 = vsel %vm2048_vm2, %v2056_v54, %v2057_v5  ;;  %v2394_v5 = vpack.c.bf16 %v6905_v56, %v6905_v56  ;;  %v5786_v56 = vld [vmem:[#allocation6 + $0x448] ss:$16 sps:$4 sm:$0xff]  }
 0x39b   :  { %v2059_v55 = vsel %vm2050_vm3, %v2056_v54, %v2058_v12  ;;  %4012 = vmatpush1.bf16.msra.mxu1 %v5711_v37  ;;  %4176 = vmatpush1.bf16.msra.mxu0 %v5714_v15  ;;  %v5768_v37 = vld [vmem:[#allocation6 + $0x3e8] ss:$16 sps:$4 sm:$0xff]   ;;  %v5773_v15 = vld [vmem:[#allocation6 + $0x404] ss:$16 sps:$4 sm:$0xff]  }
 0x39c   :  { %v2060_v47 = vsel %vm2052_vm4, %v2056_v54, %v2059_v55  ;;  %4013 = vmatprep.subr.bf16.mxu1 %v5719_v51  ;;  %4177 = vmatprep.subr.bf16.mxu0 %v5722_v40  ;;  %v5765_v54 = vld [vmem:[#allocation6 + $0x3e0] ss:$16 sps:$4 sm:$0xff]   ;;  %v5779_v12 = vld [vmem:[#allocation6 + $0x424] ss:$16 sps:$4 sm:$0xff]   ;;  %v5782_v55 = vld [vmem:[#allocation6 + $0x42c] ss:$16 sps:$4 sm:$0xff]  }
 0x39d   :  { %v2257_v63 = vmul.f32 %v2253_v43, %v2060_v47  ;;  %v5771_v51 = vld [vmem:[#allocation6 + $0x400] ss:$16 sps:$4 sm:$0xff]   ;;  %v5774_v43 = vld [vmem:[#allocation6 + $0x408] ss:$16 sps:$4 sm:$0xff]   ;;  %v5788_v47 = vld [vmem:[#allocation6 + $0x44c] ss:$16 sps:$4 sm:$0xff]  }
 0x39f   :  { %4014 = vmatpush1.bf16.msra.mxu1 %v5717_v28  ;;  %4178 = vmatpush1.bf16.msra.mxu0 %v5720_v41  ;;  %v2329_v26 = vadd.f32 %v2325_v46, %v2257_v63  ;;  %v5777_v28 = vld [vmem:[#allocation6 + $0x420] ss:$16 sps:$4 sm:$0xff]   ;;  %v5780_v41 = vld [vmem:[#allocation6 + $0x428] ss:$16 sps:$4 sm:$0xff]   ;;  %v5785_v46 = vld [vmem:[#allocation6 + $0x444] ss:$16 sps:$4 sm:$0xff]  }
 0x3a0   :  { %4015 = vmatprep.subr.bf16.mxu1 %v5725_v49  ;;  %4179 = vmatprep.subr.bf16.mxu0 %v5728_v59  ;;  %v5783_v49 = vld [vmem:[#allocation6 + $0x440] ss:$16 sps:$4 sm:$0xff]   ;;  %v5791_v59 = vld [vmem:[#allocation6 + $0x464] ss:$16 sps:$4 sm:$0xff]   ;;  %v5794_v63 = vld [vmem:[#allocation6 + $0x46c] ss:$16 sps:$4 sm:$0xff]  }
 0x3a1   :  { %v2333_v3 = vmul.f32 0.044715, %v2329_v26  ;;  %v2331_v17 = vmul.f32 0.5, %v2329_v26 }
 0x3a3   :  { %4016 = vmatpush1.bf16.msra.mxu1 %v5723_v33  ;;  %4180 = vmatpush1.bf16.msra.mxu0 %v5726_v36  ;;  %v2335_v4 = vmul.f32 %v2333_v3, %v2329_v26  ;;  %v5789_v33 = vld [vmem:[#allocation6 + $0x460] ss:$16 sps:$4 sm:$0xff]   ;;  %v5792_v36 = vld [vmem:[#allocation6 + $0x468] ss:$16 sps:$4 sm:$0xff]  }
 0x3a4   :  { %4017 = vmatprep.subr.bf16.mxu1 %v5731_v0  ;;  %4181 = vmatprep.subr.bf16.mxu0 %v5734_v2  ;;  %v5800_v0 = vld [vmem:[#allocation6 + $0x48c] ss:$16 sps:$4 sm:$0xff]   ;;  %v5795_v2 = vld [vmem:[#allocation6 + $0x480] ss:$16 sps:$4 sm:$0xff]   ;;  %v5798_v3 = vld [vmem:[#allocation6 + $0x488] ss:$16 sps:$4 sm:$0xff]  }
 0x3a5   :  { %v2337_v61 = vmul.f32 %v2335_v4, %v2329_v26  ;;  %v5801_v4 = vld [vmem:[#allocation6 + $0x4a0] ss:$16 sps:$4 sm:$0xff]  }
 0x3a7   :  { %4018 = vmatpush1.bf16.msra.mxu1 %v5729_v6  ;;  %4182 = vmatpush1.bf16.msra.mxu0 %v5732_v7  ;;  %v2339_v38 = vadd.f32 %v2337_v61, %v2329_v26  ;;  %v5797_v26 = vld [vmem:[#allocation6 + $0x484] ss:$16 sps:$4 sm:$0xff]   ;;  %v5806_v7 = vld [vmem:[#allocation6 + $0x4ac] ss:$16 sps:$4 sm:$0xff]  }
 0x3a8   :  { %4019 = vmatprep.subr.bf16.mxu1 %v5737_v1  ;;  %4183 = vmatprep.subr.bf16.mxu0 %v5740_v8  ;;  %v5803_v6 = vld [vmem:[#allocation6 + $0x4a4] ss:$16 sps:$4 sm:$0xff]   ;;  %v5804_v1 = vld [vmem:[#allocation6 + $0x4a8] ss:$16 sps:$4 sm:$0xff]   ;;  %v5812_v61 = vld [vmem:[#allocation6 + $0x4cc] ss:$16 sps:$4 sm:$0xff]  }
 0x3a9   :  { %v2341_v10 = vmul.f32 0.7978846, %v2339_v38  ;;  %v5809_v8 = vld [vmem:[#allocation6 + $0x4c4] ss:$16 sps:$4 sm:$0xff]  }
 0x3aa   :  { %v5815_v38 = vld [vmem:[#allocation6 + $0x4e4] ss:$16 sps:$4 sm:$0xff]  }
 0x3ab   :  { %4020 = vmatpush1.bf16.msra.mxu1 %v5735_v9  ;;  %4184 = vmatpush1.bf16.msra.mxu0 %v5738_v58  ;;  %6125 = vtanh.f32 %v2341_v10  ;;  %v5807_v9 = vld [vmem:[#allocation6 + $0x4c0] ss:$16 sps:$4 sm:$0xff]   ;;  %v5810_v58 = vld [vmem:[#allocation6 + $0x4c8] ss:$16 sps:$4 sm:$0xff]  }
 0x3ac   :  { %4021 = vmatprep.subr.bf16.mxu1 %v5743_v57  ;;  %4185 = vmatprep.subr.bf16.mxu0 %v5746_v60  ;;  %v5818_v57 = vld [vmem:[#allocation6 + $0x4ec] ss:$16 sps:$4 sm:$0xff]   ;;  %v5813_v60 = vld [vmem:[#allocation6 + $0x4e0] ss:$16 sps:$4 sm:$0xff]   ;;  %v5816_v10 = vld [vmem:[#allocation6 + $0x4e8] ss:$16 sps:$4 sm:$0xff]  }
 0x3af   :  { %4022 = vmatpush1.bf16.msra.mxu1 %v5741_v11  ;;  %4186 = vmatpush1.bf16.msra.mxu0 %v5744_v34  ;;  %v5821_v11 = vld [vmem:[#allocation6 + $0x504] ss:$16 sps:$4 sm:$0xff]   ;;  %v5824_v34 = vld [vmem:[#allocation6 + $0x50c] ss:$16 sps:$4 sm:$0xff]  }
 0x3b0   :  { %4023 = vmatprep.subr.bf16.mxu1 %v5749_v35  ;;  %4187 = vmatprep.subr.bf16.mxu0 %v5752_v62  ;;  %v5819_v35 = vld [vmem:[#allocation6 + $0x500] ss:$16 sps:$4 sm:$0xff]   ;;  %v5822_v62 = vld [vmem:[#allocation6 + $0x508] ss:$16 sps:$4 sm:$0xff]  }
 0x3b3   :  { %4024 = vmatpush1.bf16.msra.mxu1 %v5747_v13  ;;  %4188 = vmatpush1.bf16.msra.mxu0 %v5750_v21  ;;  %v5827_v13 = vld [vmem:[#allocation6 + $0x524] ss:$16 sps:$4 sm:$0xff]   ;;  %v5830_v21 = vld [vmem:[#allocation6 + $0x52c] ss:$16 sps:$4 sm:$0xff]  }
 0x3b4   :  { %4025 = vmatprep.subr.bf16.mxu1 %v5755_v14  ;;  %4189 = vmatprep.subr.bf16.mxu0 %v5758_v16  ;;  %v5825_v14 = vld [vmem:[#allocation6 + $0x520] ss:$16 sps:$4 sm:$0xff]   ;;  %v5828_v16 = vld [vmem:[#allocation6 + $0x528] ss:$16 sps:$4 sm:$0xff]  }
 0x3b5   :  { %v6126_v22 = vpop.eup %6125 }
 0x3b6   :  { %v2345_v24 = vadd.f32 1.0, %v6126_v22  ;;  %v5839_v22 = vld [vmem:[#allocation6 + $0x564] ss:$16 sps:$4 sm:$0xff]  }
 0x3b7   :  { %4026 = vmatpush1.bf16.msra.mxu1 %v5753_v18  ;;  %4190 = vmatpush1.bf16.msra.mxu0 %v5756_v23  ;;  %v5833_v18 = vld [vmem:[#allocation6 + $0x544] ss:$16 sps:$4 sm:$0xff]   ;;  %v5836_v23 = vld [vmem:[#allocation6 + $0x54c] ss:$16 sps:$4 sm:$0xff]  }
 0x3b8   :  { %4027 = vmatprep.subr.bf16.mxu1 %v5761_v42  ;;  %4191 = vmatprep.subr.bf16.mxu0 %v5764_v39  ;;  %v6934_v32 = vmul.f32 %v2345_v24, %v2331_v17  ;;  %v5831_v42 = vld [vmem:[#allocation6 + $0x540] ss:$16 sps:$4 sm:$0xff]   ;;  %v5834_v39 = vld [vmem:[#allocation6 + $0x548] ss:$16 sps:$4 sm:$0xff]   ;;  %v5842_v17 = vld [vmem:[#allocation6 + $0x56c] ss:$16 sps:$4 sm:$0xff]  }
 0x3b9   :  { %v5837_v24 = vld [vmem:[#allocation6 + $0x560] ss:$16 sps:$4 sm:$0xff]  }
 0x3ba   :  { %v6938_v48 = vrot.slane %v6934_v32, %v6833_v45 }
 0x3bb   :  { %4028 = vmatpush1.bf16.msra.mxu1 %v5759_v19  ;;  %4192 = vmatpush1.bf16.msra.mxu0 %v5762_v52  ;;  %v5840_v19 = vld [vmem:[#allocation6 + $0x568] ss:$16 sps:$4 sm:$0xff]   ;;  %v5845_v52 = vld [vmem:[#allocation6 + $0x584] ss:$16 sps:$4 sm:$0xff]  }
 0x3bc   :  { %4029 = vmatprep.subr.bf16.mxu1 %v5767_v20  ;;  %4193 = vmatprep.subr.bf16.mxu0 %v5770_v53  ;;  %v2382_v50 = vcombine.high %v6938_v48, %v6938_v48  ;;  %v5848_v20 = vld [vmem:[#allocation6 + $0x58c] ss:$16 sps:$4 sm:$0xff]   ;;  %v5843_v53 = vld [vmem:[#allocation6 + $0x580] ss:$16 sps:$4 sm:$0xff]  }
 0x3be   :  { %v2397_v40 = vpack.c.bf16 %v2382_v50, %v2382_v50  ;;  %v5852_v50 = vld [vmem:[#allocation6 + $0x5a8] ss:$16 sps:$4 sm:$0xff]  }
 0x3bf   :  { %4030 = vmatpush1.bf16.msra.mxu1 %v5765_v54  ;;  %4194 = vmatpush1.bf16.msra.mxu0 %v5768_v37  ;;  %v5846_v54 = vld [vmem:[#allocation6 + $0x588] ss:$16 sps:$4 sm:$0xff]   ;;  %v5851_v37 = vld [vmem:[#allocation6 + $0x5a4] ss:$16 sps:$4 sm:$0xff]  }
 0x3c0   :  { %4040 = vmatprep.subr.bf16.mxu1 %v5773_v15  ;;  %4204 = vmatprep.subr.bf16.mxu0 %v5776_v31  ;;  %v5854_v15 = vld [vmem:[#allocation6 + $0x5ac] ss:$16 sps:$4 sm:$0xff]   ;;  %v5849_v31 = vld [vmem:[#allocation6 + $0x5a0] ss:$16 sps:$4 sm:$0xff]  }
 0x3c2   :  { %4032 = vmatmul.mubr.bf16.vlgmr.msra.gmra.mrb[48].mxu1 %v2394_v5  ;;  %4196 = vmatmul.mubr.bf16.vlgmr.msra.gmra.mrb[96].mxu0 %v2394_v5  ;;  %v2367_v5 = vcombine.high %v6934_v32, %v6934_v32 }
 0x3c3   :  { %4041 = vmatpush1.bf16.msra.mxu1 %v5771_v51  ;;  %4072 = vmatprep.mubr.bf16.mxu1 %v2397_v40  ;;  %v5857_v51 = vld [vmem:[#allocation6 + $0x5c4] ss:$16 sps:$4 sm:$0xff]  }
 0x3c4   :  { %4205 = vmatpush1.bf16.msra.mxu0 %v5774_v43  ;;  %4236 = vmatprep.mubr.bf16.mxu0 %v2397_v40  ;;  %v5860_v40 = vld [vmem:[#allocation6 + $0x5cc] ss:$16 sps:$4 sm:$0xff]   ;;  %v5855_v43 = vld [vmem:[#allocation6 + $0x5c0] ss:$16 sps:$4 sm:$0xff]  }
 0x3c5   :  { %4042 = vmatprep.subr.bf16.mxu1 %v5779_v12  ;;  %4206 = vmatprep.subr.bf16.mxu0 %v5782_v55  ;;  %v5858_v12 = vld [vmem:[#allocation6 + $0x5c8] ss:$16 sps:$4 sm:$0xff]   ;;  %v5863_v55 = vld [vmem:[#allocation6 + $0x5e4] ss:$16 sps:$4 sm:$0xff]  }
 0x3c7   :  { %4043 = vmatpush1.bf16.msra.mxu1 %v5777_v28  ;;  %v5866_v28 = vld [vmem:[#allocation6 + $0x5ec] ss:$16 sps:$4 sm:$0xff]  }
 0x3c8   :  { %4207 = vmatpush1.bf16.msra.mxu0 %v5780_v41  ;;  %4044 = vmatprep.subr.bf16.mxu1 %v5785_v46  ;;  %v6947_v41 = vrot.slane %v2367_v5, %v6833_v45  ;;  %v5861_v46 = vld [vmem:[#allocation6 + $0x5e0] ss:$16 sps:$4 sm:$0xff]   ;;  %v5870_v45 = vld [vmem:[#allocation6 + $0x608] ss:$16 sps:$4 sm:$0xff]   ;;  %v5941_v5 = vld [vmem:[#allocation6 + $0x784] ss:$16 sps:$4 sm:$0xff]  }
 0x3c9   :  { %4208 = vmatprep.subr.bf16.mxu0 %v5788_v47  ;;  %v5864_v47 = vld [vmem:[#allocation6 + $0x5e8] ss:$16 sps:$4 sm:$0xff]  }
 0x3ca   :  { %v2383_v32 = vcombine.high %v6947_v41, %v6947_v41 }
 0x3cb   :  { %4045 = vmatpush1.bf16.msra.mxu1 %v5783_v49  ;;  %v5869_v49 = vld [vmem:[#allocation6 + $0x604] ss:$16 sps:$4 sm:$0xff]  }
 0x3cc   :  { %4209 = vmatpush1.bf16.msra.mxu0 %v5786_v56  ;;  %4046 = vmatprep.subr.bf16.mxu1 %v5791_v59  ;;  %v5872_v56 = vld [vmem:[#allocation6 + $0x60c] ss:$16 sps:$4 sm:$0xff]   ;;  %v5867_v59 = vld [vmem:[#allocation6 + $0x600] ss:$16 sps:$4 sm:$0xff]  }
 0x3cd   :  { %4210 = vmatprep.subr.bf16.mxu0 %v5794_v63  ;;  %v2396_v63 = vpack.c.bf16 %v6938_v48, %v6938_v48  ;;  %v5879_v48 = vld [vmem:[#allocation6 + $0x640] ss:$16 sps:$4 sm:$0xff]  }
 0x3cf   :  { %4047 = vmatpush1.bf16.msra.mxu1 %v5789_v33  ;;  %v5875_v33 = vld [vmem:[#allocation6 + $0x624] ss:$16 sps:$4 sm:$0xff]  }
 0x3d0   :  { %4211 = vmatpush1.bf16.msra.mxu0 %v5792_v36  ;;  %4048 = vmatprep.subr.bf16.mxu1 %v5797_v26  ;;  %v2399_v36 = vpack.c.bf16 %v2383_v32, %v2383_v32  ;;  %v5878_v26 = vld [vmem:[#allocation6 + $0x62c] ss:$16 sps:$4 sm:$0xff]  }
 0x3d1   :  { %4212 = vmatprep.subr.bf16.mxu0 %v5800_v0  ;;  %v5873_v0 = vld [vmem:[#allocation6 + $0x620] ss:$16 sps:$4 sm:$0xff]   ;;  %v5956_v32 = vld [vmem:[#allocation6 + $0x7cc] ss:$16 sps:$4 sm:$0xff]  }
 0x3d3   :  { %4049 = vmatpush1.bf16.msra.mxu1 %v5795_v2  ;;  %v5876_v2 = vld [vmem:[#allocation6 + $0x628] ss:$16 sps:$4 sm:$0xff]  }
 0x3d4   :  { %4213 = vmatpush1.bf16.msra.mxu0 %v5798_v3  ;;  %4050 = vmatprep.subr.bf16.mxu1 %v5803_v6  ;;  %v5881_v3 = vld [vmem:[#allocation6 + $0x644] ss:$16 sps:$4 sm:$0xff]   ;;  %v5884_v6 = vld [vmem:[#allocation6 + $0x64c] ss:$16 sps:$4 sm:$0xff]  }
 0x3d5   :  { %4214 = vmatprep.subr.bf16.mxu0 %v5806_v7  ;;  %v5882_v7 = vld [vmem:[#allocation6 + $0x648] ss:$16 sps:$4 sm:$0xff]  }
 0x3d7   :  { %4051 = vmatpush1.bf16.msra.mxu1 %v5801_v4  ;;  %v5887_v4 = vld [vmem:[#allocation6 + $0x664] ss:$16 sps:$4 sm:$0xff]  }
 0x3d8   :  { %4215 = vmatpush1.bf16.msra.mxu0 %v5804_v1  ;;  %4052 = vmatprep.subr.bf16.mxu1 %v5809_v8  ;;  %v5890_v1 = vld [vmem:[#allocation6 + $0x66c] ss:$16 sps:$4 sm:$0xff]   ;;  %v5885_v8 = vld [vmem:[#allocation6 + $0x660] ss:$16 sps:$4 sm:$0xff]  }
 0x3d9   :  { %4216 = vmatprep.subr.bf16.mxu0 %v5812_v61  ;;  %v5888_v61 = vld [vmem:[#allocation6 + $0x668] ss:$16 sps:$4 sm:$0xff]  }
 0x3db   :  { %4053 = vmatpush1.bf16.msra.mxu1 %v5807_v9  ;;  %v5893_v9 = vld [vmem:[#allocation6 + $0x684] ss:$16 sps:$4 sm:$0xff]  }
 0x3dc   :  { %4217 = vmatpush1.bf16.msra.mxu0 %v5810_v58  ;;  %4054 = vmatprep.subr.bf16.mxu1 %v5815_v38  ;;  %v5896_v58 = vld [vmem:[#allocation6 + $0x68c] ss:$16 sps:$4 sm:$0xff]   ;;  %v5891_v38 = vld [vmem:[#allocation6 + $0x680] ss:$16 sps:$4 sm:$0xff]  }
 0x3dd   :  { %4218 = vmatprep.subr.bf16.mxu0 %v5818_v57  ;;  %v5894_v57 = vld [vmem:[#allocation6 + $0x688] ss:$16 sps:$4 sm:$0xff]  }
 0x3df   :  { %4055 = vmatpush1.bf16.msra.mxu1 %v5813_v60  ;;  %v5899_v60 = vld [vmem:[#allocation6 + $0x6a4] ss:$16 sps:$4 sm:$0xff]  }
 0x3e0   :  { %4219 = vmatpush1.bf16.msra.mxu0 %v5816_v10  ;;  %4056 = vmatprep.subr.bf16.mxu1 %v5821_v11  ;;  %v5902_v10 = vld [vmem:[#allocation6 + $0x6ac] ss:$16 sps:$4 sm:$0xff]   ;;  %v5897_v11 = vld [vmem:[#allocation6 + $0x6a0] ss:$16 sps:$4 sm:$0xff]  }
 0x3e1   :  { %4220 = vmatprep.subr.bf16.mxu0 %v5824_v34  ;;  %v5900_v34 = vld [vmem:[#allocation6 + $0x6a8] ss:$16 sps:$4 sm:$0xff]  }
 0x3e3   :  { %4057 = vmatpush1.bf16.msra.mxu1 %v5819_v35  ;;  %v5905_v35 = vld [vmem:[#allocation6 + $0x6c4] ss:$16 sps:$4 sm:$0xff]  }
 0x3e4   :  { %4221 = vmatpush1.bf16.msra.mxu0 %v5822_v62  ;;  %4058 = vmatprep.subr.bf16.mxu1 %v5827_v13  ;;  %v5908_v62 = vld [vmem:[#allocation6 + $0x6cc] ss:$16 sps:$4 sm:$0xff]   ;;  %v5903_v13 = vld [vmem:[#allocation6 + $0x6c0] ss:$16 sps:$4 sm:$0xff]  }
 0x3e5   :  { %4222 = vmatprep.subr.bf16.mxu0 %v5830_v21  ;;  %v5906_v21 = vld [vmem:[#allocation6 + $0x6c8] ss:$16 sps:$4 sm:$0xff]  }
 0x3e7   :  { %4059 = vmatpush1.bf16.msra.mxu1 %v5825_v14  ;;  %v5911_v14 = vld [vmem:[#allocation6 + $0x6e4] ss:$16 sps:$4 sm:$0xff]  }
 0x3e8   :  { %4223 = vmatpush1.bf16.msra.mxu0 %v5828_v16  ;;  %4060 = vmatprep.subr.bf16.mxu1 %v5833_v18  ;;  %v5914_v16 = vld [vmem:[#allocation6 + $0x6ec] ss:$16 sps:$4 sm:$0xff]   ;;  %v5909_v18 = vld [vmem:[#allocation6 + $0x6e0] ss:$16 sps:$4 sm:$0xff]  }
 0x3e9   :  { %4224 = vmatprep.subr.bf16.mxu0 %v5836_v23  ;;  %v5912_v23 = vld [vmem:[#allocation6 + $0x6e8] ss:$16 sps:$4 sm:$0xff]  }
 0x3eb   :  { %4061 = vmatpush1.bf16.msra.mxu1 %v5831_v42  ;;  %v5917_v42 = vld [vmem:[#allocation6 + $0x704] ss:$16 sps:$4 sm:$0xff]  }
 0x3ec   :  { %4225 = vmatpush1.bf16.msra.mxu0 %v5834_v39  ;;  %4062 = vmatprep.subr.bf16.mxu1 %v5839_v22  ;;  %v5920_v39 = vld [vmem:[#allocation6 + $0x70c] ss:$16 sps:$4 sm:$0xff]   ;;  %v5915_v22 = vld [vmem:[#allocation6 + $0x700] ss:$16 sps:$4 sm:$0xff]  }
 0x3ed   :  { %4226 = vmatprep.subr.bf16.mxu0 %v5842_v17  ;;  %v5918_v17 = vld [vmem:[#allocation6 + $0x708] ss:$16 sps:$4 sm:$0xff]  }
 0x3ef   :  { %4063 = vmatpush1.bf16.msra.mxu1 %v5837_v24  ;;  %v5923_v24 = vld [vmem:[#allocation6 + $0x724] ss:$16 sps:$4 sm:$0xff]  }
 0x3f0   :  { %4227 = vmatpush1.bf16.msra.mxu0 %v5840_v19  ;;  %4064 = vmatprep.subr.bf16.mxu1 %v5845_v52  ;;  %v5926_v19 = vld [vmem:[#allocation6 + $0x72c] ss:$16 sps:$4 sm:$0xff]   ;;  %v5921_v52 = vld [vmem:[#allocation6 + $0x720] ss:$16 sps:$4 sm:$0xff]  }
 0x3f1   :  { %4228 = vmatprep.subr.bf16.mxu0 %v5848_v20  ;;  %v5924_v20 = vld [vmem:[#allocation6 + $0x728] ss:$16 sps:$4 sm:$0xff]  }
 0x3f3   :  { %4065 = vmatpush1.bf16.msra.mxu1 %v5843_v53  ;;  %v5929_v53 = vld [vmem:[#allocation6 + $0x744] ss:$16 sps:$4 sm:$0xff]  }
 0x3f4   :  { %4229 = vmatpush1.bf16.msra.mxu0 %v5846_v54  ;;  %4066 = vmatprep.subr.bf16.mxu1 %v5851_v37  ;;  %v5932_v54 = vld [vmem:[#allocation6 + $0x74c] ss:$16 sps:$4 sm:$0xff]   ;;  %v5927_v37 = vld [vmem:[#allocation6 + $0x740] ss:$16 sps:$4 sm:$0xff]  }
 0x3f5   :  { %4230 = vmatprep.subr.bf16.mxu0 %v5854_v15  ;;  %v5930_v15 = vld [vmem:[#allocation6 + $0x748] ss:$16 sps:$4 sm:$0xff]  }
 0x3f7   :  { %4067 = vmatpush1.bf16.msra.mxu1 %v5849_v31  ;;  %v5935_v31 = vld [vmem:[#allocation6 + $0x764] ss:$16 sps:$4 sm:$0xff]  }
 0x3f8   :  { %4231 = vmatpush1.bf16.msra.mxu0 %v5852_v50  ;;  %4068 = vmatprep.subr.bf16.mxu1 %v5857_v51  ;;  %v5938_v50 = vld [vmem:[#allocation6 + $0x76c] ss:$16 sps:$4 sm:$0xff]   ;;  %v5933_v51 = vld [vmem:[#allocation6 + $0x760] ss:$16 sps:$4 sm:$0xff]  }
 0x3f9   :  { %4232 = vmatprep.subr.bf16.mxu0 %v5860_v40  ;;  %v5936_v40 = vld [vmem:[#allocation6 + $0x768] ss:$16 sps:$4 sm:$0xff]  }
 0x3fb   :  { %4069 = vmatpush1.bf16.msra.mxu1 %v5855_v43  ;;  %v5944_v43 = vld [vmem:[#allocation6 + $0x78c] ss:$16 sps:$4 sm:$0xff]  }
 0x3fc   :  { %4233 = vmatpush1.bf16.msra.mxu0 %v5858_v12  ;;  %4070 = vmatprep.subr.bf16.mxu1 %v5863_v55  ;;  %v5939_v12 = vld [vmem:[#allocation6 + $0x780] ss:$16 sps:$4 sm:$0xff]   ;;  %v5942_v55 = vld [vmem:[#allocation6 + $0x788] ss:$16 sps:$4 sm:$0xff]  }
 0x3fd   :  { %4234 = vmatprep.subr.bf16.mxu0 %v5866_v28  ;;  %v5947_v28 = vld [vmem:[#allocation6 + $0x7a4] ss:$16 sps:$4 sm:$0xff]  }
 0x3ff   :  { %4071 = vmatpush1.bf16.msra.mxu1 %v5861_v46  ;;  %v5950_v46 = vld [vmem:[#allocation6 + $0x7ac] ss:$16 sps:$4 sm:$0xff]  }
 0x400   :  { %4235 = vmatpush1.bf16.msra.mxu0 %v5864_v47  ;;  %4081 = vmatprep.subr.bf16.mxu1 %v5869_v49  ;;  %v5945_v47 = vld [vmem:[#allocation6 + $0x7a0] ss:$16 sps:$4 sm:$0xff]   ;;  %v5948_v49 = vld [vmem:[#allocation6 + $0x7a8] ss:$16 sps:$4 sm:$0xff]  }
 0x401   :  { %4245 = vmatprep.subr.bf16.mxu0 %v5872_v56  ;;  %v5953_v56 = vld [vmem:[#allocation6 + $0x7c4] ss:$16 sps:$4 sm:$0xff]  }
 0x402   :  { %4073 = vmatmul.mubr.bf16.vlgmr.msra.gmra.mrb[48].mxu1 %v2396_v63 }
 0x403   :  { %4237 = vmatmul.mubr.bf16.vlgmr.msra.gmra.mrb[96].mxu0 %v2396_v63  ;;  %4082 = vmatpush1.bf16.msra.mxu1 %v5867_v59  ;;  %v5951_v59 = vld [vmem:[#allocation6 + $0x7c0] ss:$16 sps:$4 sm:$0xff]   ;;  %v5954_v63 = vld [vmem:[#allocation6 + $0x7c8] ss:$16 sps:$4 sm:$0xff]  }
 0x404   :  { %4113 = vmatprep.mubr.bf16.mxu1 %v2399_v36  ;;  %4246 = vmatpush1.bf16.msra.mxu0 %v5870_v45  ;;  %v5959_v45 = vld [vmem:[#allocation6 + $0x7e4] ss:$16 sps:$4 sm:$0xff]  }
 0x405   :  { %4277 = vmatprep.mubr.bf16.mxu0 %v2399_v36  ;;  %4083 = vmatprep.subr.bf16.mxu1 %v5875_v33  ;;  %v5962_v33 = vld [vmem:[#allocation6 + $0x7ec] ss:$16 sps:$4 sm:$0xff]   ;;  %v5957_v36 = vld [vmem:[#allocation6 + $0x7e0] ss:$16 sps:$4 sm:$0xff]  }
 0x406   :  { %4247 = vmatprep.subr.bf16.mxu0 %v5878_v26  ;;  %v5960_v26 = vld [vmem:[#allocation6 + $0x7e8] ss:$16 sps:$4 sm:$0xff]  }
 0x407   :  { %4084 = vmatpush1.bf16.msra.mxu1 %v5873_v0  ;;  %v5965_v0 = vld [vmem:[#allocation8 + $0x4] ss:$8 sps:$4 sm:$0xff]  }
 0x408   :  { %4248 = vmatpush1.bf16.msra.mxu0 %v5876_v2  ;;  %4085 = vmatprep.subr.bf16.mxu1 %v5881_v3  ;;  %v5963_v2 = vld [vmem:[#allocation8] ss:$8 sps:$4 sm:$0xff]   ;;  %v2398_v3 = vpack.c.bf16 %v6947_v41, %v6947_v41  ;;  %v5980_v41 = vld [vmem:[#allocation8 + $0x54] ss:$8 sps:$4 sm:$0xff]  }
 0x409   :  { %4249 = vmatprep.subr.bf16.mxu0 %v5884_v6  ;;  %v5968_v6 = vld [vmem:[#allocation8 + $0x14] ss:$8 sps:$4 sm:$0xff]  }
 0x40b   :  { %4086 = vmatpush1.bf16.msra.mxu1 %v5879_v48  ;;  %v5966_v48 = vld [vmem:[#allocation8 + $0x10] ss:$8 sps:$4 sm:$0xff]  }
 0x40c   :  { %4250 = vmatpush1.bf16.msra.mxu0 %v5882_v7  ;;  %4087 = vmatprep.subr.bf16.mxu1 %v5887_v4  ;;  %v5971_v7 = vld [vmem:[#allocation8 + $0x24] ss:$8 sps:$4 sm:$0xff]   ;;  %v5969_v4 = vld [vmem:[#allocation8 + $0x20] ss:$8 sps:$4 sm:$0xff]  }
 0x40d   :  { %4251 = vmatprep.subr.bf16.mxu0 %v5890_v1  ;;  %v5974_v1 = vld [vmem:[#allocation8 + $0x34] ss:$8 sps:$4 sm:$0xff]  }
 0x40f   :  { %4088 = vmatpush1.bf16.msra.mxu1 %v5885_v8  ;;  %v5972_v8 = vld [vmem:[#allocation8 + $0x30] ss:$8 sps:$4 sm:$0xff]  }
 0x410   :  { %4252 = vmatpush1.bf16.msra.mxu0 %v5888_v61  ;;  %4089 = vmatprep.subr.bf16.mxu1 %v5893_v9  ;;  %v5977_v61 = vld [vmem:[#allocation8 + $0x44] ss:$8 sps:$4 sm:$0xff]   ;;  %v5975_v9 = vld [vmem:[#allocation8 + $0x40] ss:$8 sps:$4 sm:$0xff]  }
 0x411   :  { %4253 = vmatprep.subr.bf16.mxu0 %v5896_v58  ;;  %v5978_v58 = vld [vmem:[#allocation8 + $0x50] ss:$8 sps:$4 sm:$0xff]  }
 0x413   :  { %4090 = vmatpush1.bf16.msra.mxu1 %v5891_v38  ;;  %v5983_v38 = vld [vmem:[#allocation8 + $0x64] ss:$8 sps:$4 sm:$0xff]  }
 0x414   :  { %4254 = vmatpush1.bf16.msra.mxu0 %v5894_v57  ;;  %4091 = vmatprep.subr.bf16.mxu1 %v5899_v60  ;;  %v5981_v57 = vld [vmem:[#allocation8 + $0x60] ss:$8 sps:$4 sm:$0xff]   ;;  %v5986_v60 = vld [vmem:[#allocation8 + $0x74] ss:$8 sps:$4 sm:$0xff]  }
 0x415   :  { %4255 = vmatprep.subr.bf16.mxu0 %v5902_v10  ;;  %v5984_v10 = vld [vmem:[#allocation8 + $0x70] ss:$8 sps:$4 sm:$0xff]  }
 0x417   :  { %4092 = vmatpush1.bf16.msra.mxu1 %v5897_v11  ;;  %v5989_v11 = vld [vmem:[#allocation8 + $0x84] ss:$8 sps:$4 sm:$0xff]  }
 0x418   :  { %4256 = vmatpush1.bf16.msra.mxu0 %v5900_v34  ;;  %4093 = vmatprep.subr.bf16.mxu1 %v5905_v35  ;;  %v5987_v34 = vld [vmem:[#allocation8 + $0x80] ss:$8 sps:$4 sm:$0xff]   ;;  %v5992_v35 = vld [vmem:[#allocation8 + $0x94] ss:$8 sps:$4 sm:$0xff]  }
 0x419   :  { %4257 = vmatprep.subr.bf16.mxu0 %v5908_v62  ;;  %v5990_v62 = vld [vmem:[#allocation8 + $0x90] ss:$8 sps:$4 sm:$0xff]  }
 0x41b   :  { %4094 = vmatpush1.bf16.msra.mxu1 %v5903_v13  ;;  %v5995_v13 = vld [vmem:[#allocation8 + $0xa4] ss:$8 sps:$4 sm:$0xff]  }
 0x41c   :  { %4258 = vmatpush1.bf16.msra.mxu0 %v5906_v21  ;;  %4095 = vmatprep.subr.bf16.mxu1 %v5911_v14  ;;  %v5993_v21 = vld [vmem:[#allocation8 + $0xa0] ss:$8 sps:$4 sm:$0xff]   ;;  %v5996_v14 = vld [vmem:[#allocation8 + $0xb0] ss:$8 sps:$4 sm:$0xff]  }
 0x41d   :  { %4259 = vmatprep.subr.bf16.mxu0 %v5914_v16  ;;  %v5998_v16 = vld [vmem:[#allocation8 + $0xb4] ss:$8 sps:$4 sm:$0xff]  }
 0x41f   :  { %4096 = vmatpush1.bf16.msra.mxu1 %v5909_v18  ;;  %v6001_v18 = vld [vmem:[#allocation8 + $0xc4] ss:$8 sps:$4 sm:$0xff]  }
 0x420   :  { %4260 = vmatpush1.bf16.msra.mxu0 %v5912_v23  ;;  %4097 = vmatprep.subr.bf16.mxu1 %v5917_v42  ;;  %v5999_v23 = vld [vmem:[#allocation8 + $0xc0] ss:$8 sps:$4 sm:$0xff]   ;;  %v6004_v42 = vld [vmem:[#allocation8 + $0xd4] ss:$8 sps:$4 sm:$0xff]  }
 0x421   :  { %4261 = vmatprep.subr.bf16.mxu0 %v5920_v39  ;;  %v6002_v39 = vld [vmem:[#allocation8 + $0xd0] ss:$8 sps:$4 sm:$0xff]  }
 0x423   :  { %4098 = vmatpush1.bf16.msra.mxu1 %v5915_v22  ;;  %v6007_v22 = vld [vmem:[#allocation8 + $0xe4] ss:$8 sps:$4 sm:$0xff]  }
 0x424   :  { %4262 = vmatpush1.bf16.msra.mxu0 %v5918_v17  ;;  %4099 = vmatprep.subr.bf16.mxu1 %v5923_v24  ;;  %v6005_v17 = vld [vmem:[#allocation8 + $0xe0] ss:$8 sps:$4 sm:$0xff]   ;;  %v6010_v24 = vld [vmem:[#allocation8 + $0xf4] ss:$8 sps:$4 sm:$0xff]  }
 0x425   :  { %4263 = vmatprep.subr.bf16.mxu0 %v5926_v19  ;;  %v6008_v19 = vld [vmem:[#allocation8 + $0xf0] ss:$8 sps:$4 sm:$0xff]  }
 0x427   :  { %4100 = vmatpush1.bf16.msra.mxu1 %v5921_v52  ;;  %v6013_v52 = vld [vmem:[#allocation8 + $0x104] ss:$8 sps:$4 sm:$0xff]  }
 0x428   :  { %4264 = vmatpush1.bf16.msra.mxu0 %v5924_v20  ;;  %4101 = vmatprep.subr.bf16.mxu1 %v5929_v53  ;;  %v4838_v20 = vld [vmem:[#allocation9 + $0x80] sm:$0xff]  ;;  %v4839_v53 = vld [vmem:[#allocation9 + $0x88] sm:$0xff] }
 0x429   :  { %4265 = vmatprep.subr.bf16.mxu0 %v5932_v54  ;;  %v4822_v54 = vld [vmem:[#allocation9] sm:$0xff] }
 0x42b   :  { %4102 = vmatpush1.bf16.msra.mxu1 %v5927_v37  ;;  %v5449_v37 = vpack.c.bf16 %v4839_v53, %v4838_v20  ;;  %v6023_v20 = vld [vmem:[#allocation8 + $0x140] ss:$8 sps:$4 sm:$0xff]   ;;  %v6028_v53 = vld [vmem:[#allocation8 + $0x154] ss:$8 sps:$4 sm:$0xff]  }
 0x42c   :  { %4266 = vmatpush1.bf16.msra.mxu0 %v5930_v15  ;;  %4103 = vmatprep.subr.bf16.mxu1 %v5935_v31  ;;  %v4823_v15 = vld [vmem:[#allocation9 + $0x8] sm:$0xff] }
 0x42d   :  { %4267 = vmatprep.subr.bf16.mxu0 %v5938_v50  ;;  %v5451_v31 = vpack.c.bf16 %v4823_v15, %v4822_v54  ;;  %v6958_v50 = vld [vmem:[%s7003_s9] sm:$0xf]  ;;  %v6031_v15 = vld [vmem:[#allocation8 + $0x164] ss:$8 sps:$4 sm:$0xff]  }
 0x42f   :  { %4104 = vmatpush1.bf16.msra.mxu1 %v5933_v51  ;;  %v2661_v51 = vrot.slane %v6958_v50, %v6495_v30 }
 0x430   :  { %4268 = vmatpush1.bf16.msra.mxu0 %v5936_v40  ;;  %4105 = vmatprep.subr.bf16.mxu1 %v5941_v5  ;;  %v2665_v40 = vrot.slane %v6958_v50, %v6492_v29  ;;  %v2673_v5 = vrot.slane %v6958_v50, %v6852_v44 }
 0x431   :  { %4269 = vmatprep.subr.bf16.mxu0 %v5944_v43 }
 0x433   :  { %4106 = vmatpush1.bf16.msra.mxu1 %v5939_v12 }
 0x434   :  { %4270 = vmatpush1.bf16.msra.mxu0 %v5942_v55  ;;  %4107 = vmatprep.subr.bf16.mxu1 %v5947_v28 }
 0x435   :  { %4271 = vmatprep.subr.bf16.mxu0 %v5950_v46 }
 0x437   :  { %4108 = vmatpush1.bf16.msra.mxu1 %v5945_v47 }
 0x438   :  { %4272 = vmatpush1.bf16.msra.mxu0 %v5948_v49  ;;  %4109 = vmatprep.subr.bf16.mxu1 %v5953_v56 }
 0x439   :  { %4273 = vmatprep.subr.bf16.mxu0 %v5956_v32 }
 0x43b   :  { %4110 = vmatpush1.bf16.msra.mxu1 %v5951_v59 }
 0x43c   :  { %4274 = vmatpush1.bf16.msra.mxu0 %v5954_v63  ;;  %4111 = vmatprep.subr.bf16.mxu1 %v5959_v45 }
 0x43d   :  { %4275 = vmatprep.subr.bf16.mxu0 %v5962_v33 }
 0x43f   :  { %4112 = vmatpush1.bf16.msra.mxu1 %v5957_v36 }
 0x440   :  { %4276 = vmatpush1.bf16.msra.mxu0 %v5960_v26  ;;  %4722 = vmatprep.subr.bf16.mxu1 %v5965_v0 }
 0x441   :  { %5450 = vmatprep.subr.bf16.mxu0 %v5449_v37  ;;  %v6026_v37 = vld [vmem:[#allocation8 + $0x150] ss:$8 sps:$4 sm:$0xff]  }
 0x442   :  { %4114 = vmatmul.mubr.bf16.vlgmr.msra.gmra.mrb[48].mxu1 %v2398_v3 }
 0x443   :  { %4278 = vmatmul.mubr.bf16.vlgmr.msra.gmra.mrb[96].mxu0 %v2398_v3  ;;  %4723 = vmatpush1.bf16.msra.mxu1 %v5963_v2 }
 0x444   :  { %4724 = vmatprep.subr.bf16.mxu1 %v5968_v6  ;;  %5452 = vmatpush3.bf16.msra.mxu0 %v5451_v31 }
 0x447   :  { %4725 = vmatpush1.bf16.msra.mxu1 %v5966_v48 }
 0x448   :  { %4726 = vmatprep.subr.bf16.mxu1 %v5971_v7 }
 0x44b   :  { %4727 = vmatpush1.bf16.msra.mxu1 %v5969_v4 }
 0x44c   :  { %4728 = vmatprep.subr.bf16.mxu1 %v5974_v1 }
 0x44f   :  { %4729 = vmatpush1.bf16.msra.mxu1 %v5972_v8 }
 0x450   :  { %4730 = vmatprep.subr.bf16.mxu1 %v5977_v61 }
 0x453   :  { %4731 = vmatpush1.bf16.msra.mxu1 %v5975_v9 }
 0x454   :  { %4732 = vmatprep.subr.bf16.mxu1 %v5980_v41 }
 0x457   :  { %4733 = vmatpush1.bf16.msra.mxu1 %v5978_v58 }
 0x458   :  { %4734 = vmatprep.subr.bf16.mxu1 %v5983_v38 }
 0x45b   :  { %4735 = vmatpush1.bf16.msra.mxu1 %v5981_v57 }
 0x45c   :  { %4736 = vmatprep.subr.bf16.mxu1 %v5986_v60 }
 0x45f   :  { %4737 = vmatpush1.bf16.msra.mxu1 %v5984_v10 }
 0x460   :  { %4738 = vmatprep.subr.bf16.mxu1 %v5989_v11 }
 0x463   :  { %4739 = vmatpush1.bf16.msra.mxu1 %v5987_v34 }
 0x464   :  { %4740 = vmatprep.subr.bf16.mxu1 %v5992_v35 }
 0x467   :  { %4741 = vmatpush1.bf16.msra.mxu1 %v5990_v62 }
 0x468   :  { %4742 = vmatprep.subr.bf16.mxu1 %v5995_v13 }
 0x46b   :  { %4743 = vmatpush1.bf16.msra.mxu1 %v5993_v21 }
 0x46c   :  { %4744 = vmatprep.subr.bf16.mxu1 %v5998_v16 }
 0x46f   :  { %4745 = vmatpush1.bf16.msra.mxu1 %v5996_v14  ;;  %v6011_v14 = vld [vmem:[#allocation8 + $0x100] ss:$8 sps:$4 sm:$0xff]  }
 0x470   :  { %4746 = vmatprep.subr.bf16.mxu1 %v6001_v18  ;;  %v6016_v18 = vld [vmem:[#allocation8 + $0x114] ss:$8 sps:$4 sm:$0xff]  }
 0x473   :  { %4747 = vmatpush1.bf16.msra.mxu1 %v5999_v23 }
 0x474   :  { %4748 = vmatprep.subr.bf16.mxu1 %v6004_v42  ;;  %v6014_v42 = vld [vmem:[#allocation8 + $0x110] ss:$8 sps:$4 sm:$0xff]  }
 0x477   :  { %4749 = vmatpush1.bf16.msra.mxu1 %v6002_v39  ;;  %v6019_v39 = vld [vmem:[#allocation8 + $0x124] ss:$8 sps:$4 sm:$0xff]  }
 0x478   :  { %4750 = vmatprep.subr.bf16.mxu1 %v6007_v22  ;;  %v6017_v22 = vld [vmem:[#allocation8 + $0x120] ss:$8 sps:$4 sm:$0xff]  }
 0x47b   :  { %4751 = vmatpush1.bf16.msra.mxu1 %v6005_v17  ;;  %v6022_v17 = vld [vmem:[#allocation8 + $0x134] ss:$8 sps:$4 sm:$0xff]  }
 0x47c   :  { %4752 = vmatprep.subr.bf16.mxu1 %v6010_v24  ;;  %v6020_v24 = vld [vmem:[#allocation8 + $0x130] ss:$8 sps:$4 sm:$0xff]  }
 0x47f   :  { %4753 = vmatpush1.bf16.msra.mxu1 %v6008_v19  ;;  %v6025_v19 = vld [vmem:[#allocation8 + $0x144] ss:$8 sps:$4 sm:$0xff]  }
 0x480   :  { %4763 = vmatprep.subr.bf16.mxu1 %v6013_v52  ;;  %v2669_v52 = vrot.slane %v6958_v50, %v6489_v27  ;;  %v6037_v27 = vld [vmem:[#allocation8 + $0x184] ss:$8 sps:$4 sm:$0xff]  }
 0x515   :  { %v4115_v43 = vpop.f32.mrb[48].mxu1 }
 0x516   :  { %v5497_v12 = vadd.f32 %v4115_v43, %v2661_v51  ;;  %v6966_v55 = vpop.f32.mrb[96].mxu0  ;;  %v4117_v28 = vpop.f32.mrb[49].mxu1  ;;  %v6029_v51 = vld [vmem:[#allocation8 + $0x160] ss:$8 sps:$4 sm:$0xff]   ;;  %v6032_v43 = vld [vmem:[#allocation8 + $0x170] ss:$8 sps:$4 sm:$0xff]  }
 0x517   :  { %v5498_v46 = vadd.f32 %v4117_v28, %v2665_v40  ;;  %v4281_v47 = vpop.f32.mrb[97].mxu0  ;;  %v4119_v49 = vpop.f32.mrb[50].mxu1  ;;  %v5499_v54 = vadd.f32 %v6966_v55, %v2669_v52  ;;  %v6034_v40 = vld [vmem:[#allocation8 + $0x174] ss:$8 sps:$4 sm:$0xff]  }
 0x518   :  { %v4290_v56 = vmul.f32 0.044715, %v5497_v12  ;;  %v5500_v32 = vadd.f32 %v4281_v47, %v2673_v5  ;;  %v4283_v59 = vpop.f32.mrb[98].mxu0  ;;  %v4120_v63 = vpop.f32.mrb[51].mxu1  ;;  %v4286_v58 = vmul.f32 0.5, %v5497_v12 }
 0x519   :  { %v4291_v45 = vmul.f32 0.044715, %v5498_v46  ;;  %v4284_v33 = vpop.f32.mrb[99].mxu0  ;;  %v4287_v60 = vmul.f32 0.5, %v5498_v46  ;;  %v4292_v31 = vmul.f32 0.044715, %v5499_v54 }
 0x51a   :  { %v4294_v36 = vmul.f32 %v5497_v12, %v4290_v56  ;;  %v4293_v26 = vmul.f32 0.044715, %v5500_v32  ;;  %v4289_v34 = vmul.f32 0.5, %v5500_v32  ;;  %v6040_v28 = vld [vmem:[#allocation8 + $0x194] ss:$8 sps:$4 sm:$0xff]  }
 0x51b   :  { %v4295_v0 = vmul.f32 %v5498_v46, %v4291_v45  ;;  %v4296_v5 = vmul.f32 %v5499_v54, %v4292_v31  ;;  %v6043_v47 = vld [vmem:[#allocation8 + $0x1a4] ss:$8 sps:$4 sm:$0xff]   ;;  %v6041_v49 = vld [vmem:[#allocation8 + $0x1a0] ss:$8 sps:$4 sm:$0xff]   ;;  %v6044_v59 = vld [vmem:[#allocation8 + $0x1b0] ss:$8 sps:$4 sm:$0xff]  }
 0x51c   :  { %v4298_v2 = vmul.f32 %v5497_v12, %v4294_v36  ;;  %v4297_v3 = vmul.f32 %v5500_v32, %v4293_v26  ;;  %v6049_v63 = vld [vmem:[#allocation8 + $0x1c4] ss:$8 sps:$4 sm:$0xff]   ;;  %v6047_v45 = vld [vmem:[#allocation8 + $0x1c0] ss:$8 sps:$4 sm:$0xff]   ;;  %v6052_v33 = vld [vmem:[#allocation8 + $0x1d4] ss:$8 sps:$4 sm:$0xff]  }
 0x51d   :  { %v4299_v44 = vmul.f32 %v5498_v46, %v4295_v0  ;;  %v4300_v50 = vmul.f32 %v5499_v54, %v4296_v5  ;;  %v6050_v36 = vld [vmem:[#allocation8 + $0x1d0] ss:$8 sps:$4 sm:$0xff]   ;;  %v6055_v26 = vld [vmem:[#allocation8 + $0x1e4] ss:$8 sps:$4 sm:$0xff]  }
 0x51e   :  { %v4302_v6 = vadd.f32 %v5497_v12, %v4298_v2  ;;  %v4301_v48 = vmul.f32 %v5500_v32, %v4297_v3  ;;  %v6035_v12 = vld [vmem:[#allocation8 + $0x180] ss:$8 sps:$4 sm:$0xff]   ;;  %v6058_v3 = vld [vmem:[#allocation8 + $0x1f4] ss:$8 sps:$4 sm:$0xff]  }
 0x51f   :  { %v4303_v7 = vadd.f32 %v5498_v46, %v4299_v44  ;;  %v4304_v55 = vadd.f32 %v5499_v54, %v4300_v50  ;;  %v6038_v46 = vld [vmem:[#allocation8 + $0x190] ss:$8 sps:$4 sm:$0xff]   ;;  %v6053_v2 = vld [vmem:[#allocation8 + $0x1e0] ss:$8 sps:$4 sm:$0xff]  }
 0x520   :  { %v4306_v4 = vmul.f32 0.7978846, %v4302_v6  ;;  %v4305_v1 = vadd.f32 %v5500_v32, %v4301_v48  ;;  %v6046_v32 = vld [vmem:[#allocation8 + $0x1b4] ss:$8 sps:$4 sm:$0xff]   ;;  %v4288_v6 = vmul.f32 0.5, %v5499_v54  ;;  %v4850_v54 = vld [vmem:[#allocation9 + $0xe0] sm:$0xff] }
 0x521   :  { %v4307_v8 = vmul.f32 0.7978846, %v4303_v7  ;;  %v4308_v56 = vmul.f32 0.7978846, %v4304_v55  ;;  %v6056_v48 = vld [vmem:[#allocation8 + $0x1f0] ss:$8 sps:$4 sm:$0xff]  }
 0x522   :  { %6127 = vtanh.f32 %v4306_v4  ;;  %v4309_v61 = vmul.f32 0.7978846, %v4305_v1  ;;  %v4840_v1 = vld [vmem:[#allocation9 + $0x90] sm:$0xff] }
 0x523   :  { %6129 = vtanh.f32 %v4307_v8  ;;  %v4841_v8 = vld [vmem:[#allocation9 + $0x98] sm:$0xff]  ;;  %v4852_v5 = vld [vmem:[#allocation9 + $0xf0] sm:$0xff] }
 0x524   :  { %6131 = vtanh.f32 %v4309_v61  ;;  %v5453_v61 = vpack.c.bf16 %v4841_v8, %v4840_v1 }
 0x525   :  { %6133 = vtanh.f32 %v4308_v56 }
 0x526   :  { %5454 = vmatprep.subr.bf16.mxu0 %v5453_v61 }
 0x52c   :  { %v6128_v9 = vpop.eup %6127 }
 0x52d   :  { %v6130_v41 = vpop.eup %6129  ;;  %v4314_v38 = vadd.f32 1.0, %v6128_v9  ;;  %v4824_v9 = vld [vmem:[#allocation9 + $0x10] sm:$0xff] }
 0x52e   :  { %v6132_v57 = vpop.eup %6131  ;;  %v4315_v10 = vadd.f32 1.0, %v6130_v41  ;;  %v4825_v41 = vld [vmem:[#allocation9 + $0x18] sm:$0xff] }
 0x52f   :  { %v4318_v11 = vmul.f32 %v4314_v38, %v4286_v58  ;;  %v4317_v35 = vadd.f32 1.0, %v6132_v57  ;;  %v6134_v0 = vpop.eup %6133  ;;  %v5455_v58 = vpack.c.bf16 %v4825_v41, %v4824_v9  ;;  %v4842_v38 = vld [vmem:[#allocation9 + $0xa0] sm:$0xff]  ;;  %v4843_v57 = vld [vmem:[#allocation9 + $0xa8] sm:$0xff] }
 0x530   :  { %v4319_v62 = vmul.f32 %v4315_v10, %v4287_v60  ;;  %v4316_v44 = vadd.f32 1.0, %v6134_v0  ;;  %v5457_v60 = vpack.c.bf16 %v4843_v57, %v4842_v38  ;;  %v4826_v10 = vld [vmem:[#allocation9 + $0x20] sm:$0xff]  ;;  %v6271_v38 = vmov 1966171168  }
 0x531   :  { %v4321_v13 = vmul.f32 %v4317_v35, %v4289_v34  ;;  %v4322_v16 = vpack.c.bf16 %v4318_v11, %v4318_v11  ;;  %5456 = vmatpush3.bf16.msra.mxu0 %v5455_v58  ;;  %v4827_v11 = vld [vmem:[#allocation9 + $0x28] sm:$0xff]  ;;  %v4844_v35 = vld [vmem:[#allocation9 + $0xb0] sm:$0xff]  ;;  %v4933_v57 = vunpack.c.l.s4 %v6271_v38 }
 0x532   :  { %v4323_v21 = vpack.c.bf16 %v4319_v62, %v4319_v62  ;;  %v4320_v7 = vmul.f32 %v4316_v44, %v4288_v6  ;;  %v5459_v34 = vpack.c.bf16 %v4827_v11, %v4826_v10  ;;  %5458 = vmatprep.subr.bf16.mxu0 %v5457_v60  ;;  %v4845_v62 = vld [vmem:[#allocation9 + $0xb8] sm:$0xff]  ;;  %v5375_v11 = vld [vmem:[%s7007_s13] ss:$0 sm:$0xff] }
 0x533   :  { %v4325_v23 = vpack.c.bf16 %v4321_v13, %v4321_v13  ;;  %v4828_v13 = vld [vmem:[#allocation9 + $0x30] sm:$0xff]  ;;  %v4934_v60 = vunpack.c.0.s8 %v4933_v57 }
 0x534   :  { %4754 = vmatprep.mubr.bf16.mxu1 %v4323_v21  ;;  %v4324_v4 = vpack.c.bf16 %v4320_v7, %v4320_v7  ;;  %v5461_v21 = vpack.c.bf16 %v4845_v62, %v4844_v35 }
 0x535   :  { %4755 = vmatmul.mubr.bf16.vlgmr.msra.gmra.mrb[52].mxu1 %v4322_v16  ;;  %5460 = vmatpush3.bf16.msra.mxu0 %v5459_v34  ;;  %v4846_v16 = vld [vmem:[#allocation9 + $0xc0] sm:$0xff]  ;;  %v4937_v62 = vsub.s32 %v4934_v60, %v6486_v25 }
 0x536   :  { %4764 = vmatpush1.bf16.msra.mxu1 %v6011_v14  ;;  %4795 = vmatprep.mubr.bf16.mxu1 %v4325_v23  ;;  %v4829_v14 = vld [vmem:[#allocation9 + $0x38] sm:$0xff] }
 0x537   :  { %4765 = vmatprep.subr.bf16.mxu1 %v6016_v18  ;;  %v4847_v18 = vld [vmem:[#allocation9 + $0xc8] sm:$0xff]  ;;  %v5463_v23 = vpack.c.bf16 %v4829_v14, %v4828_v13  ;;  %5462 = vmatprep.subr.bf16.mxu0 %v5461_v21 }
 0x539   :  { %5464 = vmatpush3.bf16.msra.mxu0 %v5463_v23 }
 0x53a   :  { %4766 = vmatpush1.bf16.msra.mxu1 %v6014_v42  ;;  %v5465_v42 = vpack.c.bf16 %v4847_v18, %v4846_v16 }
 0x53b   :  { %4767 = vmatprep.subr.bf16.mxu1 %v6019_v39  ;;  %v4830_v39 = vld [vmem:[#allocation9 + $0x40] sm:$0xff] }
 0x53c   :  { %5466 = vmatprep.subr.bf16.mxu0 %v5465_v42 }
 0x53e   :  { %4768 = vmatpush1.bf16.msra.mxu1 %v6017_v22  ;;  %v4831_v22 = vld [vmem:[#allocation9 + $0x48] sm:$0xff] }
 0x53f   :  { %4769 = vmatprep.subr.bf16.mxu1 %v6022_v17  ;;  %v4848_v17 = vld [vmem:[#allocation9 + $0xd0] sm:$0xff] }
 0x542   :  { %4770 = vmatpush1.bf16.msra.mxu1 %v6020_v24  ;;  %v4849_v24 = vld [vmem:[#allocation9 + $0xd8] sm:$0xff] }
 0x543   :  { %4771 = vmatprep.subr.bf16.mxu1 %v6025_v19  ;;  %v5467_v19 = vpack.c.bf16 %v4831_v22, %v4830_v39  ;;  %v5469_v52 = vpack.c.bf16 %v4849_v24, %v4848_v17 }
 0x545   :  { %5468 = vmatpush3.bf16.msra.mxu0 %v5467_v19 }
 0x546   :  { %4772 = vmatpush1.bf16.msra.mxu1 %v6023_v20  ;;  %v4832_v20 = vld [vmem:[#allocation9 + $0x50] sm:$0xff]  ;;  %5470 = vmatprep.subr.bf16.mxu0 %v5469_v52 }
 0x547   :  { %4773 = vmatprep.subr.bf16.mxu1 %v6028_v53  ;;  %v4833_v53 = vld [vmem:[#allocation9 + $0x58] sm:$0xff] }
 0x54a   :  { %4774 = vmatpush1.bf16.msra.mxu1 %v6026_v37  ;;  %v4851_v37 = vld [vmem:[#allocation9 + $0xe8] sm:$0xff] }
 0x54b   :  { %4775 = vmatprep.subr.bf16.mxu1 %v6031_v15  ;;  %v5471_v15 = vpack.c.bf16 %v4833_v53, %v4832_v20  ;;  %v5473_v31 = vpack.c.bf16 %v4851_v37, %v4850_v54 }
 0x54d   :  { %5472 = vmatpush3.bf16.msra.mxu0 %v5471_v15 }
 0x54e   :  { %4776 = vmatpush1.bf16.msra.mxu1 %v6029_v51  ;;  %v4834_v51 = vld [vmem:[#allocation9 + $0x60] sm:$0xff]  ;;  %5474 = vmatprep.subr.bf16.mxu0 %v5473_v31 }
 0x54f   :  { %4777 = vmatprep.subr.bf16.mxu1 %v6034_v40  ;;  %v4835_v40 = vld [vmem:[#allocation9 + $0x68] sm:$0xff] }
 0x552   :  { %4778 = vmatpush1.bf16.msra.mxu1 %v6032_v43  ;;  %v4853_v43 = vld [vmem:[#allocation9 + $0xf8] sm:$0xff] }
 0x553   :  { %4779 = vmatprep.subr.bf16.mxu1 %v6037_v27  ;;  %v5475_v27 = vpack.c.bf16 %v4835_v40, %v4834_v51  ;;  %v5477_v50 = vpack.c.bf16 %v4853_v43, %v4852_v5 }
 0x555   :  { %5476 = vmatpush3.bf16.msra.mxu0 %v5475_v27 }
 0x556   :  { %4780 = vmatpush1.bf16.msra.mxu1 %v6035_v12  ;;  %v4836_v12 = vld [vmem:[#allocation9 + $0x70] sm:$0xff]  ;;  %5478 = vmatprep.subr.bf16.mxu0 %v5477_v50 }
 0x557   :  { %4781 = vmatprep.subr.bf16.mxu1 %v6040_v28  ;;  %v4837_v28 = vld [vmem:[#allocation9 + $0x78] sm:$0xff] }
 0x558   :  { %v5479_v55 = vpack.c.bf16 %v4837_v28, %v4836_v12 }
 0x55a   :  { %4782 = vmatpush1.bf16.msra.mxu1 %v6038_v46  ;;  %5480 = vmatpush3.bf16.msra.mxu0 %v5479_v55  ;;  %v4390_v46 = vld [vmem:[%s7005_s11] sm:$0x3] }
 0x55b   :  { %4783 = vmatprep.subr.bf16.mxu1 %v6043_v47  ;;  %v4395_v47 = vrot.slane %v4390_v46, %v6495_v30 }
 0x55e   :  { %4784 = vmatpush1.bf16.msra.mxu1 %v6041_v49  ;;  %v4399_v49 = vrot.slane %v4390_v46, %v6492_v29 }
 0x55f   :  { %4785 = vmatprep.subr.bf16.mxu1 %v6046_v32 }
 0x562   :  { %4786 = vmatpush1.bf16.msra.mxu1 %v6044_v59 }
 0x563   :  { %4787 = vmatprep.subr.bf16.mxu1 %v6049_v63 }
 0x566   :  { %4788 = vmatpush1.bf16.msra.mxu1 %v6047_v45 }
 0x567   :  { %4789 = vmatprep.subr.bf16.mxu1 %v6052_v33 }
 0x56a   :  { %4790 = vmatpush1.bf16.msra.mxu1 %v6050_v36 }
 0x56b   :  { %4791 = vmatprep.subr.bf16.mxu1 %v6055_v26 }
 0x56e   :  { %4792 = vmatpush1.bf16.msra.mxu1 %v6053_v2 }
 0x56f   :  { %4793 = vmatprep.subr.bf16.mxu1 %v6058_v3 }
 0x572   :  { %4794 = vmatpush1.bf16.msra.mxu1 %v6056_v48 }
 0x575   :  { %4796 = vmatmul.mubr.bf16.vlgmr.msra.gmra.mrb[52].mxu1 %v4324_v4 }
 0x648   :  { %v4797_v56 = vpop.f32.mrb[52].mxu1 }
 0x649   :  { %v5501_v32 = vadd.f32 %v4797_v56, %v4395_v47  ;;  %v4799_v59 = vpop.f32.mrb[53].mxu1 }
 0x64a   :  { %v5502_v63 = vadd.f32 %v4799_v59, %v4399_v49  ;;  %v4801_v45 = vpop.f32.mrb[54].mxu1 }
 0x64b   :  { %v4806_v33 = vmul.f32 0.044715, %v5501_v32  ;;  %v4802_v36 = vpop.f32.mrb[55].mxu1  ;;  %v4804_v9 = vmul.f32 0.5, %v5501_v32 }
 0x64c   :  { %v4807_v26 = vmul.f32 0.044715, %v5502_v63  ;;  %v4805_v8 = vmul.f32 0.5, %v5502_v63 }
 0x64d   :  { %v4808_v0 = vmul.f32 %v5501_v32, %v4806_v33 }
 0x64e   :  { %v4809_v2 = vmul.f32 %v5502_v63, %v4807_v26 }
 0x64f   :  { %v4810_v3 = vmul.f32 %v5501_v32, %v4808_v0 }
 0x650   :  { %v4811_v44 = vmul.f32 %v5502_v63, %v4809_v2 }
 0x651   :  { %v4812_v6 = vadd.f32 %v5501_v32, %v4810_v3 }
 0x652   :  { %v4813_v48 = vadd.f32 %v5502_v63, %v4811_v44 }
 0x653   :  { %v4814_v7 = vmul.f32 0.7978846, %v4812_v6 }
 0x654   :  { %v4815_v4 = vmul.f32 0.7978846, %v4813_v48 }
 0x655   :  { %6135 = vtanh.f32 %v4814_v7 }
 0x656   :  { %6137 = vtanh.f32 %v4815_v4 }
 0x65f   :  { %v6136_v30 = vpop.eup %6135 }
 0x660   :  { %v6138_v29 = vpop.eup %6137  ;;  %v4818_v1 = vadd.f32 1.0, %v6136_v30 }
 0x661   :  { %v4819_v61 = vadd.f32 1.0, %v6138_v29 }
 0x662   :  { %v4820_v58 = vmul.f32 %v4818_v1, %v4804_v9 }
 0x663   :  { %v4821_v41 = vmul.f32 %v4819_v61, %v4805_v8 }
 0x665   :  { %4925 = vmatprep.mubr.f32.mxu0 %v4821_v41 }
 0x666   :  { %4926 = vmatmul.mubr.f32.vlgmr.msra.gmra.mrb[100].mxu0 %v4820_v58 }
 0x739   :  { %v5422_v10 = vpop.f32.mrb[100].mxu0 }
 0x73a   :  { %v5423_v34 = vpop.f32.mrb[101].mxu0 }
 0x73b   :  { %v5424_v35 = vadd.f32 %v5423_v34, %v5422_v10 }
 0x73d   :  { %v4928_v13 = vadd.f32 %v5424_v35, %v5375_v11 }
 0x73f   :  { %v4938_v21 = vrot.slane %v4928_v13, %v4937_v62 }
 0x741   :  { %v4939_v14 = vcombine.high %v4938_v21, %v4938_v21  ;;  %5376 = vst.sshfl [vmem:[#allocation11] sm:$0x1 pattern:$0x73625140] %v4938_v21 }
 0x743   :  { %5377 = vst.sshfl [vmem:[#allocation11 + $0x1] sm:$0x1 pattern:$0x73625140] %v4939_v14 }
 0x744   :  { %6238 = shalt.err (!%p6235_p8)
}
 0x745   :  { %s6239_s15 = scalar_lea.hbm %s7008_s14, 32 }
 0x746   :  { %p6240_p9 = scmp.ne.s32.totalorder %s7008_s14, %s6239_s15  ;;  %p6243_p10 = scmp.lt.u32.totalorder %s6239_s15, %s7008_s14 }
 0x748   :  { %p6245_p11 = pnand %p6243_p10, %p6240_p9 }
 0x74a   :  { %6248 = shalt.err (!%p6245_p11)
}
 0x74b   :  { %s6273_s10 = smov 1  }
 0x74c   :  { %4969 = dma.vmem_to_hbm [thread:$0]  %s4964_s25, 32, %s7008_s14, [#allocation5], %s6259_s24, %s6259_s24, %s6273_s10  }
 0x74d   :  { %6255 = dma.done.wait [#allocation5], 32  }
 0x74e   :  { %6256 = vsyncadd [#allocation5], 4294967264 }
 0x74f   :  { %4973 = vsyncpa [#allocation4], 1 }
 0x750   :  { %4974 = vsyncpa [#allocation7], 1 }
 0x751   :  { %4975 = vsyncpa [#allocation10], 1 }
 0x752   :  { %4976 = vsyncpa [#allocation5], 1 }

</bundles_post_ra>
